<compile_context>
chip_gen: v7x
topology: tpu7x:2x2x1
jax: 0.10.0
libtpu: 0.0.40
codegen_flags: <defaults>
</compile_context>

<pallas_src>
import functools

import jax
import jax.numpy as jnp
from jax import lax
from jax.experimental import pallas as pl
from jax.experimental.pallas import tpu as pltpu


def _linear_attention_kernel(x_ref, wqkv_ref, mask_ref, wout_ref, bout_ref,
                             g_ref, o_ref, *, hidden: int, eps: float,
                             batch_block: int):
    """Processes `batch_block` batch elements per grid step.

    x_ref    : (Bt, C, N)        input, channels x pixels
    wqkv_ref : (3*hidden, C)     to_qkv weight (v-rows pre-scaled by 1/(H*W))
    mask_ref : (hidden, hidden)  block-diagonal ones (heads x dim_head blocks)
    wout_ref : (C, hidden)       to_out weight (pre-scaled by dim_head**-0.5)
    bout_ref : (C, 1)            to_out bias
    g_ref    : (C, 1)            LayerNorm gain
    o_ref    : (Bt, C, N)        output
    """
    # Hoist weight loads out of the per-batch loop.
    wqkv = wqkv_ref[...]
    mask = mask_ref[...]
    wout = wout_ref[...]
    bout = bout_ref[...]
    g = g_ref[...]

    for bi in range(batch_block):
        x = x_ref[bi]  # (C, N)

        # --- to_qkv: 1x1 conv == (3H, C) @ (C, N) on the MXU ----------------
        qkv = jnp.dot(wqkv, x, preferred_element_type=jnp.float32)  # (3H, N)
        q = qkv[:hidden, :]
        k = qkv[hidden:2 * hidden, :]
        v = qkv[2 * hidden:, :]          # 1/(H*W) already folded into wqkv

        # --- q.softmax over dim_head (rows within each head, per pixel) ----
        # Subtracting the per-column global max is valid (same constant for
        # every row of a column) and keeps exp() <= 1.
        q = q - jnp.max(q, axis=0, keepdims=True)
        eq = jnp.exp(q)
        # Per-head sums broadcast back to rows via one block-diagonal matmul.
        denom = jnp.dot(mask, eq, preferred_element_type=jnp.float32)
        qn = eq * pl.reciprocal(denom, approx=True)                # (H, N)

        # --- k.softmax over pixels (lanes, per row) -------------------------
        k = k - jnp.max(k, axis=-1, keepdims=True)
        ek = jnp.exp(k)
        kn = ek * pl.reciprocal(jnp.sum(ek, axis=-1, keepdims=True),
                                approx=True)                       # (H, N)

        # --- fused context for all heads ------------------------------------
        # context[d, e] = sum_n kn[d, n] * v[e, n]   -> (hidden, hidden)
        context = lax.dot_general(
            kn, v, dimension_numbers=(((1,), (1,)), ((), ())),
            preferred_element_type=jnp.float32)
        context = context * mask                     # block-diagonal mask

        # out[e, n] = sum_d context[d, e] * qn[d, n] -> (hidden, N)
        out = lax.dot_general(
            context, qn, dimension_numbers=(((0,), (0,)), ((), ())),
            preferred_element_type=jnp.float32)

        # --- to_out[0]: 1x1 conv + bias (dim_head**-0.5 folded into wout) ---
        y = jnp.dot(wout, out, preferred_element_type=jnp.float32) + bout

        # --- to_out[1]: LayerNorm over channels (rows), per pixel -----------
        mean = jnp.mean(y, axis=0, keepdims=True)
        var = jnp.mean((y - mean) * (y - mean), axis=0, keepdims=True)
        y = (y - mean) * lax.rsqrt(var + eps) * g

        o_ref[bi] = y.astype(o_ref.dtype)


def linear_attention_pallas(x_nchw, w_qkv, w_out, b_out, g,
                            *, heads: int, dim_head: int):
    """x_nchw: (B, C, H, W) float32. Weights follow torch Conv2d conventions:
       w_qkv: (3*hidden, C), w_out: (C, hidden) squeezed from (out, in, 1, 1)."""
    b, c, h, w = x_nchw.shape
    n = h * w
    hidden = heads * dim_head
    scale = dim_head ** (-0.5)
    eps = 1e-5 if x_nchw.dtype == jnp.float32 else 1e-3
    f32 = jnp.float32

    # NCHW -> (B, C, N): a free reshape (no transpose, no extra HBM traffic).
    x_bcn = x_nchw.reshape(b, c, n)

    # Fold 1/(H*W) into the v rows of the qkv weight (v is linear in x).
    row_scale = jnp.concatenate(
        [jnp.ones((2 * hidden,), f32), jnp.full((hidden,), 1.0 / n, f32)])
    wqkv = w_qkv.astype(f32) * row_scale[:, None]            # (3H, C)
    # Fold dim_head**-0.5 into the output projection (also linear).
    wout = w_out.astype(f32) * scale                         # (C, hidden)
    bout = b_out.astype(f32).reshape(c, 1)
    g2 = g.astype(f32).reshape(c, 1)

    # Block-diagonal (heads x dim_head) ones mask: broadcasts per-head softmax
    # sums (as a matmul) and masks the fused context.
    head_id = jnp.arange(hidden) // dim_head
    mask = (head_id[:, None] == head_id[None, :]).astype(f32)  # (hidden, hidden)

    # Pack several batch elements per grid step to amortize per-step overhead.
    bt = 1
    for cand in range(min(b, 8), 0, -1):
        if b % cand == 0:
            bt = cand
            break

    kernel = functools.partial(
        _linear_attention_kernel, hidden=hidden, eps=eps, batch_block=bt)

    out_bcn = pl.pallas_call(
        kernel,
        out_shape=jax.ShapeDtypeStruct((b, c, n), x_nchw.dtype),
        grid_spec=pltpu.PrefetchScalarGridSpec(
            num_scalar_prefetch=0,
            grid=(b // bt,),
            in_specs=[
                pl.BlockSpec((bt, c, n), lambda i: (i, 0, 0)),
                pl.BlockSpec((3 * hidden, c), lambda i: (0, 0)),
                pl.BlockSpec((hidden, hidden), lambda i: (0, 0)),
                pl.BlockSpec((c, hidden), lambda i: (0, 0)),
                pl.BlockSpec((c, 1), lambda i: (0, 0)),
                pl.BlockSpec((c, 1), lambda i: (0, 0)),
            ],
            out_specs=pl.BlockSpec((bt, c, n), lambda i: (i, 0, 0)),
        ),
        compiler_params=pltpu.CompilerParams(
            dimension_semantics=("parallel",)),
    )(x_bcn, wqkv, mask, wout, bout, g2)

    # (B, C, N) -> NCHW: free reshape.
    return out_bcn.reshape(b, c, h, w)


def linear_attention_ref(x_nchw, w_qkv, w_out, b_out, g,
                         *, heads: int, dim_head: int):
    """Pure-JAX reference mirroring the PyTorch forward (for sanity check)."""
    b, c, h, w = x_nchw.shape
    n = h * w
    hidden = heads * dim_head
    scale = dim_head ** (-0.5)
    eps = 1e-5 if x_nchw.dtype == jnp.float32 else 1e-3

    x_flat = x_nchw.reshape(b, c, n)                       # (B, C, N)
    qkv = jnp.einsum('oc,bcn->bon', w_qkv, x_flat)         # (B, 3H, N)
    q, k, v = jnp.split(qkv, 3, axis=1)
    reshp = lambda t: t.reshape(b, heads, dim_head, n)     # 'b (h c) n -> b h c n'
    q, k, v = reshp(q), reshp(k), reshp(v)

    q = jax.nn.softmax(q, axis=-2) * scale
    k = jax.nn.softmax(k, axis=-1)
    v = v / n

    context = jnp.einsum('bhdn,bhen->bhde', k, v)
    out = jnp.einsum('bhde,bhdn->bhen', context, q)
    out = out.reshape(b, hidden, n)                        # 'b h e n -> b (h e) n'

    y = jnp.einsum('oc,bcn->bon', w_out, out) + b_out[None, :, None]
    mean = jnp.mean(y, axis=1, keepdims=True)
    var = jnp.mean((y - mean) ** 2, axis=1, keepdims=True)
    y = (y - mean) * lax.rsqrt(var + eps) * g[None, :, None]
    return y.reshape(b, c, h, w)


if __name__ == "__main__":
    # Module hyperparameters (heads=4, dim_head=32 are the defaults).
    dim, heads, dim_head = 8, 4, 32
    hidden = heads * dim_head
    B, H, W = 2, 16, 16

    key = jax.random.PRNGKey(0)
    k_x, k_wqkv, k_wout, k_bout = jax.random.split(key, 4)

    x = jax.random.normal(k_x, (B, dim, H, W), dtype=jnp.float32)
    # Conv2d(dim, hidden*3, 1, bias=False) weight: (out, in, 1, 1) -> (out, in)
    w_qkv = jax.random.normal(k_wqkv, (3 * hidden, dim), dtype=jnp.float32) * 0.05
    # Conv2d(hidden, dim, 1) weight/bias
    w_out = jax.random.normal(k_wout, (dim, hidden), dtype=jnp.float32) * 0.05
    b_out = jax.random.normal(k_bout, (dim,), dtype=jnp.float32) * 0.05
    # LayerNorm gain initialized to ones (as in the module).
    g = jnp.ones((dim,), dtype=jnp.float32)

    out = linear_attention_pallas(x, w_qkv, w_out, b_out, g,
                                  heads=heads, dim_head=dim_head)
    out = jax.block_until_ready(out)

    ref = linear_attention_ref(x, w_qkv, w_out, b_out, g,
                               heads=heads, dim_head=dim_head)
    assert out.shape == (B, dim, H, W)
    assert jnp.allclose(out, ref, rtol=2e-3, atol=2e-3), \
        f"max abs err {float(jnp.max(jnp.abs(out - ref)))}"

    print("KERNEL_OK")
</pallas_src>

<mosaic_0001>
module attributes {stable_mosaic.version = 11 : i64} {
  func.func @_linear_attention_kernel(%arg0: i32, %arg1: memref<2x8x256xf32, #tpu.memory_space<vmem>>, %arg2: memref<384x8xf32, #tpu.memory_space<vmem>>, %arg3: memref<128x128xf32, #tpu.memory_space<vmem>>, %arg4: memref<8x128xf32, #tpu.memory_space<vmem>>, %arg5: memref<8x1xf32, #tpu.memory_space<vmem>>, %arg6: memref<8x1xf32, #tpu.memory_space<vmem>>, %arg7: memref<2x8x256xf32, #tpu.memory_space<vmem>>) attributes {dimension_semantics = [#tpu.dimension_semantics<parallel>], iteration_bounds = array<i64: 1>, scalar_prefetch = 0 : i64, scratch_operands = 0 : i64, tpu.core_type = #tpu.core_type<tc>, window_params = [{transform_indices = @transform_0, window_bounds = array<i64: 2, 8, 256>}, {pipeline_mode = #tpu.pipeline_mode<synchronous>, transform_indices = @transform_1, window_bounds = array<i64: 384, 8>}, {pipeline_mode = #tpu.pipeline_mode<synchronous>, transform_indices = @transform_2, window_bounds = array<i64: 128, 128>}, {pipeline_mode = #tpu.pipeline_mode<synchronous>, transform_indices = @transform_3, window_bounds = array<i64: 8, 128>}, {pipeline_mode = #tpu.pipeline_mode<synchronous>, transform_indices = @transform_4, window_bounds = array<i64: 8, 1>}, {pipeline_mode = #tpu.pipeline_mode<synchronous>, transform_indices = @transform_5, window_bounds = array<i64: 8, 1>}, {transform_indices = @transform_6, window_bounds = array<i64: 2, 8, 256>}]} {
    %c0 = arith.constant 0 : index
    %c0_0 = arith.constant 0 : index
    %0 = vector.load %arg2[%c0, %c0_0] : memref<384x8xf32, #tpu.memory_space<vmem>>, vector<384x8xf32>
    %c0_1 = arith.constant 0 : index
    %c0_2 = arith.constant 0 : index
    %1 = vector.load %arg3[%c0_1, %c0_2] : memref<128x128xf32, #tpu.memory_space<vmem>>, vector<128x128xf32>
    %c0_3 = arith.constant 0 : index
    %c0_4 = arith.constant 0 : index
    %2 = vector.load %arg4[%c0_3, %c0_4] : memref<8x128xf32, #tpu.memory_space<vmem>>, vector<8x128xf32>
    %c0_5 = arith.constant 0 : index
    %c0_6 = arith.constant 0 : index
    %3 = vector.load %arg5[%c0_5, %c0_6] : memref<8x1xf32, #tpu.memory_space<vmem>>, vector<8x1xf32>
    %c0_7 = arith.constant 0 : index
    %c0_8 = arith.constant 0 : index
    %4 = vector.load %arg6[%c0_7, %c0_8] : memref<8x1xf32, #tpu.memory_space<vmem>>, vector<8x1xf32>
    %c0_9 = arith.constant 0 : index
    %c0_10 = arith.constant 0 : index
    %c0_11 = arith.constant 0 : index
    %5 = vector.load %arg1[%c0_9, %c0_10, %c0_11] : memref<2x8x256xf32, #tpu.memory_space<vmem>>, vector<1x8x256xf32>
    %6 = vector.shape_cast %5 : vector<1x8x256xf32> to vector<8x256xf32>
    %cst = arith.constant dense<0.000000e+00> : vector<384x256xf32>
    %7 = tpu.matmul %0, %6, %cst {dimension_numbers = #tpu.dot_dimension_numbers<[1], [0], [0], [1], [0, 0, 1, 1], [], []>} : vector<384x8xf32>, vector<8x256xf32>, vector<384x256xf32> -> vector<384x256xf32>
    %8 = vector.extract_strided_slice %7 {offsets = [0, 0], sizes = [128, 256], strides = [1, 1]} : vector<384x256xf32> to vector<128x256xf32>
    %9 = vector.extract_strided_slice %7 {offsets = [128, 0], sizes = [128, 256], strides = [1, 1]} : vector<384x256xf32> to vector<128x256xf32>
    %10 = vector.extract_strided_slice %7 {offsets = [256, 0], sizes = [128, 256], strides = [1, 1]} : vector<384x256xf32> to vector<128x256xf32>
    %cst_12 = arith.constant dense<0xFF800000> : vector<256xf32>
    %11 = vector.multi_reduction <maximumf>, %8, %cst_12 [0] : vector<128x256xf32> to vector<256xf32>
    %12 = vector.shape_cast %11 : vector<256xf32> to vector<1x256xf32>
    %13 = vector.broadcast %12 : vector<1x256xf32> to vector<128x256xf32>
    %14 = arith.subf %8, %13 : vector<128x256xf32>
    %15 = math.exp %14 : vector<128x256xf32>
    %cst_13 = arith.constant dense<0.000000e+00> : vector<128x256xf32>
    %16 = tpu.matmul %1, %15, %cst_13 {dimension_numbers = #tpu.dot_dimension_numbers<[1], [0], [0], [1], [0, 0, 1, 1], [], []>} : vector<128x128xf32>, vector<128x256xf32>, vector<128x256xf32> -> vector<128x256xf32>
    %17 = tpu.reciprocal %16 {approx = true} : vector<128x256xf32> -> vector<128x256xf32>
    %18 = arith.mulf %15, %17 : vector<128x256xf32>
    %cst_14 = arith.constant dense<0xFF800000> : vector<128xf32>
    %19 = vector.multi_reduction <maximumf>, %9, %cst_14 [1] : vector<128x256xf32> to vector<128xf32>
    %20 = vector.shape_cast %19 : vector<128xf32> to vector<128x1xf32>
    %21 = vector.broadcast %20 : vector<128x1xf32> to vector<128x256xf32>
    %22 = arith.subf %9, %21 : vector<128x256xf32>
    %23 = math.exp %22 : vector<128x256xf32>
    %cst_15 = arith.constant dense<0.000000e+00> : vector<128xf32>
    %24 = vector.multi_reduction <add>, %23, %cst_15 [1] : vector<128x256xf32> to vector<128xf32>
    %25 = vector.shape_cast %24 : vector<128xf32> to vector<128x1xf32>
    %26 = tpu.reciprocal %25 {approx = true} : vector<128x1xf32> -> vector<128x1xf32>
    %27 = vector.broadcast %26 : vector<128x1xf32> to vector<128x256xf32>
    %28 = arith.mulf %23, %27 : vector<128x256xf32>
    %cst_16 = arith.constant dense<0.000000e+00> : vector<128x128xf32>
    %29 = tpu.matmul %28, %10, %cst_16 {dimension_numbers = #tpu.dot_dimension_numbers<[1], [1], [0], [0], [0, 0, 1, 0], [], []>} : vector<128x256xf32>, vector<128x256xf32>, vector<128x128xf32> -> vector<128x128xf32>
    %30 = arith.mulf %29, %1 : vector<128x128xf32>
    %cst_17 = arith.constant dense<0.000000e+00> : vector<128x256xf32>
    %31 = tpu.matmul %30, %18, %cst_17 {dimension_numbers = #tpu.dot_dimension_numbers<[0], [0], [1], [1], [0, 1, 1, 1], [], []>} : vector<128x128xf32>, vector<128x256xf32>, vector<128x256xf32> -> vector<128x256xf32>
    %cst_18 = arith.constant dense<0.000000e+00> : vector<8x256xf32>
    %32 = tpu.matmul %2, %31, %cst_18 {dimension_numbers = #tpu.dot_dimension_numbers<[1], [0], [0], [1], [0, 0, 1, 1], [], []>} : vector<8x128xf32>, vector<128x256xf32>, vector<8x256xf32> -> vector<8x256xf32>
    %33 = vector.broadcast %3 : vector<8x1xf32> to vector<8x256xf32>
    %34 = arith.addf %32, %33 : vector<8x256xf32>
    %cst_19 = arith.constant dense<0.000000e+00> : vector<256xf32>
    %35 = vector.multi_reduction <add>, %34, %cst_19 [0] : vector<8x256xf32> to vector<256xf32>
    %36 = vector.shape_cast %35 : vector<256xf32> to vector<1x256xf32>
    %cst_20 = arith.constant 8.000000e+00 : f32
    %37 = vector.broadcast %cst_20 : f32 to vector<1x256xf32>
    %38 = arith.divf %36, %37 : vector<1x256xf32>
    %39 = vector.broadcast %38 : vector<1x256xf32> to vector<8x256xf32>
    %40 = arith.subf %34, %39 : vector<8x256xf32>
    %41 = vector.broadcast %38 : vector<1x256xf32> to vector<8x256xf32>
    %42 = arith.subf %34, %41 : vector<8x256xf32>
    %43 = arith.mulf %40, %42 : vector<8x256xf32>
    %cst_21 = arith.constant dense<0.000000e+00> : vector<256xf32>
    %44 = vector.multi_reduction <add>, %43, %cst_21 [0] : vector<8x256xf32> to vector<256xf32>
    %45 = vector.shape_cast %44 : vector<256xf32> to vector<1x256xf32>
    %cst_22 = arith.constant 8.000000e+00 : f32
    %46 = vector.broadcast %cst_22 : f32 to vector<1x256xf32>
    %47 = arith.divf %45, %46 : vector<1x256xf32>
    %48 = vector.broadcast %38 : vector<1x256xf32> to vector<8x256xf32>
    %49 = arith.subf %34, %48 : vector<8x256xf32>
    %cst_23 = arith.constant 9.99999974E-6 : f32
    %50 = vector.broadcast %cst_23 : f32 to vector<1x256xf32>
    %51 = arith.addf %47, %50 : vector<1x256xf32>
    %52 = math.rsqrt %51 : vector<1x256xf32>
    %53 = vector.broadcast %52 : vector<1x256xf32> to vector<8x256xf32>
    %54 = arith.mulf %49, %53 : vector<8x256xf32>
    %55 = vector.broadcast %4 : vector<8x1xf32> to vector<8x256xf32>
    %56 = arith.mulf %54, %55 : vector<8x256xf32>
    %c0_24 = arith.constant 0 : index
    %c0_25 = arith.constant 0 : index
    %c0_26 = arith.constant 0 : index
    %57 = vector.load %arg7[%c0_24, %c0_25, %c0_26] : memref<2x8x256xf32, #tpu.memory_space<vmem>>, vector<1x8x256xf32>
    %58 = vector.shape_cast %57 : vector<1x8x256xf32> to vector<8x256xf32>
    %59 = vector.shape_cast %56 : vector<8x256xf32> to vector<1x8x256xf32>
    tpu.vector_store %arg7[%c0_24, %c0_25, %c0_26], %59 {strides = array<i32>} : memref<2x8x256xf32, #tpu.memory_space<vmem>>, vector<1x8x256xf32>,
    %c1 = arith.constant 1 : index
    %c0_27 = arith.constant 0 : index
    %c0_28 = arith.constant 0 : index
    %60 = vector.load %arg1[%c1, %c0_27, %c0_28] : memref<2x8x256xf32, #tpu.memory_space<vmem>>, vector<1x8x256xf32>
    %61 = vector.shape_cast %60 : vector<1x8x256xf32> to vector<8x256xf32>
    %cst_29 = arith.constant dense<0.000000e+00> : vector<384x256xf32>
    %62 = tpu.matmul %0, %61, %cst_29 {dimension_numbers = #tpu.dot_dimension_numbers<[1], [0], [0], [1], [0, 0, 1, 1], [], []>} : vector<384x8xf32>, vector<8x256xf32>, vector<384x256xf32> -> vector<384x256xf32>
    %63 = vector.extract_strided_slice %62 {offsets = [0, 0], sizes = [128, 256], strides = [1, 1]} : vector<384x256xf32> to vector<128x256xf32>
    %64 = vector.extract_strided_slice %62 {offsets = [128, 0], sizes = [128, 256], strides = [1, 1]} : vector<384x256xf32> to vector<128x256xf32>
    %65 = vector.extract_strided_slice %62 {offsets = [256, 0], sizes = [128, 256], strides = [1, 1]} : vector<384x256xf32> to vector<128x256xf32>
    %cst_30 = arith.constant dense<0xFF800000> : vector<256xf32>
    %66 = vector.multi_reduction <maximumf>, %63, %cst_30 [0] : vector<128x256xf32> to vector<256xf32>
    %67 = vector.shape_cast %66 : vector<256xf32> to vector<1x256xf32>
    %68 = vector.broadcast %67 : vector<1x256xf32> to vector<128x256xf32>
    %69 = arith.subf %63, %68 : vector<128x256xf32>
    %70 = math.exp %69 : vector<128x256xf32>
    %cst_31 = arith.constant dense<0.000000e+00> : vector<128x256xf32>
    %71 = tpu.matmul %1, %70, %cst_31 {dimension_numbers = #tpu.dot_dimension_numbers<[1], [0], [0], [1], [0, 0, 1, 1], [], []>} : vector<128x128xf32>, vector<128x256xf32>, vector<128x256xf32> -> vector<128x256xf32>
    %72 = tpu.reciprocal %71 {approx = true} : vector<128x256xf32> -> vector<128x256xf32>
    %73 = arith.mulf %70, %72 : vector<128x256xf32>
    %cst_32 = arith.constant dense<0xFF800000> : vector<128xf32>
    %74 = vector.multi_reduction <maximumf>, %64, %cst_32 [1] : vector<128x256xf32> to vector<128xf32>
    %75 = vector.shape_cast %74 : vector<128xf32> to vector<128x1xf32>
    %76 = vector.broadcast %75 : vector<128x1xf32> to vector<128x256xf32>
    %77 = arith.subf %64, %76 : vector<128x256xf32>
    %78 = math.exp %77 : vector<128x256xf32>
    %cst_33 = arith.constant dense<0.000000e+00> : vector<128xf32>
    %79 = vector.multi_reduction <add>, %78, %cst_33 [1] : vector<128x256xf32> to vector<128xf32>
    %80 = vector.shape_cast %79 : vector<128xf32> to vector<128x1xf32>
    %81 = tpu.reciprocal %80 {approx = true} : vector<128x1xf32> -> vector<128x1xf32>
    %82 = vector.broadcast %81 : vector<128x1xf32> to vector<128x256xf32>
    %83 = arith.mulf %78, %82 : vector<128x256xf32>
    %cst_34 = arith.constant dense<0.000000e+00> : vector<128x128xf32>
    %84 = tpu.matmul %83, %65, %cst_34 {dimension_numbers = #tpu.dot_dimension_numbers<[1], [1], [0], [0], [0, 0, 1, 0], [], []>} : vector<128x256xf32>, vector<128x256xf32>, vector<128x128xf32> -> vector<128x128xf32>
    %85 = arith.mulf %84, %1 : vector<128x128xf32>
    %cst_35 = arith.constant dense<0.000000e+00> : vector<128x256xf32>
    %86 = tpu.matmul %85, %73, %cst_35 {dimension_numbers = #tpu.dot_dimension_numbers<[0], [0], [1], [1], [0, 1, 1, 1], [], []>} : vector<128x128xf32>, vector<128x256xf32>, vector<128x256xf32> -> vector<128x256xf32>
    %cst_36 = arith.constant dense<0.000000e+00> : vector<8x256xf32>
    %87 = tpu.matmul %2, %86, %cst_36 {dimension_numbers = #tpu.dot_dimension_numbers<[1], [0], [0], [1], [0, 0, 1, 1], [], []>} : vector<8x128xf32>, vector<128x256xf32>, vector<8x256xf32> -> vector<8x256xf32>
    %88 = vector.broadcast %3 : vector<8x1xf32> to vector<8x256xf32>
    %89 = arith.addf %87, %88 : vector<8x256xf32>
    %cst_37 = arith.constant dense<0.000000e+00> : vector<256xf32>
    %90 = vector.multi_reduction <add>, %89, %cst_37 [0] : vector<8x256xf32> to vector<256xf32>
    %91 = vector.shape_cast %90 : vector<256xf32> to vector<1x256xf32>
    %cst_38 = arith.constant 8.000000e+00 : f32
    %92 = vector.broadcast %cst_38 : f32 to vector<1x256xf32>
    %93 = arith.divf %91, %92 : vector<1x256xf32>
    %94 = vector.broadcast %93 : vector<1x256xf32> to vector<8x256xf32>
    %95 = arith.subf %89, %94 : vector<8x256xf32>
    %96 = vector.broadcast %93 : vector<1x256xf32> to vector<8x256xf32>
    %97 = arith.subf %89, %96 : vector<8x256xf32>
    %98 = arith.mulf %95, %97 : vector<8x256xf32>
    %cst_39 = arith.constant dense<0.000000e+00> : vector<256xf32>
    %99 = vector.multi_reduction <add>, %98, %cst_39 [0] : vector<8x256xf32> to vector<256xf32>
    %100 = vector.shape_cast %99 : vector<256xf32> to vector<1x256xf32>
    %cst_40 = arith.constant 8.000000e+00 : f32
    %101 = vector.broadcast %cst_40 : f32 to vector<1x256xf32>
    %102 = arith.divf %100, %101 : vector<1x256xf32>
    %103 = vector.broadcast %93 : vector<1x256xf32> to vector<8x256xf32>
    %104 = arith.subf %89, %103 : vector<8x256xf32>
    %cst_41 = arith.constant 9.99999974E-6 : f32
    %105 = vector.broadcast %cst_41 : f32 to vector<1x256xf32>
    %106 = arith.addf %102, %105 : vector<1x256xf32>
    %107 = math.rsqrt %106 : vector<1x256xf32>
    %108 = vector.broadcast %107 : vector<1x256xf32> to vector<8x256xf32>
    %109 = arith.mulf %104, %108 : vector<8x256xf32>
    %110 = vector.broadcast %4 : vector<8x1xf32> to vector<8x256xf32>
    %111 = arith.mulf %109, %110 : vector<8x256xf32>
    %c1_42 = arith.constant 1 : index
    %c0_43 = arith.constant 0 : index
    %c0_44 = arith.constant 0 : index
    %112 = vector.load %arg7[%c1_42, %c0_43, %c0_44] : memref<2x8x256xf32, #tpu.memory_space<vmem>>, vector<1x8x256xf32>
    %113 = vector.shape_cast %112 : vector<1x8x256xf32> to vector<8x256xf32>
    %114 = vector.shape_cast %111 : vector<8x256xf32> to vector<1x8x256xf32>
    tpu.vector_store %arg7[%c1_42, %c0_43, %c0_44], %114 {strides = array<i32>} : memref<2x8x256xf32, #tpu.memory_space<vmem>>, vector<1x8x256xf32>,
    return
  }
  func.func @transform_0(%arg0: i32) -> (i32, i32, i32) {
    %c0_i32 = arith.constant 0 : i32
    %c0_i32_0 = arith.constant 0 : i32
    %c0_i32_1 = arith.constant 0 : i32
    return %arg0, %c0_i32, %c0_i32_0 : i32, i32, i32
  }
  func.func @transform_1(%arg0: i32) -> (i32, i32) {
    %c0_i32 = arith.constant 0 : i32
    %c0_i32_0 = arith.constant 0 : i32
    %c0_i32_1 = arith.constant 0 : i32
    return %c0_i32, %c0_i32_0 : i32, i32
  }
  func.func @transform_2(%arg0: i32) -> (i32, i32) {
    %c0_i32 = arith.constant 0 : i32
    %c0_i32_0 = arith.constant 0 : i32
    %c0_i32_1 = arith.constant 0 : i32
    return %c0_i32, %c0_i32_0 : i32, i32
  }
  func.func @transform_3(%arg0: i32) -> (i32, i32) {
    %c0_i32 = arith.constant 0 : i32
    %c0_i32_0 = arith.constant 0 : i32
    %c0_i32_1 = arith.constant 0 : i32
    return %c0_i32, %c0_i32_0 : i32, i32
  }
  func.func @transform_4(%arg0: i32) -> (i32, i32) {
    %c0_i32 = arith.constant 0 : i32
    %c0_i32_0 = arith.constant 0 : i32
    %c0_i32_1 = arith.constant 0 : i32
    return %c0_i32, %c0_i32_0 : i32, i32
  }
  func.func @transform_5(%arg0: i32) -> (i32, i32) {
    %c0_i32 = arith.constant 0 : i32
    %c0_i32_0 = arith.constant 0 : i32
    %c0_i32_1 = arith.constant 0 : i32
    return %c0_i32, %c0_i32_0 : i32, i32
  }
  func.func @transform_6(%arg0: i32) -> (i32, i32, i32) {
    %c0_i32 = arith.constant 0 : i32
    %c0_i32_0 = arith.constant 0 : i32
    %c0_i32_1 = arith.constant 0 : i32
    return %arg0, %c0_i32, %c0_i32_0 : i32, i32, i32
  }
}

</mosaic_0001>

<bundles_post_ra>
// kernel: tpu_custom_call.1
= control target key start
LH: loop header
LB: loop body
LE: loop exit
PB: predicated region body
PF: predicated region fallthrough
CT: control target
= control target key end

     0   :  { %vm93_vm0 = vcmask 64512   ;;  %v6073_v3 = vmov 0.0   ;;  %s6066_s0 = inlined_call_operand.vmem [shape: f32[2,8,256], index: 0, kind: input, shape index: {}]   ;;  %s6067_s1 = inlined_call_operand.vmem [shape: f32[384,8], index: 1, kind: input, shape index: {}]   ;;  %s6068_s2 = inlined_call_operand.vmem [shape: f32[128,128], index: 2, kind: input, shape index: {}]   ;;  %s6069_s3 = inlined_call_operand.vmem [shape: f32[8,128], index: 3, kind: input, shape index: {}]   ;;  %s6070_s4 = inlined_call_operand.vmem [shape: f32[8,1], index: 4, kind: input, shape index: {}]   ;;  %s6071_s5 = inlined_call_operand.vmem [shape: f32[8,1], index: 5, kind: input, shape index: {}]   ;;  %s6072_s6 = inlined_call_operand.hbm [shape: f32[2,8,256], index: 6, kind: output, shape index: {}]  }
   0x1   :  { %v92_v0 = vld [vmem:[%s6066_s0 + $0x8] sm:$0xff]  ;;  %v91_v1 = vld [vmem:[%s6066_s0] sm:$0xff]  ;;  %302 = vmatprep.mubr.f32.mxu0 %v6073_v3  ;;  %793 = vmatprep.mubr.f32.mxu1 %v6073_v3  ;;  %v26_v5 = vld [vmem:[%s6067_s1 + $0x10] sm:$0xff] }
   0x2   :  { %v24_v2 = vld [vmem:[%s6067_s1] sm:$0xff]  ;;  %238 = vmatprep.subr.mxu0 %v92_v0  ;;  %v25_v4 = vld [vmem:[%s6067_s1 + $0x8] sm:$0xff] }
   0x3   :  { %239 = vmatpush1.msra.mxu0 %v91_v1 }
   0x4   :  { %3115 = vmatmul.mubr.msk.f32.vlgmr.msra.gmra.mrb[0].mxu0 %vm93_vm0, %v24_v2 }
   0x5   :  { %308 = vmatprep.mubr.f32.mxu0 %v6073_v3 }
   0x8   :  { %3116 = vmatmul.mubr.msk.f32.gmra.mrb[2].mxu0 %vm93_vm0, %v25_v4 }
   0x9   :  { %314 = vmatprep.mubr.f32.mxu0 %v6073_v3 }
   0xc   :  { %3117 = vmatmul.mubr.msk.f32.gmra.mrb[4].mxu0 %vm93_vm0, %v26_v5 }
   0xd   :  { %11 = vsyncpa [#allocation3], 0  ;;  %320 = vmatprep.mubr.f32.mxu0 %v6073_v3  ;;  %v27_v6 = vld [vmem:[%s6067_s1 + $0x18] sm:$0xff]  ;;  %v28_v7 = vld [vmem:[%s6067_s1 + $0x20] sm:$0xff] }
   0xe   :  { %v29_v8 = vld [vmem:[%s6067_s1 + $0x28] sm:$0xff]  ;;  %v30_v9 = vld [vmem:[%s6067_s1 + $0x30] sm:$0xff]  ;;  %v31_v10 = vld [vmem:[%s6067_s1 + $0x38] sm:$0xff] }
   0xf   :  { %v32_v11 = vld [vmem:[%s6067_s1 + $0x40] sm:$0xff]  ;;  %v33_v12 = vld [vmem:[%s6067_s1 + $0x48] sm:$0xff]  ;;  %v34_v13 = vld [vmem:[%s6067_s1 + $0x50] sm:$0xff] }
  0x10   :  { %3118 = vmatmul.mubr.msk.f32.gmra.mrb[6].mxu0 %vm93_vm0, %v27_v6  ;;  %v35_v14 = vld [vmem:[%s6067_s1 + $0x58] sm:$0xff]  ;;  %v36_v15 = vld [vmem:[%s6067_s1 + $0x60] sm:$0xff]  ;;  %v37_v16 = vld [vmem:[%s6067_s1 + $0x68] sm:$0xff] }
  0x11   :  { %326 = vmatprep.mubr.f32.mxu0 %v6073_v3  ;;  %v38_v17 = vld [vmem:[%s6067_s1 + $0x70] sm:$0xff]  ;;  %v39_v18 = vld [vmem:[%s6067_s1 + $0x78] sm:$0xff]  ;;  %v40_v19 = vld [vmem:[%s6067_s1 + $0x80] sm:$0xff] }
  0x12   :  { %v41_v20 = vld [vmem:[%s6067_s1 + $0x88] sm:$0xff]  ;;  %v42_v21 = vld [vmem:[%s6067_s1 + $0x90] sm:$0xff]  ;;  %v43_v22 = vld [vmem:[%s6067_s1 + $0x98] sm:$0xff] }
  0x13   :  { %v44_v23 = vld [vmem:[%s6067_s1 + $0xa0] sm:$0xff]  ;;  %v45_v24 = vld [vmem:[%s6067_s1 + $0xa8] sm:$0xff]  ;;  %v46_v25 = vld [vmem:[%s6067_s1 + $0xb0] sm:$0xff] }
  0x14   :  { %3119 = vmatmul.mubr.msk.f32.gmra.mrb[8].mxu0 %vm93_vm0, %v28_v7  ;;  %v47_v26 = vld [vmem:[%s6067_s1 + $0xb8] sm:$0xff]  ;;  %v48_v27 = vld [vmem:[%s6067_s1 + $0xc0] sm:$0xff]  ;;  %v49_v28 = vld [vmem:[%s6067_s1 + $0xc8] sm:$0xff] }
  0x15   :  { %332 = vmatprep.mubr.f32.mxu0 %v6073_v3  ;;  %v50_v29 = vld [vmem:[%s6067_s1 + $0xd0] sm:$0xff]  ;;  %v51_v30 = vld [vmem:[%s6067_s1 + $0xd8] sm:$0xff]  ;;  %v52_v31 = vld [vmem:[%s6067_s1 + $0xe0] sm:$0xff] }
  0x16   :  { %v53_v32 = vld [vmem:[%s6067_s1 + $0xe8] sm:$0xff]  ;;  %v54_v33 = vld [vmem:[%s6067_s1 + $0xf0] sm:$0xff]  ;;  %v55_v34 = vld [vmem:[%s6067_s1 + $0xf8] sm:$0xff] }
  0x17   :  { %v56_v35 = vld [vmem:[%s6067_s1 + $0x100] sm:$0xff]  ;;  %v57_v36 = vld [vmem:[%s6067_s1 + $0x108] sm:$0xff]  ;;  %v58_v37 = vld [vmem:[%s6067_s1 + $0x110] sm:$0xff] }
  0x18   :  { %3120 = vmatmul.mubr.msk.f32.gmra.mrb[10].mxu0 %vm93_vm0, %v29_v8  ;;  %v59_v38 = vld [vmem:[%s6067_s1 + $0x118] sm:$0xff]  ;;  %v60_v39 = vld [vmem:[%s6067_s1 + $0x120] sm:$0xff]  ;;  %v61_v40 = vld [vmem:[%s6067_s1 + $0x128] sm:$0xff] }
  0x19   :  { %338 = vmatprep.mubr.f32.mxu0 %v6073_v3  ;;  %v62_v41 = vld [vmem:[%s6067_s1 + $0x130] sm:$0xff]  ;;  %v63_v42 = vld [vmem:[%s6067_s1 + $0x138] sm:$0xff]  ;;  %v64_v43 = vld [vmem:[%s6067_s1 + $0x140] sm:$0xff] }
  0x1a   :  { %v65_v44 = vld [vmem:[%s6067_s1 + $0x148] sm:$0xff]  ;;  %v66_v45 = vld [vmem:[%s6067_s1 + $0x150] sm:$0xff]  ;;  %v67_v46 = vld [vmem:[%s6067_s1 + $0x158] sm:$0xff] }
  0x1b   :  { %v68_v49 = vld [vmem:[%s6067_s1 + $0x160] sm:$0xff]  ;;  %v69_v52 = vld [vmem:[%s6067_s1 + $0x168] sm:$0xff]  ;;  %v70_v57 = vld [vmem:[%s6067_s1 + $0x170] sm:$0xff] }
  0x1c   :  { %3121 = vmatmul.mubr.msk.f32.gmra.mrb[12].mxu0 %vm93_vm0, %v30_v9  ;;  %v71_v62 = vld [vmem:[%s6067_s1 + $0x178] sm:$0xff] }
  0x1d   :  { %344 = vmatprep.mubr.f32.mxu0 %v6073_v3 }
  0x20   :  { %3122 = vmatmul.mubr.msk.f32.gmra.mrb[14].mxu0 %vm93_vm0, %v31_v10 }
  0x21   :  { %350 = vmatprep.mubr.f32.mxu0 %v6073_v3 }
  0x24   :  { %3123 = vmatmul.mubr.msk.f32.gmra.mrb[16].mxu0 %vm93_vm0, %v32_v11 }
  0x25   :  { %356 = vmatprep.mubr.f32.mxu0 %v6073_v3 }
  0x28   :  { %3124 = vmatmul.mubr.msk.f32.gmra.mrb[18].mxu0 %vm93_vm0, %v33_v12 }
  0x29   :  { %362 = vmatprep.mubr.f32.mxu0 %v6073_v3 }
  0x2c   :  { %3125 = vmatmul.mubr.msk.f32.gmra.mrb[20].mxu0 %vm93_vm0, %v34_v13 }
  0x2d   :  { %368 = vmatprep.mubr.f32.mxu0 %v6073_v3 }
  0x30   :  { %3126 = vmatmul.mubr.msk.f32.gmra.mrb[22].mxu0 %vm93_vm0, %v35_v14 }
  0x31   :  { %374 = vmatprep.mubr.f32.mxu0 %v6073_v3 }
  0x34   :  { %3127 = vmatmul.mubr.msk.f32.gmra.mrb[24].mxu0 %vm93_vm0, %v36_v15 }
  0x35   :  { %380 = vmatprep.mubr.f32.mxu0 %v6073_v3 }
  0x38   :  { %3128 = vmatmul.mubr.msk.f32.gmra.mrb[26].mxu0 %vm93_vm0, %v37_v16 }
  0x39   :  { %386 = vmatprep.mubr.f32.mxu0 %v6073_v3 }
  0x3c   :  { %3129 = vmatmul.mubr.msk.f32.gmra.mrb[28].mxu0 %vm93_vm0, %v38_v17 }
  0x3d   :  { %392 = vmatprep.mubr.f32.mxu0 %v6073_v3 }
  0x40   :  { %3130 = vmatmul.mubr.msk.f32.gmra.mrb[30].mxu0 %vm93_vm0, %v39_v18 }
  0x41   :  { %398 = vmatprep.mubr.f32.mxu0 %v6073_v3 }
  0x44   :  { %3131 = vmatmul.mubr.msk.f32.gmra.mrb[32].mxu0 %vm93_vm0, %v40_v19 }
  0x45   :  { %404 = vmatprep.mubr.f32.mxu0 %v6073_v3 }
  0x48   :  { %3132 = vmatmul.mubr.msk.f32.gmra.mrb[34].mxu0 %vm93_vm0, %v41_v20 }
  0x49   :  { %410 = vmatprep.mubr.f32.mxu0 %v6073_v3 }
  0x4c   :  { %3133 = vmatmul.mubr.msk.f32.gmra.mrb[36].mxu0 %vm93_vm0, %v42_v21 }
  0x4d   :  { %416 = vmatprep.mubr.f32.mxu0 %v6073_v3 }
  0x50   :  { %3134 = vmatmul.mubr.msk.f32.gmra.mrb[38].mxu0 %vm93_vm0, %v43_v22 }
  0x51   :  { %422 = vmatprep.mubr.f32.mxu0 %v6073_v3 }
  0x54   :  { %3135 = vmatmul.mubr.msk.f32.gmra.mrb[40].mxu0 %vm93_vm0, %v44_v23 }
  0x55   :  { %428 = vmatprep.mubr.f32.mxu0 %v6073_v3 }
  0x58   :  { %3136 = vmatmul.mubr.msk.f32.gmra.mrb[42].mxu0 %vm93_vm0, %v45_v24 }
  0x59   :  { %434 = vmatprep.mubr.f32.mxu0 %v6073_v3 }
  0x5c   :  { %3137 = vmatmul.mubr.msk.f32.gmra.mrb[44].mxu0 %vm93_vm0, %v46_v25 }
  0x5d   :  { %440 = vmatprep.mubr.f32.mxu0 %v6073_v3 }
  0x60   :  { %3138 = vmatmul.mubr.msk.f32.gmra.mrb[46].mxu0 %vm93_vm0, %v47_v26 }
  0x61   :  { %446 = vmatprep.mubr.f32.mxu0 %v6073_v3 }
  0x64   :  { %3139 = vmatmul.mubr.msk.f32.gmra.mrb[48].mxu0 %vm93_vm0, %v48_v27 }
  0x65   :  { %452 = vmatprep.mubr.f32.mxu0 %v6073_v3 }
  0x68   :  { %3140 = vmatmul.mubr.msk.f32.gmra.mrb[50].mxu0 %vm93_vm0, %v49_v28 }
  0x69   :  { %458 = vmatprep.mubr.f32.mxu0 %v6073_v3 }
  0x6c   :  { %3141 = vmatmul.mubr.msk.f32.gmra.mrb[52].mxu0 %vm93_vm0, %v50_v29 }
  0x6d   :  { %464 = vmatprep.mubr.f32.mxu0 %v6073_v3 }
  0x70   :  { %3142 = vmatmul.mubr.msk.f32.gmra.mrb[54].mxu0 %vm93_vm0, %v51_v30 }
  0x71   :  { %470 = vmatprep.mubr.f32.mxu0 %v6073_v3 }
  0x74   :  { %3143 = vmatmul.mubr.msk.f32.gmra.mrb[56].mxu0 %vm93_vm0, %v52_v31 }
  0x75   :  { %476 = vmatprep.mubr.f32.mxu0 %v6073_v3 }
  0x78   :  { %3144 = vmatmul.mubr.msk.f32.gmra.mrb[58].mxu0 %vm93_vm0, %v53_v32 }
  0x79   :  { %482 = vmatprep.mubr.f32.mxu0 %v6073_v3 }
  0x7c   :  { %3145 = vmatmul.mubr.msk.f32.gmra.mrb[60].mxu0 %vm93_vm0, %v54_v33 }
  0x7d   :  { %488 = vmatprep.mubr.f32.mxu0 %v6073_v3 }
  0x80   :  { %3146 = vmatmul.mubr.msk.f32.gmra.mrb[62].mxu0 %vm93_vm0, %v55_v34 }
  0x81   :  { %494 = vmatprep.mubr.f32.mxu0 %v6073_v3 }
  0x84   :  { %3147 = vmatmul.mubr.msk.f32.gmra.mrb[64].mxu0 %vm93_vm0, %v56_v35 }
  0x85   :  { %500 = vmatprep.mubr.f32.mxu0 %v6073_v3 }
  0x88   :  { %3148 = vmatmul.mubr.msk.f32.gmra.mrb[66].mxu0 %vm93_vm0, %v57_v36 }
  0x89   :  { %506 = vmatprep.mubr.f32.mxu0 %v6073_v3 }
  0x8c   :  { %3149 = vmatmul.mubr.msk.f32.gmra.mrb[68].mxu0 %vm93_vm0, %v58_v37 }
  0x8d   :  { %512 = vmatprep.mubr.f32.mxu0 %v6073_v3 }
  0x90   :  { %3150 = vmatmul.mubr.msk.f32.gmra.mrb[70].mxu0 %vm93_vm0, %v59_v38 }
  0x91   :  { %518 = vmatprep.mubr.f32.mxu0 %v6073_v3 }
  0x94   :  { %3151 = vmatmul.mubr.msk.f32.gmra.mrb[72].mxu0 %vm93_vm0, %v60_v39 }
  0x95   :  { %524 = vmatprep.mubr.f32.mxu0 %v6073_v3 }
  0x98   :  { %3152 = vmatmul.mubr.msk.f32.gmra.mrb[74].mxu0 %vm93_vm0, %v61_v40 }
  0x99   :  { %530 = vmatprep.mubr.f32.mxu0 %v6073_v3 }
  0x9c   :  { %3153 = vmatmul.mubr.msk.f32.gmra.mrb[76].mxu0 %vm93_vm0, %v62_v41 }
  0x9d   :  { %536 = vmatprep.mubr.f32.mxu0 %v6073_v3 }
  0xa0   :  { %3154 = vmatmul.mubr.msk.f32.gmra.mrb[78].mxu0 %vm93_vm0, %v63_v42 }
  0xa1   :  { %542 = vmatprep.mubr.f32.mxu0 %v6073_v3 }
  0xa4   :  { %3155 = vmatmul.mubr.msk.f32.gmra.mrb[80].mxu0 %vm93_vm0, %v64_v43 }
  0xa5   :  { %548 = vmatprep.mubr.f32.mxu0 %v6073_v3 }
  0xa8   :  { %3156 = vmatmul.mubr.msk.f32.gmra.mrb[82].mxu0 %vm93_vm0, %v65_v44 }
  0xa9   :  { %554 = vmatprep.mubr.f32.mxu0 %v6073_v3 }
  0xac   :  { %3157 = vmatmul.mubr.msk.f32.gmra.mrb[84].mxu0 %vm93_vm0, %v66_v45 }
  0xad   :  { %560 = vmatprep.mubr.f32.mxu0 %v6073_v3 }
  0xb0   :  { %3158 = vmatmul.mubr.msk.f32.gmra.mrb[86].mxu0 %vm93_vm0, %v67_v46 }
  0xb1   :  { %566 = vmatprep.mubr.f32.mxu0 %v6073_v3 }
  0xb4   :  { %3159 = vmatmul.mubr.msk.f32.gmra.mrb[88].mxu0 %vm93_vm0, %v68_v49 }
  0xb5   :  { %572 = vmatprep.mubr.f32.mxu0 %v6073_v3 }
  0xb8   :  { %3160 = vmatmul.mubr.msk.f32.gmra.mrb[90].mxu0 %vm93_vm0, %v69_v52 }
  0xb9   :  { %578 = vmatprep.mubr.f32.mxu0 %v6073_v3 }
  0xbc   :  { %3161 = vmatmul.mubr.msk.f32.gmra.mrb[92].mxu0 %vm93_vm0, %v70_v57 }
  0xbd   :  { %584 = vmatprep.mubr.f32.mxu0 %v6073_v3 }
  0xc0   :  { %3162 = vmatmul.mubr.msk.f32.gmra.mrb[94].mxu0 %vm93_vm0, %v71_v62 }
  0xc1   :  { %1617 = vmatprep.mubr.f32.mxu0 %v6073_v3 }
  0xd7   :  { %v4318_v47 = vpop.f32.mrb[0].mxu0 }
  0xd8   :  { %v4320_v48 = vpop.f32.mrb[1].mxu0 }
  0xdb   :  { %v4327_v50 = vpop.f32.mrb[2].mxu0 }
  0xdc   :  { %v4329_v51 = vpop.f32.mrb[3].mxu0 }
  0xdf   :  { %v4336_v53 = vpop.f32.mrb[4].mxu0 }
  0xe0   :  { %v591_v54 = vmax.f32 %v4318_v47, %v4336_v53  ;;  %v4340_v55 = vpop.f32.mrb[5].mxu0 }
  0xe1   :  { %v612_v56 = vmax.f32 %v4320_v48, %v4340_v55 }
  0xe3   :  { %v4349_v58 = vpop.f32.mrb[6].mxu0 }
  0xe4   :  { %v592_v59 = vmax.f32 %v4327_v50, %v4349_v58  ;;  %v4353_v60 = vpop.f32.mrb[7].mxu0 }
  0xe5   :  { %v613_v61 = vmax.f32 %v4329_v51, %v4353_v60 }
  0xe7   :  { %v4362_v63 = vpop.f32.mrb[8].mxu0 }
  0xe8   :  { %v593_v0 = vmax.f32 %v591_v54, %v4362_v63  ;;  %v4365_v1 = vpop.f32.mrb[9].mxu0 }
  0xe9   :  { %v614_v2 = vmax.f32 %v612_v56, %v4365_v1 }
  0xeb   :  { %v4370_v4 = vpop.f32.mrb[10].mxu0 }
  0xec   :  { %v594_v5 = vmax.f32 %v592_v59, %v4370_v4  ;;  %v4373_v6 = vpop.f32.mrb[11].mxu0 }
  0xed   :  { %v615_v7 = vmax.f32 %v613_v61, %v4373_v6 }
  0xef   :  { %v4376_v8 = vpop.f32.mrb[12].mxu0 }
  0xf0   :  { %v595_v9 = vmax.f32 %v593_v0, %v4376_v8  ;;  %v4379_v10 = vpop.f32.mrb[13].mxu0 }
  0xf1   :  { %v616_v11 = vmax.f32 %v614_v2, %v4379_v10 }
  0xf3   :  { %v4382_v12 = vpop.f32.mrb[14].mxu0 }
  0xf4   :  { %v596_v13 = vmax.f32 %v594_v5, %v4382_v12  ;;  %v4385_v14 = vpop.f32.mrb[15].mxu0 }
  0xf5   :  { %v617_v15 = vmax.f32 %v615_v7, %v4385_v14 }
  0xf7   :  { %v4388_v16 = vpop.f32.mrb[16].mxu0 }
  0xf8   :  { %v597_v17 = vmax.f32 %v595_v9, %v4388_v16  ;;  %v4391_v18 = vpop.f32.mrb[17].mxu0 }
  0xf9   :  { %v618_v19 = vmax.f32 %v616_v11, %v4391_v18 }
  0xfb   :  { %v4394_v20 = vpop.f32.mrb[18].mxu0 }
  0xfc   :  { %v598_v21 = vmax.f32 %v596_v13, %v4394_v20  ;;  %v4397_v22 = vpop.f32.mrb[19].mxu0 }
  0xfd   :  { %v619_v23 = vmax.f32 %v617_v15, %v4397_v22 }
  0xff   :  { %v4400_v24 = vpop.f32.mrb[20].mxu0 }
 0x100   :  { %v599_v25 = vmax.f32 %v597_v17, %v4400_v24  ;;  %v4403_v26 = vpop.f32.mrb[21].mxu0 }
 0x101   :  { %v620_v27 = vmax.f32 %v618_v19, %v4403_v26 }
 0x103   :  { %v4406_v28 = vpop.f32.mrb[22].mxu0 }
 0x104   :  { %v600_v29 = vmax.f32 %v598_v21, %v4406_v28  ;;  %v4409_v30 = vpop.f32.mrb[23].mxu0 }
 0x105   :  { %v621_v31 = vmax.f32 %v619_v23, %v4409_v30 }
 0x107   :  { %v4412_v32 = vpop.f32.mrb[24].mxu0 }
 0x108   :  { %v601_v33 = vmax.f32 %v599_v25, %v4412_v32  ;;  %v4415_v34 = vpop.f32.mrb[25].mxu0 }
 0x109   :  { %v622_v35 = vmax.f32 %v620_v27, %v4415_v34 }
 0x10b   :  { %v4418_v36 = vpop.f32.mrb[26].mxu0 }
 0x10c   :  { %v602_v37 = vmax.f32 %v600_v29, %v4418_v36  ;;  %v4421_v38 = vpop.f32.mrb[27].mxu0 }
 0x10d   :  { %v623_v39 = vmax.f32 %v621_v31, %v4421_v38 }
 0x10f   :  { %v4424_v40 = vpop.f32.mrb[28].mxu0 }
 0x110   :  { %v603_v41 = vmax.f32 %v601_v33, %v4424_v40  ;;  %v4427_v42 = vpop.f32.mrb[29].mxu0 }
 0x111   :  { %v624_v43 = vmax.f32 %v622_v35, %v4427_v42 }
 0x113   :  { %v394_v44 = vpop.f32.mrb[30].mxu0 }
 0x114   :  { %v604_v45 = vmax.f32 %v602_v37, %v394_v44  ;;  %v396_v46 = vpop.f32.mrb[31].mxu0 }
 0x115   :  { %v625_v49 = vmax.f32 %v623_v39, %v396_v46 }
 0x116   :  { %v605_v52 = vmax.f32 %v603_v41, %v604_v45 }
 0x117   :  { %v626_v54 = vmax.f32 %v624_v43, %v625_v49  ;;  %v4430_v56 = vpop.f32.mrb[32].mxu0 }
 0x118   :  { %v606_v57 = vrot.slane %v605_v52, 4  ;;  %v4432_v59 = vpop.f32.mrb[33].mxu0 }
 0x119   :  { %v627_v61 = vrot.slane %v626_v54, 4  ;;  %v954_v62 = vmax.f32 %v4430_v56, %v4432_v59 }
 0x11a   :  { %v607_v0 = vmax.f32 %v605_v52, %v606_v57 }
 0x11b   :  { %v628_v2 = vmax.f32 %v626_v54, %v627_v61  ;;  %955 = vmax.xlane.f32.xlu0 %v954_v62  ;;  %v4436_v5 = vpop.f32.mrb[34].mxu0 }
 0x11c   :  { %v608_v7 = vrot.slane %v607_v0, 2  ;;  %v4438_v9 = vpop.f32.mrb[35].mxu0 }
 0x11d   :  { %v629_v11 = vrot.slane %v628_v2, 2  ;;  %v957_v13 = vmax.f32 %v4436_v5, %v4438_v9 }
 0x11e   :  { %v609_v15 = vmax.f32 %v607_v0, %v608_v7 }
 0x11f   :  { %v630_v17 = vmax.f32 %v628_v2, %v629_v11  ;;  %958 = vmax.xlane.f32.xlu0 %v957_v13  ;;  %v4442_v19 = vpop.f32.mrb[36].mxu0 }
 0x120   :  { %v610_v21 = vrot.slane %v609_v15, 1  ;;  %v4444_v23 = vpop.f32.mrb[37].mxu0 }
 0x121   :  { %v631_v25 = vrot.slane %v630_v17, 1  ;;  %v960_v27 = vmax.f32 %v4442_v19, %v4444_v23 }
 0x122   :  { %v4448_v29 = vmax.f32 %v609_v15, %v610_v21 }
 0x123   :  { %v4450_v31 = vmax.f32 %v630_v17, %v631_v25  ;;  %961 = vmax.xlane.f32.xlu1 %v960_v27  ;;  %v4452_v33 = vpop.f32.mrb[38].mxu0 }
 0x124   :  { %v663_v35 = vsub.f32 %v394_v44, %v4448_v29  ;;  %v4455_v37 = vpop.f32.mrb[39].mxu0  ;;  %v633_v39 = vsub.f32 %v4318_v47, %v4448_v29  ;;  %v635_v41 = vsub.f32 %v4327_v50, %v4448_v29  ;;  %v637_v43 = vsub.f32 %v4336_v53, %v4448_v29 }
 0x125   :  { %v664_v45 = vsub.f32 %v396_v46, %v4450_v31  ;;  %v963_v49 = vmax.f32 %v4452_v33, %v4455_v37  ;;  %v634_v52 = vsub.f32 %v4320_v48, %v4450_v31  ;;  %v636_v44 = vsub.f32 %v4329_v51, %v4450_v31 }
 0x126   :  { %v725_v54 = vmul.f32 1.442695, %v663_v35  ;;  %v638_v47 = vsub.f32 %v4340_v55, %v4450_v31  ;;  %v640_v46 = vsub.f32 %v4353_v60, %v4450_v31  ;;  %v639_v61 = vsub.f32 %v4349_v58, %v4448_v29 }
 0x127   :  { %v727_v57 = vmul.f32 1.442695, %v664_v45  ;;  %964 = vmax.xlane.f32.xlu1 %v963_v49  ;;  %v4472_v50 = vpop.f32.mrb[40].mxu0  ;;  %v667_v53 = vmul.f32 1.442695, %v634_v52  ;;  %v642_v0 = vsub.f32 %v4365_v1, %v4450_v31  ;;  %v644_v60 = vsub.f32 %v4373_v6, %v4450_v31 }
 0x128   :  { %3475 = vpow2.f32 %v725_v54  ;;  %v4478_v48 = vpop.f32.mrb[41].mxu0  ;;  %v671_v62 = vmul.f32 1.442695, %v636_v44  ;;  %v665_v51 = vmul.f32 1.442695, %v633_v39  ;;  %v641_v13 = vsub.f32 %v4362_v63, %v4448_v29 }
 0x129   :  { %3477 = vpow2.f32 %v727_v57  ;;  %v966_v55 = vmax.f32 %v4472_v50, %v4478_v48  ;;  %v669_v2 = vmul.f32 1.442695, %v635_v41  ;;  %v675_v7 = vmul.f32 1.442695, %v638_v47 }
 0x12a   :  { %3479 = vpow2.f32 %v667_v53  ;;  %v679_v11 = vmul.f32 1.442695, %v640_v46  ;;  %v643_v1 = vsub.f32 %v4370_v4, %v4448_v29  ;;  %v646_v15 = vsub.f32 %v4379_v10, %v4450_v31 }
 0x12b   :  { %967 = vmax.xlane.f32.xlu0 %v966_v55  ;;  %v4486_v58 = vpop.f32.mrb[42].mxu0  ;;  %3481 = vpow2.f32 %v671_v62  ;;  %v673_v21 = vmul.f32 1.442695, %v637_v43  ;;  %v648_v6 = vsub.f32 %v4385_v14, %v4450_v31  ;;  %v645_v25 = vsub.f32 %v4376_v8, %v4448_v29 }
 0x12c   :  { %v4494_v17 = vpop.f32.mrb[43].mxu0  ;;  %3483 = vpow2.f32 %v665_v51  ;;  %v677_v63 = vmul.f32 1.442695, %v639_v61  ;;  %v683_v4 = vmul.f32 1.442695, %v642_v0  ;;  %v647_v10 = vsub.f32 %v4382_v12, %v4448_v29 }
 0x12d   :  { %v969_v27 = vmax.f32 %v4486_v58, %v4494_v17  ;;  %3485 = vpow2.f32 %v669_v2  ;;  %v687_v39 = vmul.f32 1.442695, %v644_v60  ;;  %v650_v14 = vsub.f32 %v4391_v18, %v4450_v31 }
 0x12e   :  { %3487 = vpow2.f32 %v675_v7  ;;  %v652_v8 = vsub.f32 %v4397_v22, %v4450_v31  ;;  %v681_v43 = vmul.f32 1.442695, %v641_v13  ;;  %v649_v45 = vsub.f32 %v4388_v16, %v4448_v29 }
 0x12f   :  { %970 = vmax.xlane.f32.xlu1 %v969_v27  ;;  %v4504_v35 = vpop.f32.mrb[44].mxu0  ;;  %3489 = vpow2.f32 %v679_v11  ;;  %v651_v12 = vsub.f32 %v4394_v20, %v4448_v29  ;;  %v685_v52 = vmul.f32 1.442695, %v643_v1  ;;  %v691_v18 = vmul.f32 1.442695, %v646_v15 }
 0x130   :  { %v4510_v41 = vpop.f32.mrb[45].mxu0  ;;  %3491 = vpow2.f32 %v673_v21  ;;  %v695_v22 = vmul.f32 1.442695, %v648_v6  ;;  %v654_v54 = vsub.f32 %v4403_v26, %v4450_v31  ;;  %v656_v20 = vsub.f32 %v4409_v30, %v4450_v31 }
 0x131   :  { %v972_v49 = vmax.f32 %v4504_v35, %v4510_v41  ;;  %3493 = vpow2.f32 %v677_v63  ;;  %v653_v57 = vsub.f32 %v4400_v24, %v4448_v29  ;;  %v655_v53 = vsub.f32 %v4406_v28, %v4448_v29 }
 0x132   :  { %v4518_v44 = vpop.eup %3475  ;;  %3495 = vpow2.f32 %v683_v4  ;;  %v689_v26 = vmul.f32 1.442695, %v645_v25  ;;  %v658_v62 = vsub.f32 %v4415_v34, %v4450_v31  ;;  %v660_v51 = vsub.f32 %v4421_v38, %v4450_v31 }
 0x133   :  { %6112 = vst [vmem:[#allocation5_spill] sm:$0xff] %v4518_v44  ;;  %v4522_v47 = vpop.eup %3477  ;;  %973 = vmax.xlane.f32.xlu0 %v972_v49  ;;  %v4524_v16 = vpop.f32.mrb[46].mxu0  ;;  %3497 = vpow2.f32 %v687_v39  ;;  %v693_v30 = vmul.f32 1.442695, %v647_v10  ;;  %v699_v2 = vmul.f32 1.442695, %v650_v14  ;;  %v657_v60 = vsub.f32 %v4412_v32, %v4448_v29 }
 0x134   :  { %6113 = vst [vmem:[#allocation6_spill] sm:$0xff] %v4522_v47  ;;  %v4532_v46 = vpop.eup %3479  ;;  %v4534_v61 = vpop.f32.mrb[47].mxu0  ;;  %3499 = vpow2.f32 %v681_v43  ;;  %v703_v7 = vmul.f32 1.442695, %v652_v8  ;;  %v697_v38 = vmul.f32 1.442695, %v649_v45  ;;  %v659_v13 = vsub.f32 %v4418_v36, %v4448_v29 }
 0x135   :  { %v4540_v0 = vpop.eup %3481  ;;  %v975_v24 = vmax.f32 %v4524_v16, %v4534_v61  ;;  %3501 = vpow2.f32 %v685_v52  ;;  %v662_v6 = vsub.f32 %v4427_v42, %v4450_v31  ;;  %v661_v25 = vsub.f32 %v4424_v40, %v4448_v29 }
 0x136   :  { %v4544_v28 = vpop.eup %3483  ;;  %v3213_v55 = vpack.c.bf16 %v4540_v0, %v4532_v46  ;;  %3503 = vpow2.f32 %v691_v18  ;;  %v701_v36 = vmul.f32 1.442695, %v651_v12  ;;  %v707_v10 = vmul.f32 1.442695, %v654_v54 }
 0x137   :  { %v4548_v11 = vpop.eup %3485  ;;  %976 = vmax.xlane.f32.xlu1 %v975_v24  ;;  %v4550_v34 = vpop.f32.mrb[48].mxu0  ;;  %3505 = vpow2.f32 %v695_v22  ;;  %v711_v40 = vmul.f32 1.442695, %v656_v20  ;;  %v705_v8 = vmul.f32 1.442695, %v653_v57 }
 0x138   :  { %v4556_v1 = vpop.eup %3487  ;;  %3214 = vmatprep.subr.bf16.mxu1 %v3213_v55  ;;  %v3215_v15 = vpack.c.bf16 %v4548_v11, %v4544_v28  ;;  %v4560_v21 = vpop.f32.mrb[49].mxu0  ;;  %3507 = vpow2.f32 %v689_v26  ;;  %v709_v12 = vmul.f32 1.442695, %v655_v53  ;;  %v715_v18 = vmul.f32 1.442695, %v658_v62 }
 0x139   :  { %v4566_v27 = vpop.eup %3489  ;;  %v978_v32 = vmax.f32 %v4550_v34, %v4560_v21  ;;  %3509 = vpow2.f32 %v693_v30  ;;  %v719_v20 = vmul.f32 1.442695, %v660_v51  ;;  %v713_v24 = vmul.f32 1.442695, %v657_v60 }
 0x13a   :  { %v4570_v63 = vpop.eup %3491  ;;  %3216 = vmatpush1.bf16.msra.mxu1 %v3215_v15  ;;  %v3217_v4 = vpack.c.bf16 %v4566_v27, %v4556_v1  ;;  %3511 = vpow2.f32 %v699_v2  ;;  %v717_v55 = vmul.f32 1.442695, %v659_v13  ;;  %v721_v60 = vmul.f32 1.442695, %v661_v25 }
 0x13b   :  { %v4574_v39 = vpop.eup %3493  ;;  %979 = vmax.xlane.f32.xlu0 %v978_v32  ;;  %v4576_v42 = vpop.f32.mrb[50].mxu0  ;;  %3513 = vpow2.f32 %v703_v7  ;;  %v723_v7 = vmul.f32 1.442695, %v662_v6 }
 0x13c   :  { %v4578_v29 = vpop.eup %3495  ;;  %3218 = vmatprep.subr.bf16.mxu1 %v3217_v4  ;;  %v3219_v31 = vpack.c.bf16 %v4574_v39, %v4570_v63  ;;  %v4582_v14 = vpop.f32.mrb[51].mxu0  ;;  %3515 = vpow2.f32 %v697_v38 }
 0x13d   :  { %v4584_v43 = vpop.eup %3497  ;;  %v981_v45 = vmax.f32 %v4576_v42, %v4582_v14  ;;  %3517 = vpow2.f32 %v701_v36 }
 0x13e   :  { %v4588_v49 = vpop.eup %3499  ;;  %3220 = vmatpush1.bf16.msra.mxu1 %v3219_v31  ;;  %v3221_v52 = vpack.c.bf16 %v4584_v43, %v4578_v29  ;;  %3519 = vpow2.f32 %v707_v10 }
 0x13f   :  { %v4592_v22 = vpop.eup %3501  ;;  %982 = vmax.xlane.f32.xlu1 %v981_v45  ;;  %v4594_v54 = vpop.f32.mrb[52].mxu0  ;;  %3521 = vpow2.f32 %v711_v40 }
 0x140   :  { %v4596_v57 = vpop.eup %3503  ;;  %3222 = vmatprep.subr.bf16.mxu1 %v3221_v52  ;;  %v3223_v53 = vpack.c.bf16 %v4592_v22, %v4588_v49  ;;  %v4600_v26 = vpop.f32.mrb[53].mxu0  ;;  %3523 = vpow2.f32 %v705_v8 }
 0x141   :  { %6114 = vst [vmem:[#allocation7_spill] sm:$0xff] %v4596_v57  ;;  %v4602_v30 = vpop.eup %3505  ;;  %v984_v62 = vmax.f32 %v4594_v54, %v4600_v26  ;;  %3525 = vpow2.f32 %v709_v12 }
 0x142   :  { %6115 = vst [vmem:[#allocation8_spill] sm:$0xff] %v4602_v30  ;;  %v4606_v2 = vpop.eup %3507  ;;  %3224 = vmatpush1.bf16.msra.mxu1 %v3223_v53  ;;  %v3225_v51 = vpack.c.bf16 %v4602_v30, %v4596_v57  ;;  %3527 = vpow2.f32 %v715_v18 }
 0x143   :  { %v4610_v38 = vpop.eup %3509  ;;  %985 = vmax.xlane.f32.xlu0 %v984_v62  ;;  %v4612_v15 = vpop.f32.mrb[54].mxu0  ;;  %3529 = vpow2.f32 %v719_v20 }
 0x144   :  { %6116 = vst [vmem:[#allocation9_spill] sm:$0xff] %v4610_v38  ;;  %v4614_v32 = vpop.eup %3511  ;;  %3226 = vmatprep.subr.bf16.mxu1 %v3225_v51  ;;  %v3227_v13 = vpack.c.bf16 %v4610_v38, %v4606_v2  ;;  %v4618_v36 = vpop.f32.mrb[55].mxu0  ;;  %3531 = vpow2.f32 %v713_v24 }
 0x145   :  { %6117 = vst [vmem:[#allocation10_spill] sm:$0xff] %v4614_v32  ;;  %v4620_v4 = vpop.eup %3513  ;;  %v987_v6 = vmax.f32 %v4612_v15, %v4618_v36  ;;  %3533 = vpow2.f32 %v717_v55 }
 0x146   :  { %6118 = vst [vmem:[#allocation11_spill] sm:$0xff] %v4620_v4  ;;  %v4624_v10 = vpop.eup %3515  ;;  %3228 = vmatpush1.bf16.msra.mxu1 %v3227_v13  ;;  %v3229_v25 = vpack.c.bf16 %v4620_v4, %v4614_v32  ;;  %3535 = vpow2.f32 %v723_v7 }
 0x147   :  { %6119 = vst [vmem:[#allocation12_spill] sm:$0xff] %v4624_v10  ;;  %v4628_v40 = vpop.eup %3517  ;;  %988 = vmax.xlane.f32.xlu1 %v987_v6  ;;  %v4630_v31 = vpop.f32.mrb[56].mxu0  ;;  %3537 = vpow2.f32 %v721_v60 }
 0x148   :  { %6120 = vst [vmem:[#allocation13_spill] sm:$0xff] %v4628_v40  ;;  %v4632_v8 = vpop.eup %3519  ;;  %3230 = vmatprep.subr.bf16.mxu1 %v3229_v25  ;;  %v3231_v45 = vpack.c.bf16 %v4628_v40, %v4624_v10  ;;  %v4636_v12 = vpop.f32.mrb[57].mxu0 }
 0x149   :  { %6121 = vst [vmem:[#allocation14_spill] sm:$0xff] %v4632_v8  ;;  %v4638_v52 = vpop.eup %3521  ;;  %v990_v18 = vmax.f32 %v4630_v31, %v4636_v12 }
 0x14a   :  { %6122 = vst [vmem:[#allocation15_spill] sm:$0xff] %v4638_v52  ;;  %v4642_v20 = vpop.eup %3523  ;;  %3232 = vmatpush1.bf16.msra.mxu1 %v3231_v45  ;;  %v3233_v53 = vpack.c.bf16 %v4638_v52, %v4632_v8 }
 0x14b   :  { %6123 = vst [vmem:[#allocation16_spill] sm:$0xff] %v4642_v20  ;;  %v4646_v24 = vpop.eup %3525  ;;  %991 = vmax.xlane.f32.xlu0 %v990_v18  ;;  %v4648_v62 = vpop.f32.mrb[58].mxu0 }
 0x14c   :  { %6124 = vst [vmem:[#allocation17_spill] sm:$0xff] %v4646_v24  ;;  %v4650_v55 = vpop.eup %3527  ;;  %3234 = vmatprep.subr.bf16.mxu1 %v3233_v53  ;;  %v3235_v51 = vpack.c.bf16 %v4646_v24, %v4642_v20  ;;  %v4654_v7 = vpop.f32.mrb[59].mxu0  ;;  %v84_v20 = vld [vmem:[%s6068_s2 + $0x60] sm:$0xff] }
 0x14d   :  { %6125 = vst [vmem:[#allocation18_spill] sm:$0xff] %v4650_v55  ;;  %v4656_v60 = vpop.eup %3529  ;;  %v993_v13 = vmax.f32 %v4648_v62, %v4654_v7 }
 0x14e   :  { %6126 = vst [vmem:[#allocation19_spill] sm:$0xff] %v4656_v60  ;;  %v4660_v6 = vpop.eup %3531  ;;  %3236 = vmatpush1.bf16.msra.mxu1 %v3235_v51  ;;  %v3237_v25 = vpack.c.bf16 %v4656_v60, %v4650_v55 }
 0x14f   :  { %6127 = vst [vmem:[#allocation20_spill] sm:$0xff] %v4660_v6  ;;  %v4664_v45 = vpop.eup %3533  ;;  %994 = vmax.xlane.f32.xlu1 %v993_v13  ;;  %v4666_v18 = vpop.f32.mrb[60].mxu0 }
 0x150   :  { %6128 = vst [vmem:[#allocation21_spill] sm:$0xff] %v4664_v45  ;;  %v4668_v53 = vpop.eup %3535  ;;  %3238 = vmatprep.subr.bf16.mxu1 %v3237_v25  ;;  %v3239_v3 = vpack.c.bf16 %v4664_v45, %v4660_v6  ;;  %v4672_v52 = vpop.f32.mrb[61].mxu0 }
 0x151   :  { %6129 = vst [vmem:[#allocation22_spill] sm:$0xff] %v4668_v53  ;;  %v4674_v8 = vpop.eup %3537  ;;  %v3241_v51 = vpack.c.bf16 %v4522_v47, %v4668_v53  ;;  %v996_v60 = vmax.f32 %v4666_v18, %v4672_v52  ;;  %v72_v47 = vld [vmem:[%s6068_s2] sm:$0xff] }
 0x152   :  { %6130 = vst [vmem:[#allocation23_spill] sm:$0xff] %v4674_v8  ;;  %3240 = vmatpush1.bf16.msra.mxu1 %v3239_v3  ;;  %v3243_v25 = vpack.c.bf16 %v4518_v44, %v4674_v8  ;;  %v6131_v3 = vmov 0.0  }
 0x153   :  { %3242 = vmatprep.subr.bf16.mxu1 %v3241_v51  ;;  %997 = vmax.xlane.f32.xlu0 %v996_v60  ;;  %v4680_v13 = vpop.f32.mrb[62].mxu0  ;;  %v73_v60 = vld [vmem:[%s6068_s2 + $0x8] sm:$0xff]  ;;  %v74_v51 = vld [vmem:[%s6068_s2 + $0x10] sm:$0xff] }
 0x154   :  { %v4684_v55 = vpop.f32.mrb[63].mxu0 }
 0x155   :  { %v999_v45 = vmax.f32 %v4680_v13, %v4684_v55 }
 0x156   :  { %3244 = vmatpush1.bf16.msra.mxu1 %v3243_v25  ;;  %v77_v25 = vld [vmem:[%s6068_s2 + $0x28] sm:$0xff] }
 0x157   :  { %1000 = vmax.xlane.f32.xlu1 %v999_v45  ;;  %v76_v45 = vld [vmem:[%s6068_s2 + $0x20] sm:$0xff] }
 0x159   :  { %794 = vmatmul.mubr.f32.vlgmr.msra.gmra.mrb[0].mxu1 %v72_v47  ;;  %v75_v47 = vld [vmem:[%s6068_s2 + $0x18] sm:$0xff] }
 0x15a   :  { %799 = vmatprep.mubr.f32.mxu1 %v6131_v3 }
 0x15d   :  { %800 = vmatmul.mubr.f32.gmra.mrb[2].mxu1 %v73_v60  ;;  %v78_v60 = vld [vmem:[%s6068_s2 + $0x30] sm:$0xff] }
 0x15e   :  { %805 = vmatprep.mubr.f32.mxu1 %v6131_v3 }
 0x161   :  { %806 = vmatmul.mubr.f32.gmra.mrb[4].mxu1 %v74_v51  ;;  %v79_v51 = vld [vmem:[%s6068_s2 + $0x38] sm:$0xff] }
 0x162   :  { %811 = vmatprep.mubr.f32.mxu1 %v6131_v3 }
 0x165   :  { %812 = vmatmul.mubr.f32.gmra.mrb[6].mxu1 %v75_v47  ;;  %v80_v47 = vld [vmem:[%s6068_s2 + $0x40] sm:$0xff] }
 0x166   :  { %817 = vmatprep.mubr.f32.mxu1 %v6131_v3 }
 0x169   :  { %818 = vmatmul.mubr.f32.gmra.mrb[8].mxu1 %v76_v45  ;;  %v81_v45 = vld [vmem:[%s6068_s2 + $0x48] sm:$0xff] }
 0x16a   :  { %823 = vmatprep.mubr.f32.mxu1 %v6131_v3 }
 0x16d   :  { %824 = vmatmul.mubr.f32.gmra.mrb[10].mxu1 %v77_v25  ;;  %v496_v25 = vpop.f32.mrb[64].mxu0 }
 0x16e   :  { %829 = vmatprep.mubr.f32.mxu1 %v6131_v3 }
 0x171   :  { %830 = vmatmul.mubr.f32.gmra.mrb[12].mxu1 %v78_v60  ;;  %v498_v60 = vpop.f32.mrb[65].mxu0 }
 0x172   :  { %835 = vmatprep.mubr.f32.mxu1 %v6131_v3  ;;  %v502_v53 = vpop.f32.mrb[66].mxu0 }
 0x173   :  { %v3247_v44 = vpack.c.bf16 %v502_v53, %v496_v25  ;;  %v504_v8 = vpop.f32.mrb[67].mxu0 }
 0x174   :  { %v3245_v6 = vpack.c.bf16 %v504_v8, %v498_v60  ;;  %v85_v8 = vld [vmem:[%s6068_s2 + $0x68] sm:$0xff]  ;;  %v86_v60 = vld [vmem:[%s6068_s2 + $0x70] sm:$0xff] }
 0x175   :  { %836 = vmatmul.mubr.f32.gmra.mrb[14].mxu1 %v79_v51  ;;  %v82_v51 = vld [vmem:[%s6068_s2 + $0x50] sm:$0xff] }
 0x176   :  { %841 = vmatprep.mubr.f32.mxu1 %v6131_v3  ;;  %3246 = vmatprep.subr.bf16.mxu1 %v3245_v6 }
 0x177   :  { %3248 = vmatpush1.bf16.xpose.msra.mxu1 %v3247_v44 }
 0x179   :  { %842 = vmatmul.mubr.f32.gmra.mrb[16].mxu1 %v80_v47  ;;  %v83_v47 = vld [vmem:[%s6068_s2 + $0x58] sm:$0xff] }
 0x17a   :  { %847 = vmatprep.mubr.f32.mxu1 %v6131_v3 }
 0x17d   :  { %848 = vmatmul.mubr.f32.gmra.mrb[18].mxu1 %v81_v45  ;;  %v508_v45 = vpop.f32.mrb[68].mxu0 }
 0x17e   :  { %853 = vmatprep.mubr.f32.mxu1 %v6131_v3  ;;  %v510_v24 = vpop.f32.mrb[69].mxu0 }
 0x17f   :  { %v514_v53 = vpop.f32.mrb[70].mxu0 }
 0x180   :  { %v3251_v25 = vpack.c.bf16 %v514_v53, %v508_v45 }
 0x181   :  { %854 = vmatmul.mubr.f32.gmra.mrb[20].mxu1 %v82_v51  ;;  %v516_v51 = vpop.f32.mrb[71].mxu0 }
 0x182   :  { %859 = vmatprep.mubr.f32.mxu1 %v6131_v3  ;;  %v3249_v6 = vpack.c.bf16 %v516_v51, %v510_v24  ;;  %v520_v44 = vpop.f32.mrb[72].mxu0 }
 0x184   :  { %3250 = vmatprep.subr.bf16.mxu1 %v3249_v6 }
 0x185   :  { %860 = vmatmul.mubr.f32.gmra.mrb[22].mxu1 %v83_v47  ;;  %v87_v47 = vld [vmem:[%s6068_s2 + $0x78] sm:$0xff] }
 0x186   :  { %865 = vmatprep.mubr.f32.mxu1 %v6131_v3  ;;  %3252 = vmatpush1.bf16.xpose.msra.mxu1 %v3251_v25 }
 0x189   :  { %866 = vmatmul.mubr.f32.gmra.mrb[24].mxu1 %v84_v20  ;;  %v522_v20 = vpop.f32.mrb[73].mxu0 }
 0x18a   :  { %871 = vmatprep.mubr.f32.mxu1 %v6131_v3  ;;  %v526_v45 = vpop.f32.mrb[74].mxu0 }
 0x18b   :  { %v3255_v24 = vpack.c.bf16 %v526_v45, %v520_v44  ;;  %v528_v53 = vpop.f32.mrb[75].mxu0 }
 0x18c   :  { %v3253_v51 = vpack.c.bf16 %v528_v53, %v522_v20 }
 0x18d   :  { %872 = vmatmul.mubr.f32.gmra.mrb[26].mxu1 %v85_v8  ;;  %v532_v8 = vpop.f32.mrb[76].mxu0 }
 0x18e   :  { %877 = vmatprep.mubr.f32.mxu1 %v6131_v3  ;;  %3254 = vmatprep.subr.bf16.mxu1 %v3253_v51  ;;  %v534_v6 = vpop.f32.mrb[77].mxu0 }
 0x18f   :  { %3256 = vmatpush1.bf16.xpose.msra.mxu1 %v3255_v24  ;;  %v538_v4 = vpop.f32.mrb[78].mxu0 }
 0x190   :  { %v3259_v25 = vpack.c.bf16 %v538_v4, %v532_v8  ;;  %v540_v32 = vpop.f32.mrb[79].mxu0 }
 0x191   :  { %878 = vmatmul.mubr.f32.gmra.mrb[28].mxu1 %v86_v60  ;;  %v3257_v60 = vpack.c.bf16 %v540_v32, %v534_v6  ;;  %v544_v40 = vpop.f32.mrb[80].mxu0 }
 0x192   :  { %883 = vmatprep.mubr.f32.mxu1 %v6131_v3  ;;  %v546_v3 = vpop.f32.mrb[81].mxu0 }
 0x193   :  { %3258 = vmatprep.subr.bf16.mxu1 %v3257_v60  ;;  %v550_v10 = vpop.f32.mrb[82].mxu0 }
 0x194   :  { %v3263_v30 = vpack.c.bf16 %v550_v10, %v544_v40  ;;  %v552_v57 = vpop.f32.mrb[83].mxu0 }
 0x195   :  { %884 = vmatmul.mubr.f32.gmra.mrb[30].mxu1 %v87_v47  ;;  %v3261_v38 = vpack.c.bf16 %v552_v57, %v546_v3  ;;  %v556_v44 = vpop.f32.mrb[84].mxu0 }
 0x196   :  { %v558_v24 = vpop.f32.mrb[85].mxu0 }
 0x197   :  { %3260 = vmatpush1.bf16.xpose.msra.mxu1 %v3259_v25  ;;  %v562_v51 = vpop.f32.mrb[86].mxu0 }
 0x198   :  { %3262 = vmatprep.subr.bf16.mxu1 %v3261_v38  ;;  %v3267_v40 = vpack.c.bf16 %v562_v51, %v556_v44  ;;  %v564_v57 = vpop.f32.mrb[87].mxu0 }
 0x199   :  { %v3265_v38 = vpack.c.bf16 %v564_v57, %v558_v24  ;;  %v568_v25 = vpop.f32.mrb[88].mxu0 }
 0x19a   :  { %v570_v60 = vpop.f32.mrb[89].mxu0 }
 0x19b   :  { %v574_v44 = vpop.f32.mrb[90].mxu0 }
 0x19c   :  { %v3271_v24 = vpack.c.bf16 %v574_v44, %v568_v25 }
 0x19f   :  { %3264 = vmatpush1.bf16.xpose.msra.mxu1 %v3263_v30 }
 0x1a0   :  { %3266 = vmatprep.subr.bf16.mxu1 %v3265_v38 }
 0x1a7   :  { %3268 = vmatpush1.bf16.xpose.msra.mxu1 %v3267_v40 }
 0x1a8   :  { %v956_v47 = vpop.xlane.xlu0 %955 }
 0x1a9   :  { %v1002_v20 = vsub.f32 %v4430_v56, %v956_v47  ;;  %v1003_v45 = vsub.f32 %v4432_v59, %v956_v47 }
 0x1ab   :  { %v1034_v4 = vmul.f32 1.442695, %v1002_v20  ;;  %v1036_v53 = vmul.f32 1.442695, %v1003_v45 }
 0x1ac   :  { %v959_v32 = vpop.xlane.xlu0 %958 }
 0x1ad   :  { %3539 = vpow2.f32 %v1034_v4  ;;  %v1004_v8 = vsub.f32 %v4436_v5, %v959_v32  ;;  %v1005_v10 = vsub.f32 %v4438_v9, %v959_v32  ;;  %v576_v4 = vpop.f32.mrb[91].mxu0 }
 0x1ae   :  { %3541 = vpow2.f32 %v1036_v53  ;;  %v3269_v53 = vpack.c.bf16 %v576_v4, %v570_v60 }
 0x1af   :  { %v1038_v3 = vmul.f32 1.442695, %v1004_v8  ;;  %v1040_v6 = vmul.f32 1.442695, %v1005_v10 }
 0x1b0   :  { %v962_v56 = vpop.xlane.xlu1 %961  ;;  %3270 = vmatprep.subr.bf16.mxu1 %v3269_v53 }
 0x1b1   :  { %3543 = vpow2.f32 %v1038_v3  ;;  %v1006_v59 = vsub.f32 %v4442_v19, %v962_v56  ;;  %v1007_v30 = vsub.f32 %v4444_v23, %v962_v56  ;;  %3272 = vmatpush1.bf16.xpose.msra.mxu1 %v3271_v24 }
 0x1b2   :  { %3545 = vpow2.f32 %v1040_v6 }
 0x1b3   :  { %v1042_v5 = vmul.f32 1.442695, %v1006_v59  ;;  %v1044_v47 = vmul.f32 1.442695, %v1007_v30 }
 0x1b4   :  { %v965_v9 = vpop.xlane.xlu1 %964 }
 0x1b5   :  { %3547 = vpow2.f32 %v1042_v5  ;;  %v1008_v20 = vsub.f32 %v4452_v33, %v965_v9  ;;  %v1009_v45 = vsub.f32 %v4455_v37, %v965_v9  ;;  %v580_v37 = vpop.f32.mrb[92].mxu0 }
 0x1b6   :  { %3549 = vpow2.f32 %v1044_v47  ;;  %v582_v57 = vpop.f32.mrb[93].mxu0 }
 0x1b7   :  { %v4759_v19 = vpop.eup %3539  ;;  %v1046_v23 = vmul.f32 1.442695, %v1008_v20  ;;  %v1048_v32 = vmul.f32 1.442695, %v1009_v45  ;;  %v586_v30 = vpop.f32.mrb[94].mxu0 }
 0x1b8   :  { %v4761_v51 = vpop.eup %3541  ;;  %v968_v8 = vpop.xlane.xlu0 %967  ;;  %v3275_v5 = vpack.c.bf16 %v586_v30, %v580_v37 }
 0x1b9   :  { %3551 = vpow2.f32 %v1046_v23  ;;  %v1010_v10 = vsub.f32 %v4472_v50, %v968_v8  ;;  %v1011_v40 = vsub.f32 %v4478_v48, %v968_v8  ;;  %v1098_v33 = vadd.f32 %v4761_v51, %v4759_v19  ;;  %v588_v60 = vpop.f32.mrb[95].mxu0 }
 0x1ba   :  { %3553 = vpow2.f32 %v1048_v32  ;;  %v3273_v47 = vpack.c.bf16 %v588_v60, %v582_v57 }
 0x1bb   :  { %v4767_v38 = vpop.eup %3543  ;;  %v1050_v3 = vmul.f32 1.442695, %v1010_v10  ;;  %v1052_v6 = vmul.f32 1.442695, %v1011_v40  ;;  %1099 = vadd.xlane.f32.xlu0 %v1098_v33 }
 0x1bc   :  { %v4769_v56 = vpop.eup %3545  ;;  %v971_v59 = vpop.xlane.xlu1 %970  ;;  %3274 = vmatprep.subr.bf16.mxu1 %v3273_v47 }
 0x1bd   :  { %3555 = vpow2.f32 %v1050_v3  ;;  %v1012_v50 = vsub.f32 %v4486_v58, %v971_v59  ;;  %v1013_v48 = vsub.f32 %v4494_v17, %v971_v59  ;;  %v1101_v25 = vadd.f32 %v4769_v56, %v4767_v38  ;;  %3276 = vmatpush1.bf16.xpose.msra.mxu1 %v3275_v5 }
 0x1be   :  { %3557 = vpow2.f32 %v1052_v6 }
 0x1bf   :  { %v4775_v9 = vpop.eup %3547  ;;  %v1054_v44 = vmul.f32 1.442695, %v1012_v50  ;;  %v1056_v20 = vmul.f32 1.442695, %v1013_v48  ;;  %1102 = vadd.xlane.f32.xlu1 %v1101_v25 }
 0x1c0   :  { %v4777_v45 = vpop.eup %3549  ;;  %v974_v24 = vpop.xlane.xlu0 %973 }
 0x1c1   :  { %3559 = vpow2.f32 %v1054_v44  ;;  %v1014_v58 = vsub.f32 %v4504_v35, %v974_v24  ;;  %v1015_v17 = vsub.f32 %v4510_v41, %v974_v24  ;;  %v1104_v4 = vadd.f32 %v4777_v45, %v4775_v9 }
 0x1c2   :  { %3561 = vpow2.f32 %v1056_v20 }
 0x1c3   :  { %v4783_v53 = vpop.eup %3551  ;;  %v1058_v23 = vmul.f32 1.442695, %v1014_v58  ;;  %v1060_v32 = vmul.f32 1.442695, %v1015_v17  ;;  %1105 = vadd.xlane.f32.xlu0 %v1104_v4 }
 0x1c4   :  { %v4785_v8 = vpop.eup %3553  ;;  %v977_v10 = vpop.xlane.xlu1 %976 }
 0x1c5   :  { %3563 = vpow2.f32 %v1058_v23  ;;  %v1016_v40 = vsub.f32 %v4524_v16, %v977_v10  ;;  %v1017_v35 = vsub.f32 %v4534_v61, %v977_v10  ;;  %v1107_v41 = vadd.f32 %v4785_v8, %v4783_v53 }
 0x1c6   :  { %3565 = vpow2.f32 %v1060_v32 }
 0x1c7   :  { %v4791_v33 = vpop.eup %3555  ;;  %v1062_v37 = vmul.f32 1.442695, %v1016_v40  ;;  %v1064_v57 = vmul.f32 1.442695, %v1017_v35  ;;  %1108 = vadd.xlane.f32.xlu1 %v1107_v41 }
 0x1c8   :  { %v4793_v3 = vpop.eup %3557  ;;  %v980_v6 = vpop.xlane.xlu0 %979 }
 0x1c9   :  { %3567 = vpow2.f32 %v1062_v37  ;;  %v1018_v59 = vsub.f32 %v4550_v34, %v980_v6  ;;  %v1019_v30 = vsub.f32 %v4560_v21, %v980_v6  ;;  %v1110_v16 = vadd.f32 %v4793_v3, %v4791_v33 }
 0x1ca   :  { %3569 = vpow2.f32 %v1064_v57 }
 0x1cb   :  { %v4799_v61 = vpop.eup %3559  ;;  %v1066_v50 = vmul.f32 1.442695, %v1018_v59  ;;  %v1068_v48 = vmul.f32 1.442695, %v1019_v30  ;;  %1111 = vadd.xlane.f32.xlu0 %v1110_v16 }
 0x1cc   :  { %v4801_v25 = vpop.eup %3561  ;;  %v983_v60 = vpop.xlane.xlu1 %982 }
 0x1cd   :  { %3571 = vpow2.f32 %v1066_v50  ;;  %v1020_v5 = vsub.f32 %v4576_v42, %v983_v60  ;;  %v1021_v47 = vsub.f32 %v4582_v14, %v983_v60  ;;  %v1113_v34 = vadd.f32 %v4801_v25, %v4799_v61 }
 0x1ce   :  { %3573 = vpow2.f32 %v1068_v48 }
 0x1cf   :  { %v4807_v21 = vpop.eup %3563  ;;  %v1070_v44 = vmul.f32 1.442695, %v1020_v5  ;;  %v1072_v20 = vmul.f32 1.442695, %v1021_v47  ;;  %1114 = vadd.xlane.f32.xlu1 %v1113_v34 }
 0x1d0   :  { %v4809_v24 = vpop.eup %3565  ;;  %v986_v58 = vpop.xlane.xlu0 %985 }
 0x1d1   :  { %3575 = vpow2.f32 %v1070_v44  ;;  %v1022_v17 = vsub.f32 %v4594_v54, %v986_v58  ;;  %v1023_v4 = vsub.f32 %v4600_v26, %v986_v58  ;;  %v1116_v42 = vadd.f32 %v4809_v24, %v4807_v21 }
 0x1d2   :  { %3577 = vpow2.f32 %v1072_v20 }
 0x1d3   :  { %v4815_v14 = vpop.eup %3567  ;;  %v1074_v23 = vmul.f32 1.442695, %v1022_v17  ;;  %v1076_v32 = vmul.f32 1.442695, %v1023_v4  ;;  %1117 = vadd.xlane.f32.xlu0 %v1116_v42 }
 0x1d4   :  { %v4817_v10 = vpop.eup %3569  ;;  %v989_v40 = vpop.xlane.xlu1 %988 }
 0x1d5   :  { %3579 = vpow2.f32 %v1074_v23  ;;  %v1024_v35 = vsub.f32 %v4612_v15, %v989_v40  ;;  %v1025_v41 = vsub.f32 %v4618_v36, %v989_v40  ;;  %v1119_v54 = vadd.f32 %v4817_v10, %v4815_v14 }
 0x1d6   :  { %3581 = vpow2.f32 %v1076_v32 }
 0x1d7   :  { %v4823_v26 = vpop.eup %3571  ;;  %v1078_v37 = vmul.f32 1.442695, %v1024_v35  ;;  %v1080_v57 = vmul.f32 1.442695, %v1025_v41  ;;  %1120 = vadd.xlane.f32.xlu1 %v1119_v54 }
 0x1d8   :  { %v4825_v6 = vpop.eup %3573  ;;  %v992_v59 = vpop.xlane.xlu0 %991 }
 0x1d9   :  { %3583 = vpow2.f32 %v1078_v37  ;;  %v1026_v30 = vsub.f32 %v4630_v31, %v992_v59  ;;  %v1027_v16 = vsub.f32 %v4636_v12, %v992_v59  ;;  %v1122_v15 = vadd.f32 %v4825_v6, %v4823_v26 }
 0x1da   :  { %3585 = vpow2.f32 %v1080_v57 }
 0x1db   :  { %v4831_v36 = vpop.eup %3575  ;;  %v1082_v50 = vmul.f32 1.442695, %v1026_v30  ;;  %v1084_v48 = vmul.f32 1.442695, %v1027_v16  ;;  %1123 = vadd.xlane.f32.xlu0 %v1122_v15 }
 0x1dc   :  { %v4833_v60 = vpop.eup %3577  ;;  %v995_v5 = vpop.xlane.xlu1 %994 }
 0x1dd   :  { %3587 = vpow2.f32 %v1082_v50  ;;  %v1028_v47 = vsub.f32 %v4648_v62, %v995_v5  ;;  %v1029_v34 = vsub.f32 %v4654_v7, %v995_v5  ;;  %v1125_v31 = vadd.f32 %v4833_v60, %v4831_v36 }
 0x1de   :  { %3589 = vpow2.f32 %v1084_v48 }
 0x1df   :  { %v4839_v12 = vpop.eup %3579  ;;  %v1086_v44 = vmul.f32 1.442695, %v1028_v47  ;;  %v1088_v20 = vmul.f32 1.442695, %v1029_v34  ;;  %1126 = vadd.xlane.f32.xlu1 %v1125_v31 }
 0x1e0   :  { %v4841_v58 = vpop.eup %3581  ;;  %v998_v17 = vpop.xlane.xlu0 %997 }
 0x1e1   :  { %3591 = vpow2.f32 %v1086_v44  ;;  %v1030_v4 = vsub.f32 %v4666_v18, %v998_v17  ;;  %v1031_v42 = vsub.f32 %v4672_v52, %v998_v17  ;;  %v1128_v62 = vadd.f32 %v4841_v58, %v4839_v12 }
 0x1e2   :  { %3593 = vpow2.f32 %v1088_v20 }
 0x1e3   :  { %v4847_v7 = vpop.eup %3583  ;;  %v1090_v23 = vmul.f32 1.442695, %v1030_v4  ;;  %v1092_v32 = vmul.f32 1.442695, %v1031_v42  ;;  %1129 = vadd.xlane.f32.xlu0 %v1128_v62 }
 0x1e4   :  { %v4849_v40 = vpop.eup %3585  ;;  %v1001_v35 = vpop.xlane.xlu1 %1000 }
 0x1e5   :  { %3595 = vpow2.f32 %v1090_v23  ;;  %v1032_v41 = vsub.f32 %v4680_v13, %v1001_v35  ;;  %v1033_v54 = vsub.f32 %v4684_v55, %v1001_v35  ;;  %v1131_v52 = vadd.f32 %v4849_v40, %v4847_v7 }
 0x1e6   :  { %3597 = vpow2.f32 %v1092_v32 }
 0x1e7   :  { %v4855_v18 = vpop.eup %3587  ;;  %v1094_v37 = vmul.f32 1.442695, %v1032_v41  ;;  %v1096_v57 = vmul.f32 1.442695, %v1033_v54  ;;  %1132 = vadd.xlane.f32.xlu1 %v1131_v52 }
 0x1e8   :  { %v4857_v59 = vpop.eup %3589 }
 0x1e9   :  { %3599 = vpow2.f32 %v1094_v37  ;;  %v1134_v30 = vadd.f32 %v4857_v59, %v4855_v18 }
 0x1ea   :  { %3601 = vpow2.f32 %v1096_v57 }
 0x1eb   :  { %v4861_v16 = vpop.eup %3591  ;;  %1135 = vadd.xlane.f32.xlu0 %v1134_v30 }
 0x1ec   :  { %v4863_v55 = vpop.eup %3593 }
 0x1ed   :  { %v1137_v13 = vadd.f32 %v4863_v55, %v4861_v16 }
 0x1ef   :  { %v4867_v15 = vpop.eup %3595  ;;  %1138 = vadd.xlane.f32.xlu1 %v1137_v13 }
 0x1f0   :  { %v4869_v50 = vpop.eup %3597 }
 0x1f1   :  { %v1140_v48 = vadd.f32 %v4869_v50, %v4867_v15 }
 0x1f3   :  { %v4873_v5 = vpop.eup %3599  ;;  %1141 = vadd.xlane.f32.xlu0 %v1140_v48 }
 0x1f4   :  { %v4875_v47 = vpop.eup %3601 }
 0x1f5   :  { %v1143_v34 = vadd.f32 %v4875_v47, %v4873_v5 }
 0x1f7   :  { %1144 = vadd.xlane.f32.xlu1 %v1143_v34 }
 0x22c   :  { %v795_v31 = vpop.f32.mrb[0].mxu1 }
 0x22d   :  { %v797_v44 = vpop.f32.mrb[1].mxu1  ;;  %3603 = vrcp.f32 %v795_v31 }
 0x22e   :  { %3605 = vrcp.f32 %v797_v44 }
 0x230   :  { %v801_v20 = vpop.f32.mrb[2].mxu1 }
 0x231   :  { %3607 = vrcp.f32 %v801_v20  ;;  %v803_v17 = vpop.f32.mrb[3].mxu1 }
 0x232   :  { %3609 = vrcp.f32 %v803_v17 }
 0x234   :  { %v807_v4 = vpop.f32.mrb[4].mxu1 }
 0x235   :  { %v809_v42 = vpop.f32.mrb[5].mxu1  ;;  %3611 = vrcp.f32 %v807_v4 }
 0x236   :  { %3613 = vrcp.f32 %v809_v42 }
 0x237   :  { %v3604_v23 = vpop.eup %3603 }
 0x238   :  { %v813_v62 = vpop.f32.mrb[6].mxu1  ;;  %v3606_v35 = vpop.eup %3605  ;;  %v4880_v37 = vmul.f32 %v3604_v23, %v4544_v28 }
 0x239   :  { %3615 = vrcp.f32 %v813_v62  ;;  %v815_v32 = vpop.f32.mrb[7].mxu1  ;;  %v923_v13 = vmul.f32 %v3606_v35, %v4532_v46 }
 0x23a   :  { %3617 = vrcp.f32 %v815_v32 }
 0x23b   :  { %v3608_v41 = vpop.eup %3607 }
 0x23c   :  { %v3610_v54 = vpop.eup %3609  ;;  %v819_v52 = vpop.f32.mrb[8].mxu1  ;;  %v4883_v57 = vmul.f32 %v3608_v41, %v4548_v11 }
 0x23d   :  { %v821_v30 = vpop.f32.mrb[9].mxu1  ;;  %v925_v48 = vmul.f32 %v3610_v54, %v4540_v0  ;;  %3619 = vrcp.f32 %v819_v52 }
 0x23e   :  { %v3279_v34 = vpack.c.bf16 %v4883_v57, %v4880_v37  ;;  %3621 = vrcp.f32 %v821_v30 }
 0x23f   :  { %v3277_v31 = vpack.c.bf16 %v925_v48, %v923_v13  ;;  %v3612_v20 = vpop.eup %3611 }
 0x240   :  { %v825_v44 = vpop.f32.mrb[10].mxu1  ;;  %v3614_v28 = vpop.eup %3613  ;;  %v4890_v46 = vmul.f32 %v3612_v20, %v4570_v63 }
 0x241   :  { %3623 = vrcp.f32 %v825_v44  ;;  %v827_v17 = vpop.f32.mrb[11].mxu1  ;;  %3278 = vmatprep.subr.bf16.mxu1 %v3277_v31  ;;  %v4896_v23 = vmul.f32 %v3614_v28, %v4556_v1 }
 0x242   :  { %3625 = vrcp.f32 %v827_v17 }
 0x243   :  { %v3616_v11 = vpop.eup %3615 }
 0x244   :  { %v3618_v4 = vpop.eup %3617  ;;  %v831_v42 = vpop.f32.mrb[12].mxu1  ;;  %v4893_v0 = vmul.f32 %v3616_v11, %v4574_v39 }
 0x245   :  { %v833_v62 = vpop.f32.mrb[13].mxu1  ;;  %v4899_v32 = vmul.f32 %v3618_v4, %v4566_v27  ;;  %3627 = vrcp.f32 %v831_v42 }
 0x246   :  { %v3283_v35 = vpack.c.bf16 %v4893_v0, %v4890_v46  ;;  %3629 = vrcp.f32 %v833_v62 }
 0x247   :  { %v3281_v41 = vpack.c.bf16 %v4899_v32, %v4896_v23  ;;  %v3620_v52 = vpop.eup %3619 }
 0x248   :  { %v837_v63 = vpop.f32.mrb[14].mxu1  ;;  %v1100_v54 = vpop.xlane.xlu0 %1099  ;;  %v4906_v31 = vmul.f32 %v3620_v52, %v4588_v49 }
 0x249   :  { %3631 = vrcp.f32 %v837_v63  ;;  %v839_v39 = vpop.f32.mrb[15].mxu1  ;;  %v3622_v30 = vpop.eup %3621 }
 0x24a   :  { %3633 = vrcp.f32 %v839_v39  ;;  %v4912_v17 = vmul.f32 %v3622_v30, %v4578_v29  ;;  %v6132_v30 = vld [vmem:[#allocation9_spill] sm:$0xff] }
 0x24b   :  { %v3624_v1 = vpop.eup %3623  ;;  %3635 = vrcp.f32 %v1100_v54 }
 0x24c   :  { %v3626_v13 = vpop.eup %3625  ;;  %v843_v27 = vpop.f32.mrb[16].mxu1  ;;  %v4909_v44 = vmul.f32 %v3624_v1, %v4592_v22 }
 0x24d   :  { %v1103_v48 = vpop.xlane.xlu1 %1102  ;;  %v845_v20 = vpop.f32.mrb[17].mxu1  ;;  %v4915_v28 = vmul.f32 %v3626_v13, %v4584_v43  ;;  %3637 = vrcp.f32 %v843_v27 }
 0x24e   :  { %3639 = vrcp.f32 %v1103_v48  ;;  %v6133_v48 = vld [vmem:[#allocation7_spill] sm:$0xff] }
 0x24f   :  { %v3285_v4 = vpack.c.bf16 %v4915_v28, %v4912_v17  ;;  %3641 = vrcp.f32 %v845_v20  ;;  %v3628_v22 = vpop.eup %3627  ;;  %v6134_v17 = vld [vmem:[#allocation8_spill] sm:$0xff] }
 0x250   :  { %v849_v49 = vpop.f32.mrb[18].mxu1  ;;  %v1106_v42 = vpop.xlane.xlu0 %1105  ;;  %v4922_v39 = vmul.f32 %v3628_v22, %v4606_v2 }
 0x251   :  { %3643 = vrcp.f32 %v849_v49  ;;  %v851_v62 = vpop.f32.mrb[19].mxu1  ;;  %v3630_v63 = vpop.eup %3629 }
 0x252   :  { %3645 = vrcp.f32 %v851_v62  ;;  %v935_v20 = vmul.f32 %v3630_v63, %v6133_v48  ;;  %v6135_v48 = vld [vmem:[#allocation12_spill] sm:$0xff] }
 0x253   :  { %v3632_v29 = vpop.eup %3631  ;;  %3647 = vrcp.f32 %v1106_v42 }
 0x254   :  { %v3634_v43 = vpop.eup %3633  ;;  %v855_v54 = vpop.f32.mrb[20].mxu1  ;;  %v4925_v1 = vmul.f32 %v3632_v29, %v6132_v30 }
 0x255   :  { %v1109_v52 = vpop.xlane.xlu1 %1108  ;;  %v3636_v13 = vpop.eup %3635  ;;  %v937_v28 = vmul.f32 %v3634_v43, %v6134_v17  ;;  %3649 = vrcp.f32 %v855_v54  ;;  %v6136_v17 = vld [vmem:[#allocation13_spill] sm:$0xff] }
 0x256   :  { %v857_v27 = vpop.f32.mrb[21].mxu1  ;;  %v1162_v49 = vmul.f32 %v3636_v13, %v4759_v19  ;;  %v1163_v42 = vmul.f32 %v3636_v13, %v4761_v51  ;;  %v3291_v62 = vpack.c.bf16 %v4925_v1, %v4922_v39  ;;  %3651 = vrcp.f32 %v1109_v52 }
 0x257   :  { %v3289_v2 = vpack.c.bf16 %v937_v28, %v935_v20  ;;  %v3638_v22 = vpop.eup %3637  ;;  %3653 = vrcp.f32 %v857_v27 }
 0x258   :  { %v861_v29 = vpop.f32.mrb[22].mxu1  ;;  %1258 = vmatprep.mubr.f32.mxu1 %v1163_v42  ;;  %v1112_v30 = vpop.xlane.xlu0 %1111  ;;  %v938_v20 = vmul.f32 %v3638_v22, %v6135_v48 }
 0x259   :  { %v3640_v11 = vpop.eup %3639  ;;  %3655 = vrcp.f32 %v861_v29  ;;  %v863_v63 = vpop.f32.mrb[23].mxu1  ;;  %1259 = vmatmul.mubr.f32.vlgmr.msra.gmra.mrb[32].mxu1 %v1162_v49 }
 0x25a   :  { %v3642_v43 = vpop.eup %3641  ;;  %3657 = vrcp.f32 %v863_v63  ;;  %3280 = vmatpush1.bf16.msra.mxu1 %v3279_v34  ;;  %v1165_v19 = vmul.f32 %v3640_v11, %v4769_v56  ;;  %v1164_v51 = vmul.f32 %v3640_v11, %v4767_v38  ;;  %v6137_v56 = vld [vmem:[#allocation10_spill] sm:$0xff]  ;;  %v6138_v38 = vld [vmem:[#allocation11_spill] sm:$0xff] }
 0x25b   :  { %v3644_v54 = vpop.eup %3643  ;;  %3659 = vrcp.f32 %v1112_v30  ;;  %3282 = vmatprep.subr.bf16.mxu1 %v3281_v41  ;;  %v939_v34 = vmul.f32 %v3642_v43, %v6137_v56 }
 0x25c   :  { %v3646_v52 = vpop.eup %3645  ;;  %v867_v13 = vpop.f32.mrb[24].mxu1  ;;  %1263 = vmatprep.mubr.f32.mxu1 %v1165_v19  ;;  %v940_v28 = vmul.f32 %v3644_v54, %v6136_v17 }
 0x25d   :  { %v1115_v27 = vpop.xlane.xlu1 %1114  ;;  %v3648_v37 = vpop.eup %3647  ;;  %1264 = vmatmul.mubr.f32.gmra.mrb[34].mxu1 %v1164_v51  ;;  %v941_v11 = vmul.f32 %v3646_v52, %v6138_v38  ;;  %3661 = vrcp.f32 %v867_v13  ;;  %v6140_v51 = vld [vmem:[#allocation16_spill] sm:$0xff]  ;;  %v6141_v52 = vld [vmem:[#allocation17_spill] sm:$0xff] }
 0x25e   :  { %v869_v57 = vpop.f32.mrb[25].mxu1  ;;  %3284 = vmatpush1.bf16.msra.mxu1 %v3283_v35  ;;  %v1167_v23 = vmul.f32 %v3648_v37, %v4777_v45  ;;  %v1166_v32 = vmul.f32 %v3648_v37, %v4775_v9  ;;  %v3295_v41 = vpack.c.bf16 %v940_v28, %v938_v20  ;;  %3663 = vrcp.f32 %v1115_v27  ;;  %v6143_v20 = vld [vmem:[#allocation15_spill] sm:$0xff] }
 0x25f   :  { %3286 = vmatprep.subr.bf16.mxu1 %v3285_v4  ;;  %v3293_v49 = vpack.c.bf16 %v941_v11, %v939_v34  ;;  %v3650_v42 = vpop.eup %3649  ;;  %3665 = vrcp.f32 %v869_v57  ;;  %v6139_v45 = vpack.c.bf16 %v4909_v44, %v4906_v31  ;;  %v6142_v31 = vld [vmem:[#allocation14_spill] sm:$0xff] }
 0x260   :  { %v873_v22 = vpop.f32.mrb[26].mxu1  ;;  %1268 = vmatprep.mubr.f32.mxu1 %v1167_v23  ;;  %v1118_v29 = vpop.xlane.xlu0 %1117  ;;  %v942_v54 = vmul.f32 %v3650_v42, %v6140_v51  ;;  %v6144_v23 = vld [vmem:[#allocation20_spill] sm:$0xff] }
 0x261   :  { %v3652_v30 = vpop.eup %3651  ;;  %3667 = vrcp.f32 %v873_v22  ;;  %v875_v63 = vpop.f32.mrb[27].mxu1  ;;  %1269 = vmatmul.mubr.f32.gmra.mrb[36].mxu1 %v1166_v32 }
 0x262   :  { %v3654_v43 = vpop.eup %3653  ;;  %3669 = vrcp.f32 %v875_v63  ;;  %3288 = vmatpush1.bf16.msra.mxu1 %v6139_v45  ;;  %v1169_v9 = vmul.f32 %v3652_v30, %v4785_v8  ;;  %v1168_v46 = vmul.f32 %v3652_v30, %v4783_v53 }
 0x263   :  { %v3656_v0 = vpop.eup %3655  ;;  %3671 = vrcp.f32 %v1118_v29  ;;  %3290 = vmatprep.subr.bf16.mxu1 %v3289_v2  ;;  %v943_v44 = vmul.f32 %v3654_v43, %v6142_v31  ;;  %v6146_v29 = vld [vmem:[#allocation18_spill] sm:$0xff] }
 0x264   :  { %v3658_v35 = vpop.eup %3657  ;;  %v879_v4 = vpop.f32.mrb[28].mxu1  ;;  %1273 = vmatprep.mubr.f32.mxu1 %v1169_v9  ;;  %v944_v13 = vmul.f32 %v3656_v0, %v6141_v52  ;;  %v6150_v31 = vld [vmem:[#allocation22_spill] sm:$0xff] }
 0x265   :  { %v1121_v19 = vpop.xlane.xlu1 %1120  ;;  %v3660_v27 = vpop.eup %3659  ;;  %1274 = vmatmul.mubr.f32.gmra.mrb[38].mxu1 %v1168_v46  ;;  %v945_v8 = vmul.f32 %v3658_v35, %v6143_v20  ;;  %3673 = vrcp.f32 %v879_v4  ;;  %v6151_v20 = vld [vmem:[#allocation6_spill] sm:$0xff] }
 0x266   :  { %v881_v48 = vpop.f32.mrb[29].mxu1  ;;  %3292 = vmatpush1.bf16.msra.mxu1 %v3291_v62  ;;  %v1171_v53 = vmul.f32 %v3660_v27, %v4793_v3  ;;  %v1170_v2 = vmul.f32 %v3660_v27, %v4791_v33  ;;  %v3299_v17 = vpack.c.bf16 %v944_v13, %v942_v54  ;;  %3675 = vrcp.f32 %v1121_v19  ;;  %v6149_v13 = vld [vmem:[#allocation5_spill] sm:$0xff] }
 0x267   :  { %3294 = vmatprep.subr.bf16.mxu1 %v3293_v49  ;;  %v3297_v28 = vpack.c.bf16 %v945_v8, %v943_v44  ;;  %v3662_v37 = vpop.eup %3661  ;;  %3677 = vrcp.f32 %v881_v48  ;;  %v6145_v49 = vld [vmem:[#allocation21_spill] sm:$0xff] }
 0x268   :  { %v885_v57 = vpop.f32.mrb[30].mxu1  ;;  %1278 = vmatprep.mubr.f32.mxu1 %v1171_v53  ;;  %v1124_v56 = vpop.xlane.xlu0 %1123  ;;  %v946_v32 = vmul.f32 %v3662_v37, %v6144_v23 }
 0x269   :  { %v3664_v34 = vpop.eup %3663  ;;  %3679 = vrcp.f32 %v885_v57  ;;  %v887_v38 = vpop.f32.mrb[31].mxu1  ;;  %1279 = vmatmul.mubr.f32.gmra.mrb[40].mxu1 %v1170_v2 }
 0x26a   :  { %v3666_v11 = vpop.eup %3665  ;;  %3681 = vrcp.f32 %v887_v38  ;;  %3296 = vmatpush1.bf16.msra.mxu1 %v3295_v41  ;;  %v1173_v3 = vmul.f32 %v3664_v34, %v4801_v25  ;;  %v1172_v33 = vmul.f32 %v3664_v34, %v4799_v61  ;;  %v6147_v41 = vld [vmem:[#allocation19_spill] sm:$0xff] }
 0x26b   :  { %v3668_v39 = vpop.eup %3667  ;;  %3683 = vrcp.f32 %v1124_v56  ;;  %3298 = vmatprep.subr.bf16.mxu1 %v3297_v28  ;;  %v947_v30 = vmul.f32 %v3666_v11, %v6146_v29 }
 0x26c   :  { %v3670_v1 = vpop.eup %3669  ;;  %1283 = vmatprep.mubr.f32.mxu1 %v1173_v3  ;;  %v1127_v62 = vpop.xlane.xlu1 %1126  ;;  %v948_v42 = vmul.f32 %v3668_v39, %v6145_v49 }
 0x26d   :  { %v3672_v22 = vpop.eup %3671  ;;  %1284 = vmatmul.mubr.f32.gmra.mrb[42].mxu1 %v1172_v33  ;;  %3685 = vrcp.f32 %v1127_v62  ;;  %v949_v63 = vmul.f32 %v3670_v1, %v6147_v41 }
 0x26e   :  { %3300 = vmatpush1.bf16.msra.mxu1 %v3299_v17  ;;  %v1175_v61 = vmul.f32 %v3672_v22, %v4809_v24  ;;  %v1174_v25 = vmul.f32 %v3672_v22, %v4807_v21  ;;  %v3303_v43 = vpack.c.bf16 %v948_v42, %v946_v32  ;;  %v6148_v21 = vld [vmem:[#allocation23_spill] sm:$0xff] }
 0x26f   :  { %v3301_v45 = vpack.c.bf16 %v949_v63, %v947_v30  ;;  %v3674_v9 = vpop.eup %3673  ;;  %v3933_v30 = vld [vmem:[%s6068_s2 + $0x10] sm:$0xff] }
 0x270   :  { %1288 = vmatprep.mubr.f32.mxu1 %v1175_v61  ;;  %v1130_v46 = vpop.xlane.xlu0 %1129  ;;  %v3676_v0 = vpop.eup %3675  ;;  %v950_v52 = vmul.f32 %v3674_v9, %v6148_v21  ;;  %v3937_v21 = vld [vmem:[%s6068_s2 + $0x30] sm:$0xff] }
 0x271   :  { %1289 = vmatmul.mubr.f32.gmra.mrb[44].mxu1 %v1174_v25  ;;  %3302 = vmatprep.subr.bf16.mxu1 %v3301_v45  ;;  %3687 = vrcp.f32 %v1130_v46  ;;  %v3678_v35 = vpop.eup %3677  ;;  %v1177_v4 = vmul.f32 %v3676_v0, %v4817_v10  ;;  %v1176_v19 = vmul.f32 %v3676_v0, %v4815_v14  ;;  %v3934_v25 = vld [vmem:[%s6068_s2 + $0x18] sm:$0xff]  ;;  %v3935_v46 = vld [vmem:[%s6068_s2 + $0x20] sm:$0xff] }
 0x272   :  { %3304 = vmatpush1.bf16.msra.mxu1 %v3303_v43  ;;  %v951_v44 = vmul.f32 %v3678_v35, %v6150_v31 }
 0x273   :  { %v3680_v51 = vpop.eup %3679  ;;  %1293 = vmatprep.mubr.f32.mxu1 %v1177_v4 }
 0x274   :  { %v3682_v54 = vpop.eup %3681  ;;  %v1133_v24 = vpop.xlane.xlu1 %1132  ;;  %v952_v27 = vmul.f32 %v3680_v51, %v6149_v13 }
 0x275   :  { %v3684_v48 = vpop.eup %3683  ;;  %1294 = vmatmul.mubr.f32.gmra.mrb[46].mxu1 %v1176_v19  ;;  %3689 = vrcp.f32 %v1133_v24  ;;  %v953_v8 = vmul.f32 %v3682_v54, %v6151_v20  ;;  %v3936_v19 = vld [vmem:[%s6068_s2 + $0x28] sm:$0xff] }
 0x276   :  { %v1179_v53 = vmul.f32 %v3684_v48, %v4825_v6  ;;  %v1178_v10 = vmul.f32 %v3684_v48, %v4823_v26  ;;  %v3307_v14 = vpack.c.bf16 %v952_v27, %v950_v52  ;;  %v3938_v48 = vld [vmem:[%s6068_s2 + $0x38] sm:$0xff] }
 0x277   :  { %v3686_v2 = vpop.eup %3685  ;;  %v3305_v17 = vpack.c.bf16 %v953_v8, %v951_v44  ;;  %v3939_v8 = vld [vmem:[%s6068_s2 + $0x40] sm:$0xff] }
 0x278   :  { %1298 = vmatprep.mubr.f32.mxu1 %v1179_v53  ;;  %v1136_v28 = vpop.xlane.xlu0 %1135  ;;  %v1181_v37 = vmul.f32 %v3686_v2, %v4833_v60  ;;  %v1180_v57 = vmul.f32 %v3686_v2, %v4831_v36  ;;  %v3940_v2 = vld [vmem:[%s6068_s2 + $0x48] sm:$0xff] }
 0x279   :  { %1299 = vmatmul.mubr.f32.gmra.mrb[48].mxu1 %v1178_v10  ;;  %3306 = vmatprep.subr.bf16.mxu1 %v3305_v17  ;;  %3691 = vrcp.f32 %v1136_v28 }
 0x27a   :  { %3308 = vmatpush1.bf16.msra.mxu1 %v3307_v14  ;;  %1303 = vmatprep.mubr.f32.mxu1 %v1181_v37 }
 0x27b   :  { %v3688_v56 = vpop.eup %3687 }
 0x27c   :  { %v1139_v34 = vpop.xlane.xlu1 %1138  ;;  %v1183_v6 = vmul.f32 %v3688_v56, %v4841_v58  ;;  %v1182_v26 = vmul.f32 %v3688_v56, %v4839_v12 }
 0x27d   :  { %1304 = vmatmul.mubr.f32.gmra.mrb[50].mxu1 %v1180_v57  ;;  %3693 = vrcp.f32 %v1139_v34  ;;  %v3941_v57 = vld [vmem:[%s6068_s2 + $0x50] sm:$0xff] }
 0x27e   :  { %1308 = vmatprep.mubr.f32.mxu1 %v1183_v6 }
 0x27f   :  { %v3690_v38 = vpop.eup %3689 }
 0x280   :  { %v1142_v11 = vpop.xlane.xlu0 %1141  ;;  %v1185_v60 = vmul.f32 %v3690_v38, %v4849_v40  ;;  %v1184_v3 = vmul.f32 %v3690_v38, %v4847_v7 }
 0x281   :  { %1309 = vmatmul.mubr.f32.gmra.mrb[52].mxu1 %v1182_v26  ;;  %3695 = vrcp.f32 %v1142_v11  ;;  %v3942_v26 = vld [vmem:[%s6068_s2 + $0x58] sm:$0xff] }
 0x282   :  { %1313 = vmatprep.mubr.f32.mxu1 %v1185_v60 }
 0x283   :  { %v3692_v36 = vpop.eup %3691 }
 0x284   :  { %v1145_v33 = vpop.xlane.xlu1 %1144  ;;  %v1187_v39 = vmul.f32 %v3692_v36, %v4857_v59  ;;  %v1186_v58 = vmul.f32 %v3692_v36, %v4855_v18 }
 0x285   :  { %1314 = vmatmul.mubr.f32.gmra.mrb[54].mxu1 %v1184_v3  ;;  %3697 = vrcp.f32 %v1145_v33  ;;  %v3943_v3 = vld [vmem:[%s6068_s2 + $0x60] sm:$0xff] }
 0x286   :  { %1318 = vmatprep.mubr.f32.mxu1 %v1187_v39 }
 0x287   :  { %v3694_v12 = vpop.eup %3693 }
 0x288   :  { %v1189_v1 = vmul.f32 %v3694_v12, %v4863_v55  ;;  %v1188_v40 = vmul.f32 %v3694_v12, %v4861_v16  ;;  %v6152_v55 = vmov 0.0   ;;  %v3931_v16 = vld [vmem:[%s6068_s2] sm:$0xff] }
 0x289   :  { %1319 = vmatmul.mubr.f32.gmra.mrb[56].mxu1 %v1186_v58  ;;  %v3944_v58 = vld [vmem:[%s6068_s2 + $0x68] sm:$0xff] }
 0x28a   :  { %1323 = vmatprep.mubr.f32.mxu1 %v1189_v1 }
 0x28b   :  { %v3696_v62 = vpop.eup %3695 }
 0x28c   :  { %v1191_v7 = vmul.f32 %v3696_v62, %v4869_v50  ;;  %v1190_v23 = vmul.f32 %v3696_v62, %v4867_v15  ;;  %v3945_v62 = vld [vmem:[%s6068_s2 + $0x70] sm:$0xff] }
 0x28d   :  { %1324 = vmatmul.mubr.f32.gmra.mrb[58].mxu1 %v1188_v40 }
 0x28e   :  { %1328 = vmatprep.mubr.f32.mxu1 %v1191_v7 }
 0x28f   :  { %v3698_v59 = vpop.eup %3697 }
 0x290   :  { %v1193_v32 = vmul.f32 %v3698_v59, %v4875_v47  ;;  %v1192_v18 = vmul.f32 %v3698_v59, %v4873_v5  ;;  %v3932_v47 = vld [vmem:[%s6068_s2 + $0x8] sm:$0xff] }
 0x291   :  { %1329 = vmatmul.mubr.f32.gmra.mrb[60].mxu1 %v1190_v23 }
 0x292   :  { %1333 = vmatprep.mubr.f32.mxu1 %v1193_v32  ;;  %v3946_v32 = vld [vmem:[%s6068_s2 + $0x78] sm:$0xff] }
 0x295   :  { %1334 = vmatmul.mubr.f32.gmra.mrb[62].mxu1 %v1192_v18 }
 0x296   :  { %1451 = vmatprep.mubr.f32.mxu1 %v6152_v55 }
 0x32c   :  { %v1260_v49 = vpop.f32.mrb[32].mxu1 }
 0x32d   :  { %v1339_v50 = vmul.f32 %v3931_v16, %v1260_v49  ;;  %v1262_v42 = vpop.f32.mrb[33].mxu1 }
 0x32f   :  { %1355 = vxpose.xlu0.b32.start [1/16] %v1339_v50, 128 }
 0x330   :  { %v1265_v15 = vpop.f32.mrb[34].mxu1 }
 0x331   :  { %v1340_v22 = vmul.f32 %v3932_v47, %v1265_v15  ;;  %v1267_v29 = vpop.f32.mrb[35].mxu1 }
 0x333   :  { %1356 = vxpose.xlu0.b32.cont [2/16] %v1340_v22, 128 }
 0x334   :  { %v1270_v5 = vpop.f32.mrb[36].mxu1 }
 0x335   :  { %v1341_v41 = vmul.f32 %v3933_v30, %v1270_v5  ;;  %v1272_v63 = vpop.f32.mrb[37].mxu1 }
 0x337   :  { %1357 = vxpose.xlu0.b32.cont [3/16] %v1341_v41, 128 }
 0x338   :  { %v1275_v61 = vpop.f32.mrb[38].mxu1 }
 0x339   :  { %v1342_v43 = vmul.f32 %v3934_v25, %v1275_v61  ;;  %v1277_v45 = vpop.f32.mrb[39].mxu1 }
 0x33b   :  { %1358 = vxpose.xlu0.b32.cont [4/16] %v1342_v43, 128 }
 0x33c   :  { %v1280_v9 = vpop.f32.mrb[40].mxu1 }
 0x33d   :  { %v1343_v0 = vmul.f32 %v3935_v46, %v1280_v9  ;;  %v1282_v35 = vpop.f32.mrb[41].mxu1 }
 0x33f   :  { %1359 = vxpose.xlu0.b32.cont [5/16] %v1343_v0, 128 }
 0x340   :  { %v1285_v4 = vpop.f32.mrb[42].mxu1 }
 0x341   :  { %v1344_v51 = vmul.f32 %v3936_v19, %v1285_v4  ;;  %v1287_v54 = vpop.f32.mrb[43].mxu1 }
 0x343   :  { %1360 = vxpose.xlu0.b32.cont [6/16] %v1344_v51, 128 }
 0x344   :  { %v1290_v24 = vpop.f32.mrb[44].mxu1 }
 0x345   :  { %v1345_v52 = vmul.f32 %v3937_v21, %v1290_v24  ;;  %v1292_v13 = vpop.f32.mrb[45].mxu1 }
 0x347   :  { %1361 = vxpose.xlu0.b32.cont [7/16] %v1345_v52, 128 }
 0x348   :  { %v1295_v27 = vpop.f32.mrb[46].mxu1 }
 0x349   :  { %v1346_v31 = vmul.f32 %v3938_v48, %v1295_v27  ;;  %v1297_v44 = vpop.f32.mrb[47].mxu1 }
 0x34b   :  { %1362 = vxpose.xlu0.b32.cont [8/16] %v1346_v31, 128 }
 0x34c   :  { %v1300_v20 = vpop.f32.mrb[48].mxu1 }
 0x34d   :  { %v1347_v53 = vmul.f32 %v3939_v8, %v1300_v20  ;;  %v1302_v10 = vpop.f32.mrb[49].mxu1 }
 0x34f   :  { %1363 = vxpose.xlu0.b32.cont [9/16] %v1347_v53, 128 }
 0x350   :  { %v1305_v14 = vpop.f32.mrb[50].mxu1 }
 0x351   :  { %v1348_v17 = vmul.f32 %v3940_v2, %v1305_v14  ;;  %v1307_v28 = vpop.f32.mrb[51].mxu1 }
 0x353   :  { %1364 = vxpose.xlu0.b32.cont [10/16] %v1348_v17, 128 }
 0x354   :  { %v1310_v37 = vpop.f32.mrb[52].mxu1 }
 0x355   :  { %v1349_v56 = vmul.f32 %v3941_v57, %v1310_v37  ;;  %v1312_v34 = vpop.f32.mrb[53].mxu1 }
 0x357   :  { %1365 = vxpose.xlu0.b32.cont [11/16] %v1349_v56, 128 }
 0x358   :  { %v1315_v6 = vpop.f32.mrb[54].mxu1 }
 0x359   :  { %v1350_v38 = vmul.f32 %v3942_v26, %v1315_v6  ;;  %v1317_v11 = vpop.f32.mrb[55].mxu1 }
 0x35b   :  { %1366 = vxpose.xlu0.b32.cont [12/16] %v1350_v38, 128 }
 0x35c   :  { %v1320_v60 = vpop.f32.mrb[56].mxu1 }
 0x35d   :  { %v1351_v36 = vmul.f32 %v3943_v3, %v1320_v60  ;;  %v1322_v33 = vpop.f32.mrb[57].mxu1 }
 0x35f   :  { %1367 = vxpose.xlu0.b32.cont [13/16] %v1351_v36, 128 }
 0x360   :  { %v1325_v39 = vpop.f32.mrb[58].mxu1 }
 0x361   :  { %v1352_v12 = vmul.f32 %v3944_v58, %v1325_v39  ;;  %v1327_v1 = vpop.f32.mrb[59].mxu1 }
 0x363   :  { %1368 = vxpose.xlu0.b32.cont [14/16] %v1352_v12, 128 }
 0x364   :  { %v1330_v40 = vpop.f32.mrb[60].mxu1 }
 0x365   :  { %v1353_v7 = vmul.f32 %v3945_v62, %v1330_v40  ;;  %v1332_v23 = vpop.f32.mrb[61].mxu1 }
 0x367   :  { %1369 = vxpose.xlu0.b32.cont [15/16] %v1353_v7, 128 }
 0x368   :  { %v1335_v59 = vpop.f32.mrb[62].mxu1 }
 0x369   :  { %v1354_v18 = vmul.f32 %v3946_v32, %v1335_v59  ;;  %v1337_v49 = vpop.f32.mrb[63].mxu1 }
 0x36b   :  { %1370 = vxpose.xlu0.b32.end [16/16] %v1354_v18, 128 }
 0x3af   :  { %v1371_v16 = vpop.trf.xlu0 }
 0x3b0   :  { %1452 = vmatmul.mubr.f32.vlgmr.msra.gmra.mrb[64].mxu1 %v1371_v16 }
 0x3b1   :  { %1457 = vmatprep.mubr.f32.mxu1 %v6152_v55 }
 0x3b3   :  { %v1372_v50 = vpop.trf.xlu0 }
 0x3b4   :  { %1458 = vmatmul.mubr.f32.gmra.mrb[66].mxu1 %v1372_v50  ;;  %v3164_v50 = vld [vmem:[%s6066_s0 + $0x18] sm:$0xff] }
 0x3b5   :  { %1463 = vmatprep.mubr.f32.mxu1 %v6152_v55 }
 0x3b7   :  { %v1373_v42 = vpop.trf.xlu0 }
 0x3b8   :  { %1464 = vmatmul.mubr.f32.gmra.mrb[68].mxu1 %v1373_v42  ;;  %v88_v42 = vld [vmem:[%s6069_s3] sm:$0xff] }
 0x3b9   :  { %1469 = vmatprep.mubr.f32.mxu1 %v6152_v55 }
 0x3bb   :  { %v1374_v15 = vpop.trf.xlu0 }
 0x3bc   :  { %1470 = vmatmul.mubr.f32.gmra.mrb[70].mxu1 %v1374_v15  ;;  %v3163_v15 = vld [vmem:[%s6066_s0 + $0x10] sm:$0xff] }
 0x3bd   :  { %1475 = vmatprep.mubr.f32.mxu1 %v6152_v55 }
 0x3bf   :  { %v1375_v47 = vpop.trf.xlu0 }
 0x3c0   :  { %1476 = vmatmul.mubr.f32.gmra.mrb[72].mxu1 %v1375_v47  ;;  %v3947_v47 = vld [vmem:[%s6067_s1] sm:$0xff] }
 0x3c1   :  { %1481 = vmatprep.mubr.f32.mxu1 %v6152_v55 }
 0x3c3   :  { %v1376_v22 = vpop.trf.xlu0 }
 0x3c4   :  { %1482 = vmatmul.mubr.f32.gmra.mrb[74].mxu1 %v1376_v22  ;;  %v3948_v22 = vld [vmem:[%s6067_s1 + $0x8] sm:$0xff] }
 0x3c5   :  { %1487 = vmatprep.mubr.f32.mxu1 %v6152_v55 }
 0x3c7   :  { %v1377_v29 = vpop.trf.xlu0 }
 0x3c8   :  { %1488 = vmatmul.mubr.f32.gmra.mrb[76].mxu1 %v1377_v29  ;;  %v3949_v29 = vld [vmem:[%s6067_s1 + $0x10] sm:$0xff] }
 0x3c9   :  { %1493 = vmatprep.mubr.f32.mxu1 %v6152_v55 }
 0x3cb   :  { %v1378_v5 = vpop.trf.xlu0 }
 0x3cc   :  { %1494 = vmatmul.mubr.f32.gmra.mrb[78].mxu1 %v1378_v5  ;;  %v3950_v5 = vld [vmem:[%s6067_s1 + $0x18] sm:$0xff] }
 0x3cd   :  { %1499 = vmatprep.mubr.f32.mxu1 %v6152_v55 }
 0x3cf   :  { %v1379_v30 = vpop.trf.xlu0 }
 0x3d0   :  { %1500 = vmatmul.mubr.f32.gmra.mrb[80].mxu1 %v1379_v30  ;;  %v3951_v30 = vld [vmem:[%s6067_s1 + $0x20] sm:$0xff] }
 0x3d1   :  { %1505 = vmatprep.mubr.f32.mxu1 %v6152_v55 }
 0x3d3   :  { %v1380_v41 = vpop.trf.xlu0 }
 0x3d4   :  { %1506 = vmatmul.mubr.f32.gmra.mrb[82].mxu1 %v1380_v41  ;;  %v3952_v41 = vld [vmem:[%s6067_s1 + $0x28] sm:$0xff] }
 0x3d5   :  { %1511 = vmatprep.mubr.f32.mxu1 %v6152_v55 }
 0x3d7   :  { %v1381_v63 = vpop.trf.xlu0 }
 0x3d8   :  { %1512 = vmatmul.mubr.f32.gmra.mrb[84].mxu1 %v1381_v63  ;;  %v3953_v63 = vld [vmem:[%s6067_s1 + $0x30] sm:$0xff] }
 0x3d9   :  { %1517 = vmatprep.mubr.f32.mxu1 %v6152_v55 }
 0x3db   :  { %v1382_v61 = vpop.trf.xlu0 }
 0x3dc   :  { %1518 = vmatmul.mubr.f32.gmra.mrb[86].mxu1 %v1382_v61  ;;  %v3954_v61 = vld [vmem:[%s6067_s1 + $0x38] sm:$0xff] }
 0x3dd   :  { %1523 = vmatprep.mubr.f32.mxu1 %v6152_v55 }
 0x3df   :  { %v1383_v25 = vpop.trf.xlu0 }
 0x3e0   :  { %1524 = vmatmul.mubr.f32.gmra.mrb[88].mxu1 %v1383_v25  ;;  %v3955_v25 = vld [vmem:[%s6067_s1 + $0x40] sm:$0xff] }
 0x3e1   :  { %1529 = vmatprep.mubr.f32.mxu1 %v6152_v55 }
 0x3e3   :  { %v1384_v43 = vpop.trf.xlu0 }
 0x3e4   :  { %1530 = vmatmul.mubr.f32.gmra.mrb[90].mxu1 %v1384_v43  ;;  %v3956_v43 = vld [vmem:[%s6067_s1 + $0x48] sm:$0xff] }
 0x3e5   :  { %1535 = vmatprep.mubr.f32.mxu1 %v6152_v55 }
 0x3e7   :  { %v1385_v45 = vpop.trf.xlu0 }
 0x3e8   :  { %1536 = vmatmul.mubr.f32.gmra.mrb[92].mxu1 %v1385_v45  ;;  %v3957_v45 = vld [vmem:[%s6067_s1 + $0x50] sm:$0xff] }
 0x3e9   :  { %1541 = vmatprep.mubr.f32.mxu1 %v6152_v55 }
 0x3eb   :  { %v1386_v9 = vpop.trf.xlu0 }
 0x3ec   :  { %1542 = vmatmul.mubr.f32.gmra.mrb[94].mxu1 %v1386_v9  ;;  %v3958_v9 = vld [vmem:[%s6067_s1 + $0x58] sm:$0xff] }
 0x3ed   :  { %2230 = vmatprep.mubr.f32.mxu1 %v6152_v55 }
 0x483   :  { %v1453_v46 = vpop.f32.mrb[64].mxu1 }
 0x484   :  { %v1455_v0 = vpop.f32.mrb[65].mxu1 }
 0x487   :  { %v1459_v35 = vpop.f32.mrb[66].mxu1 }
 0x488   :  { %v3311_v4 = vpack.c.bf16 %v1459_v35, %v1453_v46  ;;  %v1461_v19 = vpop.f32.mrb[67].mxu1  ;;  %v3959_v46 = vld [vmem:[%s6067_s1 + $0x60] sm:$0xff]  ;;  %v3961_v35 = vld [vmem:[%s6067_s1 + $0x70] sm:$0xff] }
 0x489   :  { %v3309_v51 = vpack.c.bf16 %v1461_v19, %v1455_v0  ;;  %v3960_v0 = vld [vmem:[%s6067_s1 + $0x68] sm:$0xff]  ;;  %v3963_v19 = vld [vmem:[%s6067_s1 + $0x80] sm:$0xff] }
 0x48b   :  { %v1465_v54 = vpop.f32.mrb[68].mxu1  ;;  %3310 = vmatprep.subr.bf16.mxu0 %v3309_v51  ;;  %v3964_v51 = vld [vmem:[%s6067_s1 + $0x88] sm:$0xff] }
 0x48c   :  { %v1467_v24 = vpop.f32.mrb[69].mxu1  ;;  %3312 = vmatpush1.bf16.msra.mxu0 %v3311_v4  ;;  %v3962_v4 = vld [vmem:[%s6067_s1 + $0x78] sm:$0xff] }
 0x48f   :  { %v1471_v21 = vpop.f32.mrb[70].mxu1 }
 0x490   :  { %v3315_v52 = vpack.c.bf16 %v1471_v21, %v1465_v54  ;;  %v1473_v13 = vpop.f32.mrb[71].mxu1  ;;  %v3965_v54 = vld [vmem:[%s6067_s1 + $0x90] sm:$0xff]  ;;  %v3967_v21 = vld [vmem:[%s6067_s1 + $0xa0] sm:$0xff] }
 0x491   :  { %v3313_v27 = vpack.c.bf16 %v1473_v13, %v1467_v24  ;;  %v3966_v24 = vld [vmem:[%s6067_s1 + $0x98] sm:$0xff]  ;;  %v3969_v13 = vld [vmem:[%s6067_s1 + $0xb0] sm:$0xff] }
 0x493   :  { %v1477_v48 = vpop.f32.mrb[72].mxu1  ;;  %3314 = vmatprep.subr.bf16.mxu0 %v3313_v27  ;;  %v3970_v27 = vld [vmem:[%s6067_s1 + $0xb8] sm:$0xff] }
 0x494   :  { %v1479_v31 = vpop.f32.mrb[73].mxu1  ;;  %3316 = vmatpush1.bf16.msra.mxu0 %v3315_v52  ;;  %v3968_v52 = vld [vmem:[%s6067_s1 + $0xa8] sm:$0xff] }
 0x497   :  { %v1483_v44 = vpop.f32.mrb[74].mxu1 }
 0x498   :  { %v3319_v20 = vpack.c.bf16 %v1483_v44, %v1477_v48  ;;  %v1485_v8 = vpop.f32.mrb[75].mxu1  ;;  %v3971_v48 = vld [vmem:[%s6067_s1 + $0xc0] sm:$0xff]  ;;  %v3973_v44 = vld [vmem:[%s6067_s1 + $0xd0] sm:$0xff] }
 0x499   :  { %v3317_v53 = vpack.c.bf16 %v1485_v8, %v1479_v31  ;;  %v3972_v31 = vld [vmem:[%s6067_s1 + $0xc8] sm:$0xff]  ;;  %v3975_v8 = vld [vmem:[%s6067_s1 + $0xe0] sm:$0xff] }
 0x49b   :  { %v1489_v10 = vpop.f32.mrb[76].mxu1  ;;  %3318 = vmatprep.subr.bf16.mxu0 %v3317_v53  ;;  %v3976_v53 = vld [vmem:[%s6067_s1 + $0xe8] sm:$0xff] }
 0x49c   :  { %v1491_v14 = vpop.f32.mrb[77].mxu1  ;;  %3320 = vmatpush1.bf16.msra.mxu0 %v3319_v20  ;;  %v3974_v20 = vld [vmem:[%s6067_s1 + $0xd8] sm:$0xff] }
 0x49f   :  { %v1495_v2 = vpop.f32.mrb[78].mxu1 }
 0x4a0   :  { %v3323_v17 = vpack.c.bf16 %v1495_v2, %v1489_v10  ;;  %v1497_v28 = vpop.f32.mrb[79].mxu1  ;;  %v3977_v10 = vld [vmem:[%s6067_s1 + $0xf0] sm:$0xff]  ;;  %v3979_v2 = vld [vmem:[%s6067_s1 + $0x100] sm:$0xff] }
 0x4a1   :  { %v3321_v37 = vpack.c.bf16 %v1497_v28, %v1491_v14  ;;  %v3978_v14 = vld [vmem:[%s6067_s1 + $0xf8] sm:$0xff]  ;;  %v3981_v28 = vld [vmem:[%s6067_s1 + $0x110] sm:$0xff] }
 0x4a3   :  { %v1501_v57 = vpop.f32.mrb[80].mxu1  ;;  %3322 = vmatprep.subr.bf16.mxu0 %v3321_v37  ;;  %v3982_v37 = vld [vmem:[%s6067_s1 + $0x118] sm:$0xff] }
 0x4a4   :  { %v1503_v56 = vpop.f32.mrb[81].mxu1  ;;  %3324 = vmatpush1.bf16.msra.mxu0 %v3323_v17  ;;  %v3980_v17 = vld [vmem:[%s6067_s1 + $0x108] sm:$0xff] }
 0x4a7   :  { %v1507_v34 = vpop.f32.mrb[82].mxu1 }
 0x4a8   :  { %v3327_v6 = vpack.c.bf16 %v1507_v34, %v1501_v57  ;;  %v1509_v26 = vpop.f32.mrb[83].mxu1  ;;  %v3983_v57 = vld [vmem:[%s6067_s1 + $0x120] sm:$0xff]  ;;  %v3985_v34 = vld [vmem:[%s6067_s1 + $0x130] sm:$0xff] }
 0x4a9   :  { %v3325_v38 = vpack.c.bf16 %v1509_v26, %v1503_v56  ;;  %v3984_v56 = vld [vmem:[%s6067_s1 + $0x128] sm:$0xff]  ;;  %v3987_v26 = vld [vmem:[%s6067_s1 + $0x140] sm:$0xff] }
 0x4ab   :  { %v1513_v11 = vpop.f32.mrb[84].mxu1  ;;  %3326 = vmatprep.subr.bf16.mxu0 %v3325_v38  ;;  %v3988_v38 = vld [vmem:[%s6067_s1 + $0x148] sm:$0xff] }
 0x4ac   :  { %v1515_v60 = vpop.f32.mrb[85].mxu1  ;;  %3328 = vmatpush1.bf16.msra.mxu0 %v3327_v6  ;;  %v3986_v6 = vld [vmem:[%s6067_s1 + $0x138] sm:$0xff] }
 0x4af   :  { %v1519_v3 = vpop.f32.mrb[86].mxu1 }
 0x4b0   :  { %v3331_v36 = vpack.c.bf16 %v1519_v3, %v1513_v11  ;;  %v1521_v33 = vpop.f32.mrb[87].mxu1  ;;  %v3989_v11 = vld [vmem:[%s6067_s1 + $0x150] sm:$0xff]  ;;  %v3991_v3 = vld [vmem:[%s6067_s1 + $0x160] sm:$0xff] }
 0x4b1   :  { %v3329_v39 = vpack.c.bf16 %v1521_v33, %v1515_v60  ;;  %v3990_v60 = vld [vmem:[%s6067_s1 + $0x158] sm:$0xff]  ;;  %v3993_v33 = vld [vmem:[%s6067_s1 + $0x170] sm:$0xff] }
 0x4b3   :  { %v1525_v58 = vpop.f32.mrb[88].mxu1  ;;  %3330 = vmatprep.subr.bf16.mxu0 %v3329_v39  ;;  %v3994_v39 = vld [vmem:[%s6067_s1 + $0x178] sm:$0xff] }
 0x4b4   :  { %v1527_v12 = vpop.f32.mrb[89].mxu1  ;;  %3332 = vmatpush1.bf16.msra.mxu0 %v3331_v36  ;;  %v3992_v36 = vld [vmem:[%s6067_s1 + $0x168] sm:$0xff] }
 0x4b7   :  { %v1531_v1 = vpop.f32.mrb[90].mxu1 }
 0x4b8   :  { %v3335_v40 = vpack.c.bf16 %v1531_v1, %v1525_v58  ;;  %v1533_v62 = vpop.f32.mrb[91].mxu1 }
 0x4b9   :  { %v3333_v7 = vpack.c.bf16 %v1533_v62, %v1527_v12 }
 0x4bb   :  { %v1537_v23 = vpop.f32.mrb[92].mxu1  ;;  %3334 = vmatprep.subr.bf16.mxu0 %v3333_v7 }
 0x4bc   :  { %v1539_v59 = vpop.f32.mrb[93].mxu1  ;;  %3336 = vmatpush1.bf16.msra.mxu0 %v3335_v40 }
 0x4bf   :  { %v1543_v32 = vpop.f32.mrb[94].mxu1 }
 0x4c0   :  { %v3339_v18 = vpack.c.bf16 %v1543_v32, %v1537_v23  ;;  %v1545_v49 = vpop.f32.mrb[95].mxu1 }
 0x4c1   :  { %v3337_v16 = vpack.c.bf16 %v1545_v49, %v1539_v59 }
 0x4c3   :  { %3338 = vmatprep.subr.bf16.mxu0 %v3337_v16 }
 0x4c4   :  { %3340 = vmatpush1.bf16.msra.mxu0 %v3339_v18 }
 0x4c5   :  { %1675 = vmatprep.subr.mxu0 %v3164_v50 }
 0x4c7   :  { %1618 = vmatmul.mubr.f32.vlgmr.msra.gmra.mrb[96].mxu0 %v88_v42 }
 0x4c8   :  { %1676 = vmatpush1.msra.mxu0 %v3163_v15  ;;  %1739 = vmatprep.mubr.f32.mxu0 %v6152_v55 }
 0x4cb   :  { %3165 = vmatmul.mubr.msk.f32.vlgmr.msra.gmra.mrb[98].mxu0 %vm93_vm0, %v3947_v47 }
 0x4cc   :  { %1745 = vmatprep.mubr.f32.mxu0 %v6152_v55 }
 0x4cf   :  { %3166 = vmatmul.mubr.msk.f32.gmra.mrb[100].mxu0 %vm93_vm0, %v3948_v22 }
 0x4d0   :  { %1751 = vmatprep.mubr.f32.mxu0 %v6152_v55 }
 0x4d3   :  { %3167 = vmatmul.mubr.msk.f32.gmra.mrb[102].mxu0 %vm93_vm0, %v3949_v29 }
 0x4d4   :  { %1757 = vmatprep.mubr.f32.mxu0 %v6152_v55 }
 0x4d7   :  { %3168 = vmatmul.mubr.msk.f32.gmra.mrb[104].mxu0 %vm93_vm0, %v3950_v5 }
 0x4d8   :  { %1763 = vmatprep.mubr.f32.mxu0 %v6152_v55 }
 0x4db   :  { %3169 = vmatmul.mubr.msk.f32.gmra.mrb[106].mxu0 %vm93_vm0, %v3951_v30 }
 0x4dc   :  { %1769 = vmatprep.mubr.f32.mxu0 %v6152_v55 }
 0x4df   :  { %3170 = vmatmul.mubr.msk.f32.gmra.mrb[108].mxu0 %vm93_vm0, %v3952_v41 }
 0x4e0   :  { %1775 = vmatprep.mubr.f32.mxu0 %v6152_v55 }
 0x4e3   :  { %3171 = vmatmul.mubr.msk.f32.gmra.mrb[110].mxu0 %vm93_vm0, %v3953_v63 }
 0x4e4   :  { %1781 = vmatprep.mubr.f32.mxu0 %v6152_v55 }
 0x4e7   :  { %3172 = vmatmul.mubr.msk.f32.gmra.mrb[112].mxu0 %vm93_vm0, %v3954_v61 }
 0x4e8   :  { %1787 = vmatprep.mubr.f32.mxu0 %v6152_v55 }
 0x4eb   :  { %3173 = vmatmul.mubr.msk.f32.gmra.mrb[114].mxu0 %vm93_vm0, %v3955_v25 }
 0x4ec   :  { %1793 = vmatprep.mubr.f32.mxu0 %v6152_v55 }
 0x4ef   :  { %3174 = vmatmul.mubr.msk.f32.gmra.mrb[116].mxu0 %vm93_vm0, %v3956_v43 }
 0x4f0   :  { %1799 = vmatprep.mubr.f32.mxu0 %v6152_v55 }
 0x4f3   :  { %3175 = vmatmul.mubr.msk.f32.gmra.mrb[118].mxu0 %vm93_vm0, %v3957_v45 }
 0x4f4   :  { %1805 = vmatprep.mubr.f32.mxu0 %v6152_v55 }
 0x4f7   :  { %3176 = vmatmul.mubr.msk.f32.gmra.mrb[120].mxu0 %vm93_vm0, %v3958_v9 }
 0x4f8   :  { %1811 = vmatprep.mubr.f32.mxu0 %v6152_v55 }
 0x4fb   :  { %3177 = vmatmul.mubr.msk.f32.gmra.mrb[122].mxu0 %vm93_vm0, %v3959_v46 }
 0x4fc   :  { %1817 = vmatprep.mubr.f32.mxu0 %v6152_v55 }
 0x4ff   :  { %3178 = vmatmul.mubr.msk.f32.gmra.mrb[124].mxu0 %vm93_vm0, %v3960_v0 }
 0x500   :  { %1823 = vmatprep.mubr.f32.mxu0 %v6152_v55 }
 0x503   :  { %3179 = vmatmul.mubr.msk.f32.gmra.mrb[126].mxu0 %vm93_vm0, %v3961_v35 }
 0x504   :  { %1829 = vmatprep.mubr.f32.mxu0 %v6152_v55 }
 0x507   :  { %3180 = vmatmul.mubr.msk.f32.gmra.mrb[128].mxu0 %vm93_vm0, %v3962_v4 }
 0x508   :  { %1835 = vmatprep.mubr.f32.mxu0 %v6152_v55 }
 0x50b   :  { %3181 = vmatmul.mubr.msk.f32.gmra.mrb[130].mxu0 %vm93_vm0, %v3963_v19 }
 0x50c   :  { %1841 = vmatprep.mubr.f32.mxu0 %v6152_v55 }
 0x50f   :  { %3182 = vmatmul.mubr.msk.f32.gmra.mrb[132].mxu0 %vm93_vm0, %v3964_v51 }
 0x510   :  { %1847 = vmatprep.mubr.f32.mxu0 %v6152_v55 }
 0x513   :  { %3183 = vmatmul.mubr.msk.f32.gmra.mrb[134].mxu0 %vm93_vm0, %v3965_v54 }
 0x514   :  { %1853 = vmatprep.mubr.f32.mxu0 %v6152_v55 }
 0x517   :  { %3184 = vmatmul.mubr.msk.f32.gmra.mrb[136].mxu0 %vm93_vm0, %v3966_v24 }
 0x518   :  { %1859 = vmatprep.mubr.f32.mxu0 %v6152_v55 }
 0x51b   :  { %3185 = vmatmul.mubr.msk.f32.gmra.mrb[138].mxu0 %vm93_vm0, %v3967_v21 }
 0x51c   :  { %1865 = vmatprep.mubr.f32.mxu0 %v6152_v55 }
 0x51f   :  { %3186 = vmatmul.mubr.msk.f32.gmra.mrb[140].mxu0 %vm93_vm0, %v3968_v52 }
 0x520   :  { %1871 = vmatprep.mubr.f32.mxu0 %v6152_v55 }
 0x523   :  { %3187 = vmatmul.mubr.msk.f32.gmra.mrb[142].mxu0 %vm93_vm0, %v3969_v13 }
 0x524   :  { %1877 = vmatprep.mubr.f32.mxu0 %v6152_v55 }
 0x527   :  { %3188 = vmatmul.mubr.msk.f32.gmra.mrb[144].mxu0 %vm93_vm0, %v3970_v27 }
 0x528   :  { %1883 = vmatprep.mubr.f32.mxu0 %v6152_v55 }
 0x52b   :  { %3189 = vmatmul.mubr.msk.f32.gmra.mrb[146].mxu0 %vm93_vm0, %v3971_v48 }
 0x52c   :  { %1889 = vmatprep.mubr.f32.mxu0 %v6152_v55 }
 0x52f   :  { %3190 = vmatmul.mubr.msk.f32.gmra.mrb[148].mxu0 %vm93_vm0, %v3972_v31 }
 0x530   :  { %1895 = vmatprep.mubr.f32.mxu0 %v6152_v55 }
 0x533   :  { %3191 = vmatmul.mubr.msk.f32.gmra.mrb[150].mxu0 %vm93_vm0, %v3973_v44 }
 0x534   :  { %1901 = vmatprep.mubr.f32.mxu0 %v6152_v55 }
 0x537   :  { %3192 = vmatmul.mubr.msk.f32.gmra.mrb[152].mxu0 %vm93_vm0, %v3974_v20 }
 0x538   :  { %1907 = vmatprep.mubr.f32.mxu0 %v6152_v55 }
 0x53b   :  { %3193 = vmatmul.mubr.msk.f32.gmra.mrb[154].mxu0 %vm93_vm0, %v3975_v8 }
 0x53c   :  { %1913 = vmatprep.mubr.f32.mxu0 %v6152_v55 }
 0x53f   :  { %3194 = vmatmul.mubr.msk.f32.gmra.mrb[156].mxu0 %vm93_vm0, %v3976_v53 }
 0x540   :  { %1919 = vmatprep.mubr.f32.mxu0 %v6152_v55 }
 0x543   :  { %3195 = vmatmul.mubr.msk.f32.gmra.mrb[158].mxu0 %vm93_vm0, %v3977_v10 }
 0x544   :  { %1925 = vmatprep.mubr.f32.mxu0 %v6152_v55 }
 0x547   :  { %3196 = vmatmul.mubr.msk.f32.gmra.mrb[160].mxu0 %vm93_vm0, %v3978_v14 }
 0x548   :  { %1931 = vmatprep.mubr.f32.mxu0 %v6152_v55 }
 0x54b   :  { %3197 = vmatmul.mubr.msk.f32.gmra.mrb[162].mxu0 %vm93_vm0, %v3979_v2 }
 0x54c   :  { %1937 = vmatprep.mubr.f32.mxu0 %v6152_v55 }
 0x54f   :  { %3198 = vmatmul.mubr.msk.f32.gmra.mrb[164].mxu0 %vm93_vm0, %v3980_v17 }
 0x550   :  { %1943 = vmatprep.mubr.f32.mxu0 %v6152_v55 }
 0x553   :  { %3199 = vmatmul.mubr.msk.f32.gmra.mrb[166].mxu0 %vm93_vm0, %v3981_v28 }
 0x554   :  { %1949 = vmatprep.mubr.f32.mxu0 %v6152_v55 }
 0x557   :  { %3200 = vmatmul.mubr.msk.f32.gmra.mrb[168].mxu0 %vm93_vm0, %v3982_v37 }
 0x558   :  { %1955 = vmatprep.mubr.f32.mxu0 %v6152_v55 }
 0x55b   :  { %3201 = vmatmul.mubr.msk.f32.gmra.mrb[170].mxu0 %vm93_vm0, %v3983_v57 }
 0x55c   :  { %1961 = vmatprep.mubr.f32.mxu0 %v6152_v55 }
 0x55f   :  { %3202 = vmatmul.mubr.msk.f32.gmra.mrb[172].mxu0 %vm93_vm0, %v3984_v56 }
 0x560   :  { %1967 = vmatprep.mubr.f32.mxu0 %v6152_v55 }
 0x563   :  { %3203 = vmatmul.mubr.msk.f32.gmra.mrb[174].mxu0 %vm93_vm0, %v3985_v34 }
 0x564   :  { %1973 = vmatprep.mubr.f32.mxu0 %v6152_v55 }
 0x567   :  { %3204 = vmatmul.mubr.msk.f32.gmra.mrb[176].mxu0 %vm93_vm0, %v3986_v6 }
 0x568   :  { %1979 = vmatprep.mubr.f32.mxu0 %v6152_v55 }
 0x56b   :  { %3205 = vmatmul.mubr.msk.f32.gmra.mrb[178].mxu0 %vm93_vm0, %v3987_v26 }
 0x56c   :  { %1985 = vmatprep.mubr.f32.mxu0 %v6152_v55 }
 0x56f   :  { %3206 = vmatmul.mubr.msk.f32.gmra.mrb[180].mxu0 %vm93_vm0, %v3988_v38 }
 0x570   :  { %1991 = vmatprep.mubr.f32.mxu0 %v6152_v55 }
 0x573   :  { %3207 = vmatmul.mubr.msk.f32.gmra.mrb[182].mxu0 %vm93_vm0, %v3989_v11 }
 0x574   :  { %1997 = vmatprep.mubr.f32.mxu0 %v6152_v55 }
 0x577   :  { %3208 = vmatmul.mubr.msk.f32.gmra.mrb[184].mxu0 %vm93_vm0, %v3990_v60 }
 0x578   :  { %2003 = vmatprep.mubr.f32.mxu0 %v6152_v55 }
 0x57b   :  { %3209 = vmatmul.mubr.msk.f32.gmra.mrb[186].mxu0 %vm93_vm0, %v3991_v3 }
 0x57c   :  { %2009 = vmatprep.mubr.f32.mxu0 %v6152_v55 }
 0x57f   :  { %3210 = vmatmul.mubr.msk.f32.gmra.mrb[188].mxu0 %vm93_vm0, %v3992_v36 }
 0x580   :  { %2015 = vmatprep.mubr.f32.mxu0 %v6152_v55 }
 0x583   :  { %3211 = vmatmul.mubr.msk.f32.gmra.mrb[190].mxu0 %vm93_vm0, %v3993_v33 }
 0x584   :  { %2021 = vmatprep.mubr.f32.mxu0 %v6152_v55 }
 0x587   :  { %3212 = vmatmul.mubr.msk.f32.gmra.mrb[192].mxu0 %vm93_vm0, %v3994_v39 }
 0x588   :  { %3049 = vmatprep.mubr.f32.mxu0 %v6152_v55 }
 0x59a   :  { %v5309_v58 = vpop.f32.mrb[96].mxu0 }
 0x59b   :  { %6153 = vst [vmem:[#allocation9_spill] sm:$0xff] %v5309_v58  ;;  %v5311_v12 = vpop.f32.mrb[97].mxu0 }
 0x59c   :  { %6154 = vst [vmem:[#allocation7_spill] sm:$0xff] %v5311_v12 }
 0x59e   :  { %v5313_v1 = vpop.f32.mrb[98].mxu0 }
 0x59f   :  { %v5315_v40 = vpop.f32.mrb[99].mxu0 }
 0x5a2   :  { %v5317_v62 = vpop.f32.mrb[100].mxu0 }
 0x5a3   :  { %v5319_v7 = vpop.f32.mrb[101].mxu0 }
 0x5a6   :  { %v5321_v23 = vpop.f32.mrb[102].mxu0 }
 0x5a7   :  { %v2028_v59 = vmax.f32 %v5313_v1, %v5321_v23  ;;  %v5325_v32 = vpop.f32.mrb[103].mxu0 }
 0x5a8   :  { %v2049_v18 = vmax.f32 %v5315_v40, %v5325_v32 }
 0x5aa   :  { %v5329_v49 = vpop.f32.mrb[104].mxu0 }
 0x5ab   :  { %v2029_v16 = vmax.f32 %v5317_v62, %v5329_v49  ;;  %v5333_v50 = vpop.f32.mrb[105].mxu0 }
 0x5ac   :  { %v2050_v42 = vmax.f32 %v5319_v7, %v5333_v50 }
 0x5ae   :  { %v5337_v15 = vpop.f32.mrb[106].mxu0 }
 0x5af   :  { %v2030_v47 = vmax.f32 %v2028_v59, %v5337_v15  ;;  %v5340_v22 = vpop.f32.mrb[107].mxu0 }
 0x5b0   :  { %v2051_v29 = vmax.f32 %v2049_v18, %v5340_v22 }
 0x5b2   :  { %v5343_v5 = vpop.f32.mrb[108].mxu0 }
 0x5b3   :  { %v2031_v30 = vmax.f32 %v2029_v16, %v5343_v5  ;;  %v5346_v41 = vpop.f32.mrb[109].mxu0 }
 0x5b4   :  { %v2052_v63 = vmax.f32 %v2050_v42, %v5346_v41 }
 0x5b6   :  { %v5349_v61 = vpop.f32.mrb[110].mxu0 }
 0x5b7   :  { %v2032_v25 = vmax.f32 %v2030_v47, %v5349_v61  ;;  %v5352_v43 = vpop.f32.mrb[111].mxu0 }
 0x5b8   :  { %v2053_v45 = vmax.f32 %v2051_v29, %v5352_v43 }
 0x5ba   :  { %v5355_v9 = vpop.f32.mrb[112].mxu0 }
 0x5bb   :  { %v2033_v46 = vmax.f32 %v2031_v30, %v5355_v9  ;;  %v5358_v0 = vpop.f32.mrb[113].mxu0 }
 0x5bc   :  { %v2054_v35 = vmax.f32 %v2052_v63, %v5358_v0 }
 0x5be   :  { %v5361_v4 = vpop.f32.mrb[114].mxu0 }
 0x5bf   :  { %v2034_v19 = vmax.f32 %v2032_v25, %v5361_v4  ;;  %v5364_v51 = vpop.f32.mrb[115].mxu0 }
 0x5c0   :  { %v2055_v54 = vmax.f32 %v2053_v45, %v5364_v51 }
 0x5c2   :  { %v5367_v24 = vpop.f32.mrb[116].mxu0 }
 0x5c3   :  { %v2035_v21 = vmax.f32 %v2033_v46, %v5367_v24  ;;  %v5370_v52 = vpop.f32.mrb[117].mxu0 }
 0x5c4   :  { %v2056_v13 = vmax.f32 %v2054_v35, %v5370_v52 }
 0x5c6   :  { %v5373_v27 = vpop.f32.mrb[118].mxu0 }
 0x5c7   :  { %v2036_v48 = vmax.f32 %v2034_v19, %v5373_v27  ;;  %v5376_v31 = vpop.f32.mrb[119].mxu0 }
 0x5c8   :  { %v2057_v44 = vmax.f32 %v2055_v54, %v5376_v31 }
 0x5ca   :  { %v5379_v20 = vpop.f32.mrb[120].mxu0 }
 0x5cb   :  { %v2037_v8 = vmax.f32 %v2035_v21, %v5379_v20  ;;  %v5382_v53 = vpop.f32.mrb[121].mxu0 }
 0x5cc   :  { %v2058_v10 = vmax.f32 %v2056_v13, %v5382_v53 }
 0x5ce   :  { %v5385_v14 = vpop.f32.mrb[122].mxu0 }
 0x5cf   :  { %v2038_v2 = vmax.f32 %v2036_v48, %v5385_v14  ;;  %v5388_v17 = vpop.f32.mrb[123].mxu0 }
 0x5d0   :  { %v2059_v28 = vmax.f32 %v2057_v44, %v5388_v17 }
 0x5d2   :  { %v5391_v37 = vpop.f32.mrb[124].mxu0 }
 0x5d3   :  { %v2039_v57 = vmax.f32 %v2037_v8, %v5391_v37  ;;  %v5394_v56 = vpop.f32.mrb[125].mxu0 }
 0x5d4   :  { %v2060_v34 = vmax.f32 %v2058_v10, %v5394_v56 }
 0x5d6   :  { %v5397_v6 = vpop.f32.mrb[126].mxu0 }
 0x5d7   :  { %v2040_v26 = vmax.f32 %v2038_v2, %v5397_v6  ;;  %v5400_v38 = vpop.f32.mrb[127].mxu0 }
 0x5d8   :  { %v2061_v11 = vmax.f32 %v2059_v28, %v5400_v38 }
 0x5da   :  { %v1831_v60 = vpop.f32.mrb[128].mxu0 }
 0x5db   :  { %v2041_v3 = vmax.f32 %v2039_v57, %v1831_v60  ;;  %v1833_v36 = vpop.f32.mrb[129].mxu0 }
 0x5dc   :  { %v2062_v33 = vmax.f32 %v2060_v34, %v1833_v36 }
 0x5dd   :  { %v2042_v39 = vmax.f32 %v2040_v26, %v2041_v3 }
 0x5de   :  { %v2063_v59 = vmax.f32 %v2061_v11, %v2062_v33  ;;  %v5403_v18 = vpop.f32.mrb[130].mxu0 }
 0x5df   :  { %v2043_v16 = vrot.slane %v2042_v39, 4  ;;  %v5405_v42 = vpop.f32.mrb[131].mxu0 }
 0x5e0   :  { %v2064_v47 = vrot.slane %v2063_v59, 4  ;;  %v2391_v29 = vmax.f32 %v5403_v18, %v5405_v42 }
 0x5e1   :  { %v2044_v30 = vmax.f32 %v2042_v39, %v2043_v16 }
 0x5e2   :  { %v2065_v63 = vmax.f32 %v2063_v59, %v2064_v47  ;;  %2392 = vmax.xlane.f32.xlu1 %v2391_v29  ;;  %v5409_v25 = vpop.f32.mrb[132].mxu0 }
 0x5e3   :  { %v2045_v45 = vrot.slane %v2044_v30, 2  ;;  %v5411_v46 = vpop.f32.mrb[133].mxu0 }
 0x5e4   :  { %v2066_v35 = vrot.slane %v2065_v63, 2  ;;  %v2394_v19 = vmax.f32 %v5409_v25, %v5411_v46 }
 0x5e5   :  { %v2046_v54 = vmax.f32 %v2044_v30, %v2045_v45 }
 0x5e6   :  { %v2067_v21 = vmax.f32 %v2065_v63, %v2066_v35  ;;  %2395 = vmax.xlane.f32.xlu1 %v2394_v19  ;;  %v5415_v13 = vpop.f32.mrb[134].mxu0 }
 0x5e7   :  { %v2047_v48 = vrot.slane %v2046_v54, 1  ;;  %v5417_v44 = vpop.f32.mrb[135].mxu0 }
 0x5e8   :  { %v2068_v8 = vrot.slane %v2067_v21, 1  ;;  %v2397_v10 = vmax.f32 %v5415_v13, %v5417_v44 }
 0x5e9   :  { %v5421_v2 = vmax.f32 %v2046_v54, %v2047_v48 }
 0x5ea   :  { %v5423_v28 = vmax.f32 %v2067_v21, %v2068_v8  ;;  %2398 = vmax.xlane.f32.xlu1 %v2397_v10  ;;  %v5425_v57 = vpop.f32.mrb[136].mxu0 }
 0x5eb   :  { %v2100_v34 = vsub.f32 %v1831_v60, %v5421_v2  ;;  %v5428_v26 = vpop.f32.mrb[137].mxu0  ;;  %v2070_v11 = vsub.f32 %v5313_v1, %v5421_v2  ;;  %v2072_v3 = vsub.f32 %v5317_v62, %v5421_v2  ;;  %v2074_v33 = vsub.f32 %v5321_v23, %v5421_v2 }
 0x5ec   :  { %v2101_v39 = vsub.f32 %v1833_v36, %v5423_v28  ;;  %v2400_v59 = vmax.f32 %v5425_v57, %v5428_v26  ;;  %v2071_v16 = vsub.f32 %v5315_v40, %v5423_v28  ;;  %v2073_v60 = vsub.f32 %v5319_v7, %v5423_v28 }
 0x5ed   :  { %v2162_v47 = vmul.f32 1.442695, %v2100_v34  ;;  %v2075_v1 = vsub.f32 %v5325_v32, %v5423_v28  ;;  %v2077_v36 = vsub.f32 %v5333_v50, %v5423_v28  ;;  %v2076_v30 = vsub.f32 %v5329_v49, %v5421_v2 }
 0x5ee   :  { %v2164_v29 = vmul.f32 1.442695, %v2101_v39  ;;  %2401 = vmax.xlane.f32.xlu1 %v2400_v59  ;;  %v5445_v62 = vpop.f32.mrb[138].mxu0  ;;  %v2104_v23 = vmul.f32 1.442695, %v2071_v16  ;;  %v2079_v45 = vsub.f32 %v5340_v22, %v5423_v28  ;;  %v2081_v50 = vsub.f32 %v5346_v41, %v5423_v28 }
 0x5ef   :  { %3699 = vpow2.f32 %v2162_v47  ;;  %v5451_v40 = vpop.f32.mrb[139].mxu0  ;;  %v2108_v63 = vmul.f32 1.442695, %v2073_v60  ;;  %v2102_v7 = vmul.f32 1.442695, %v2070_v11  ;;  %v2078_v21 = vsub.f32 %v5337_v15, %v5421_v2 }
 0x5f0   :  { %3701 = vpow2.f32 %v2164_v29  ;;  %v2403_v32 = vmax.f32 %v5445_v62, %v5451_v40  ;;  %v2106_v35 = vmul.f32 1.442695, %v2072_v3  ;;  %v2112_v19 = vmul.f32 1.442695, %v2075_v1 }
 0x5f1   :  { %3703 = vpow2.f32 %v2104_v23  ;;  %v2116_v54 = vmul.f32 1.442695, %v2077_v36  ;;  %v2080_v22 = vsub.f32 %v5343_v5, %v5421_v2  ;;  %v2083_v48 = vsub.f32 %v5352_v43, %v5423_v28 }
 0x5f2   :  { %2404 = vmax.xlane.f32.xlu1 %v2403_v32  ;;  %v5459_v49 = vpop.f32.mrb[140].mxu0  ;;  %3705 = vpow2.f32 %v2108_v63  ;;  %v2110_v10 = vmul.f32 1.442695, %v2074_v33  ;;  %v2085_v41 = vsub.f32 %v5358_v0, %v5423_v28  ;;  %v2082_v34 = vsub.f32 %v5349_v61, %v5421_v2 }
 0x5f3   :  { %v5467_v8 = vpop.f32.mrb[141].mxu0  ;;  %3707 = vpow2.f32 %v2102_v7  ;;  %v2114_v15 = vmul.f32 1.442695, %v2076_v30  ;;  %v2120_v5 = vmul.f32 1.442695, %v2079_v45  ;;  %v2084_v43 = vsub.f32 %v5355_v9, %v5421_v2 }
 0x5f4   :  { %v2406_v11 = vmax.f32 %v5459_v49, %v5467_v8  ;;  %3709 = vpow2.f32 %v2106_v35  ;;  %v2124_v33 = vmul.f32 1.442695, %v2081_v50  ;;  %v2087_v0 = vsub.f32 %v5364_v51, %v5423_v28 }
 0x5f5   :  { %3711 = vpow2.f32 %v2112_v19  ;;  %v2089_v61 = vsub.f32 %v5370_v52, %v5423_v28  ;;  %v2118_v59 = vmul.f32 1.442695, %v2078_v21  ;;  %v2086_v16 = vsub.f32 %v5361_v4, %v5421_v2 }
 0x5f6   :  { %2407 = vmax.xlane.f32.xlu1 %v2406_v11  ;;  %v5477_v3 = vpop.f32.mrb[142].mxu0  ;;  %3713 = vpow2.f32 %v2116_v54  ;;  %v2088_v9 = vsub.f32 %v5367_v24, %v5421_v2  ;;  %v2122_v47 = vmul.f32 1.442695, %v2080_v22  ;;  %v2128_v51 = vmul.f32 1.442695, %v2083_v48 }
 0x5f7   :  { %v5483_v39 = vpop.f32.mrb[143].mxu0  ;;  %3715 = vpow2.f32 %v2110_v10  ;;  %v2132_v52 = vmul.f32 1.442695, %v2085_v41  ;;  %v2091_v29 = vsub.f32 %v5376_v31, %v5423_v28  ;;  %v2093_v24 = vsub.f32 %v5382_v53, %v5423_v28 }
 0x5f8   :  { %v2409_v60 = vmax.f32 %v5477_v3, %v5483_v39  ;;  %3717 = vpow2.f32 %v2114_v15  ;;  %v2090_v36 = vsub.f32 %v5373_v27, %v5421_v2  ;;  %v2092_v30 = vsub.f32 %v5379_v20, %v5421_v2 }
 0x5f9   :  { %v5491_v1 = vpop.eup %3699  ;;  %3719 = vpow2.f32 %v2120_v5  ;;  %v2126_v31 = vmul.f32 1.442695, %v2082_v34  ;;  %v2095_v45 = vsub.f32 %v5388_v17, %v5423_v28  ;;  %v2097_v32 = vsub.f32 %v5394_v56, %v5423_v28 }
 0x5fa   :  { %6155 = vst [vmem:[#allocation8_spill] sm:$0xff] %v5491_v1  ;;  %v5495_v23 = vpop.eup %3701  ;;  %2410 = vmax.xlane.f32.xlu1 %v2409_v60  ;;  %v5497_v4 = vpop.f32.mrb[144].mxu0  ;;  %3721 = vpow2.f32 %v2124_v33  ;;  %v2130_v53 = vmul.f32 1.442695, %v2084_v43  ;;  %v2136_v54 = vmul.f32 1.442695, %v2087_v0  ;;  %v2094_v22 = vsub.f32 %v5385_v14, %v5421_v2 }
 0x5fb   :  { %6156 = vst [vmem:[#allocation12_spill] sm:$0xff] %v5495_v23  ;;  %v5505_v63 = vpop.eup %3703  ;;  %v5507_v7 = vpop.f32.mrb[145].mxu0  ;;  %3723 = vpow2.f32 %v2118_v59  ;;  %v2140_v50 = vmul.f32 1.442695, %v2089_v61  ;;  %v2134_v56 = vmul.f32 1.442695, %v2086_v16  ;;  %v2096_v48 = vsub.f32 %v5391_v37, %v5421_v2 }
 0x5fc   :  { %v5513_v35 = vpop.eup %3705  ;;  %v2412_v27 = vmax.f32 %v5497_v4, %v5507_v7  ;;  %3725 = vpow2.f32 %v2122_v47  ;;  %v2099_v11 = vsub.f32 %v5400_v38, %v5423_v28  ;;  %v2098_v15 = vsub.f32 %v5397_v6, %v5421_v2 }
 0x5fd   :  { %v5517_v20 = vpop.eup %3707  ;;  %v3341_v19 = vpack.c.bf16 %v5513_v35, %v5505_v63  ;;  %3727 = vpow2.f32 %v2128_v51  ;;  %v2138_v37 = vmul.f32 1.442695, %v2088_v9  ;;  %v2144_v0 = vmul.f32 1.442695, %v2091_v29 }
 0x5fe   :  { %v5521_v21 = vpop.eup %3709  ;;  %2413 = vmax.xlane.f32.xlu1 %v2412_v27  ;;  %v5523_v17 = vpop.f32.mrb[146].mxu0  ;;  %3729 = vpow2.f32 %v2132_v52  ;;  %v2148_v6 = vmul.f32 1.442695, %v2093_v24  ;;  %v2142_v16 = vmul.f32 1.442695, %v2090_v36 }
 0x5ff   :  { %v5529_v10 = vpop.eup %3711  ;;  %3342 = vmatprep.subr.bf16.mxu1 %v3341_v19  ;;  %v3343_v41 = vpack.c.bf16 %v5521_v21, %v5517_v20  ;;  %v5533_v34 = vpop.f32.mrb[147].mxu0  ;;  %3731 = vpow2.f32 %v2126_v31  ;;  %v2146_v47 = vmul.f32 1.442695, %v2092_v30  ;;  %v2152_v29 = vmul.f32 1.442695, %v2095_v45 }
 0x600   :  { %v5539_v5 = vpop.eup %3713  ;;  %v2415_v14 = vmax.f32 %v5523_v17, %v5533_v34  ;;  %3733 = vpow2.f32 %v2130_v53  ;;  %v2156_v36 = vmul.f32 1.442695, %v2097_v32  ;;  %v2150_v19 = vmul.f32 1.442695, %v2094_v22 }
 0x601   :  { %v5543_v43 = vpop.eup %3715  ;;  %3344 = vmatpush1.bf16.msra.mxu1 %v3343_v41  ;;  %v3345_v33 = vpack.c.bf16 %v5539_v5, %v5529_v10  ;;  %3735 = vpow2.f32 %v2136_v54  ;;  %v2160_v41 = vmul.f32 1.442695, %v2099_v11  ;;  %v2158_v22 = vmul.f32 1.442695, %v2098_v15 }
 0x602   :  { %v5547_v61 = vpop.eup %3717  ;;  %2416 = vmax.xlane.f32.xlu1 %v2415_v14  ;;  %v5549_v38 = vpop.f32.mrb[148].mxu0  ;;  %3737 = vpow2.f32 %v2140_v50  ;;  %v2154_v50 = vmul.f32 1.442695, %v2096_v48 }
 0x603   :  { %v5551_v2 = vpop.eup %3719  ;;  %3346 = vmatprep.subr.bf16.mxu1 %v3345_v33  ;;  %v3347_v28 = vpack.c.bf16 %v5547_v61, %v5543_v43  ;;  %v5555_v59 = vpop.f32.mrb[149].mxu0  ;;  %3739 = vpow2.f32 %v2134_v56 }
 0x604   :  { %v5557_v9 = vpop.eup %3721  ;;  %v2418_v60 = vmax.f32 %v5549_v38, %v5555_v59  ;;  %3741 = vpow2.f32 %v2138_v37 }
 0x605   :  { %v5561_v51 = vpop.eup %3723  ;;  %3348 = vmatpush1.bf16.msra.mxu1 %v3347_v28  ;;  %v3349_v52 = vpack.c.bf16 %v5557_v9, %v5551_v2  ;;  %3743 = vpow2.f32 %v2144_v0 }
 0x606   :  { %v5565_v24 = vpop.eup %3725  ;;  %2419 = vmax.xlane.f32.xlu1 %v2418_v60  ;;  %v5567_v31 = vpop.f32.mrb[150].mxu0  ;;  %3745 = vpow2.f32 %v2148_v6 }
 0x607   :  { %v5569_v27 = vpop.eup %3727  ;;  %3350 = vmatprep.subr.bf16.mxu1 %v3349_v52  ;;  %v3351_v30 = vpack.c.bf16 %v5565_v24, %v5561_v51  ;;  %v5573_v53 = vpop.f32.mrb[151].mxu0  ;;  %3747 = vpow2.f32 %v2142_v16 }
 0x608   :  { %v5575_v54 = vpop.eup %3729  ;;  %v2421_v45 = vmax.f32 %v5567_v31, %v5573_v53  ;;  %3749 = vpow2.f32 %v2146_v47 }
 0x609   :  { %6157 = vst [vmem:[#allocation13_spill] sm:$0xff] %v5575_v54  ;;  %v5579_v56 = vpop.eup %3731  ;;  %3352 = vmatpush1.bf16.msra.mxu1 %v3351_v30  ;;  %v3353_v32 = vpack.c.bf16 %v5575_v54, %v5569_v27  ;;  %3751 = vpow2.f32 %v2152_v29 }
 0x60a   :  { %v5583_v14 = vpop.eup %3733  ;;  %2422 = vmax.xlane.f32.xlu1 %v2421_v45  ;;  %v5585_v37 = vpop.f32.mrb[152].mxu0  ;;  %3753 = vpow2.f32 %v2156_v36 }
 0x60b   :  { %v5587_v33 = vpop.eup %3735  ;;  %3354 = vmatprep.subr.bf16.mxu1 %v3353_v32  ;;  %v3355_v48 = vpack.c.bf16 %v5583_v14, %v5579_v56  ;;  %v5591_v0 = vpop.f32.mrb[153].mxu0  ;;  %3755 = vpow2.f32 %v2150_v19 }
 0x60c   :  { %6158 = vst [vmem:[#allocation10_spill] sm:$0xff] %v5587_v33  ;;  %v5593_v6 = vpop.eup %3737  ;;  %v2424_v11 = vmax.f32 %v5585_v37, %v5591_v0  ;;  %3757 = vpow2.f32 %v2154_v50 }
 0x60d   :  { %6159 = vst [vmem:[#allocation11_spill] sm:$0xff] %v5593_v6  ;;  %v5597_v28 = vpop.eup %3739  ;;  %3356 = vmatpush1.bf16.msra.mxu1 %v3355_v48  ;;  %v3357_v15 = vpack.c.bf16 %v5593_v6, %v5587_v33  ;;  %3759 = vpow2.f32 %v2160_v41 }
 0x60e   :  { %6160 = vst [vmem:[#allocation16_spill] sm:$0xff] %v5597_v28  ;;  %v5601_v16 = vpop.eup %3741  ;;  %2425 = vmax.xlane.f32.xlu1 %v2424_v11  ;;  %v5603_v60 = vpop.f32.mrb[154].mxu0  ;;  %3761 = vpow2.f32 %v2158_v22 }
 0x60f   :  { %6161 = vst [vmem:[#allocation17_spill] sm:$0xff] %v5601_v16  ;;  %v5605_v47 = vpop.eup %3743  ;;  %3358 = vmatprep.subr.bf16.mxu1 %v3357_v15  ;;  %v3359_v52 = vpack.c.bf16 %v5601_v16, %v5597_v28  ;;  %v5609_v29 = vpop.f32.mrb[155].mxu0 }
 0x610   :  { %6162 = vst [vmem:[#allocation14_spill] sm:$0xff] %v5605_v47  ;;  %v5611_v36 = vpop.eup %3745  ;;  %v2427_v30 = vmax.f32 %v5603_v60, %v5609_v29 }
 0x611   :  { %6163 = vst [vmem:[#allocation15_spill] sm:$0xff] %v5611_v36  ;;  %v5615_v19 = vpop.eup %3747  ;;  %3360 = vmatpush1.bf16.msra.mxu1 %v3359_v52  ;;  %v3361_v45 = vpack.c.bf16 %v5611_v36, %v5605_v47 }
 0x612   :  { %6164 = vst [vmem:[#allocation20_spill] sm:$0xff] %v5615_v19  ;;  %v5619_v50 = vpop.eup %3749  ;;  %2428 = vmax.xlane.f32.xlu1 %v2427_v30  ;;  %v5621_v32 = vpop.f32.mrb[156].mxu0 }
 0x613   :  { %6165 = vst [vmem:[#allocation21_spill] sm:$0xff] %v5619_v50  ;;  %v5623_v41 = vpop.eup %3751  ;;  %3362 = vmatprep.subr.bf16.mxu1 %v3361_v45  ;;  %v3363_v22 = vpack.c.bf16 %v5619_v50, %v5615_v19  ;;  %v5627_v48 = vpop.f32.mrb[157].mxu0 }
 0x614   :  { %6166 = vst [vmem:[#allocation18_spill] sm:$0xff] %v5623_v41  ;;  %v5629_v11 = vpop.eup %3753  ;;  %v2430_v15 = vmax.f32 %v5621_v32, %v5627_v48 }
 0x615   :  { %6167 = vst [vmem:[#allocation19_spill] sm:$0xff] %v5629_v11  ;;  %v5633_v52 = vpop.eup %3755  ;;  %3364 = vmatpush1.bf16.msra.mxu1 %v3363_v22  ;;  %v3365_v30 = vpack.c.bf16 %v5629_v11, %v5623_v41 }
 0x616   :  { %6168 = vst [vmem:[#allocation23_spill] sm:$0xff] %v5633_v52  ;;  %v5637_v12 = vpop.eup %3757  ;;  %2431 = vmax.xlane.f32.xlu1 %v2430_v15  ;;  %v5639_v45 = vpop.f32.mrb[158].mxu0 }
 0x617   :  { %6169 = vst [vmem:[#allocation5_spill] sm:$0xff] %v5637_v12  ;;  %v5641_v58 = vpop.eup %3759  ;;  %3366 = vmatprep.subr.bf16.mxu1 %v3365_v30  ;;  %v3367_v36 = vpack.c.bf16 %v5637_v12, %v5633_v52  ;;  %v5645_v47 = vpop.f32.mrb[159].mxu0 }
 0x618   :  { %6170 = vst [vmem:[#allocation22_spill] sm:$0xff] %v5641_v58  ;;  %v5647_v50 = vpop.eup %3761  ;;  %v3369_v22 = vpack.c.bf16 %v5495_v23, %v5641_v58  ;;  %v2433_v11 = vmax.f32 %v5639_v45, %v5645_v47  ;;  %v3995_v23 = vld [vmem:[%s6068_s2] sm:$0xff] }
 0x619   :  { %6171 = vst [vmem:[#allocation6_spill] sm:$0xff] %v5647_v50  ;;  %3368 = vmatpush1.bf16.msra.mxu1 %v3367_v36  ;;  %v3371_v30 = vpack.c.bf16 %v5491_v1, %v5647_v50  ;;  %v3996_v36 = vld [vmem:[%s6068_s2 + $0x8] sm:$0xff] }
 0x61a   :  { %3370 = vmatprep.subr.bf16.mxu1 %v3369_v22  ;;  %2434 = vmax.xlane.f32.xlu1 %v2433_v11  ;;  %v5653_v15 = vpop.f32.mrb[160].mxu0  ;;  %v3997_v11 = vld [vmem:[%s6068_s2 + $0x10] sm:$0xff]  ;;  %v4000_v22 = vld [vmem:[%s6068_s2 + $0x28] sm:$0xff] }
 0x61b   :  { %v5657_v41 = vpop.f32.mrb[161].mxu0 }
 0x61c   :  { %v2436_v12 = vmax.f32 %v5653_v15, %v5657_v41 }
 0x61d   :  { %3372 = vmatpush1.bf16.msra.mxu1 %v3371_v30  ;;  %v4001_v30 = vld [vmem:[%s6068_s2 + $0x30] sm:$0xff] }
 0x61e   :  { %2437 = vmax.xlane.f32.xlu1 %v2436_v12  ;;  %v3998_v12 = vld [vmem:[%s6068_s2 + $0x18] sm:$0xff] }
 0x620   :  { %2231 = vmatmul.mubr.f32.vlgmr.msra.gmra.mrb[96].mxu1 %v3995_v23  ;;  %v3999_v23 = vld [vmem:[%s6068_s2 + $0x20] sm:$0xff] }
 0x621   :  { %2236 = vmatprep.mubr.f32.mxu1 %v6152_v55 }
 0x624   :  { %2237 = vmatmul.mubr.f32.gmra.mrb[98].mxu1 %v3996_v36  ;;  %v4002_v36 = vld [vmem:[%s6068_s2 + $0x38] sm:$0xff] }
 0x625   :  { %2242 = vmatprep.mubr.f32.mxu1 %v6152_v55 }
 0x628   :  { %2243 = vmatmul.mubr.f32.gmra.mrb[100].mxu1 %v3997_v11  ;;  %v4053_v11 = vmov 0  }
 0x629   :  { %2248 = vmatprep.mubr.f32.mxu1 %v6152_v55  ;;  %3474 = vset.pattern.permute.xlu0 %v4053_v11  ;;  %v4005_v11 = vld [vmem:[%s6068_s2 + $0x50] sm:$0xff] }
 0x62c   :  { %2249 = vmatmul.mubr.f32.gmra.mrb[102].mxu1 %v3998_v12  ;;  %v4003_v12 = vld [vmem:[%s6068_s2 + $0x40] sm:$0xff] }
 0x62d   :  { %2254 = vmatprep.mubr.f32.mxu1 %v6152_v55 }
 0x630   :  { %2255 = vmatmul.mubr.f32.gmra.mrb[104].mxu1 %v3999_v23  ;;  %v4004_v23 = vld [vmem:[%s6068_s2 + $0x48] sm:$0xff] }
 0x631   :  { %2260 = vmatprep.mubr.f32.mxu1 %v6152_v55 }
 0x634   :  { %2261 = vmatmul.mubr.f32.gmra.mrb[106].mxu1 %v4000_v22  ;;  %v1933_v22 = vpop.f32.mrb[162].mxu0 }
 0x635   :  { %2266 = vmatprep.mubr.f32.mxu1 %v6152_v55 }
 0x638   :  { %2267 = vmatmul.mubr.f32.gmra.mrb[108].mxu1 %v4001_v30  ;;  %v1935_v30 = vpop.f32.mrb[163].mxu0 }
 0x639   :  { %2272 = vmatprep.mubr.f32.mxu1 %v6152_v55 }
 0x63c   :  { %2273 = vmatmul.mubr.f32.gmra.mrb[110].mxu1 %v4002_v36  ;;  %v1939_v36 = vpop.f32.mrb[164].mxu0 }
 0x63d   :  { %2278 = vmatprep.mubr.f32.mxu1 %v6152_v55  ;;  %v3375_v58 = vpack.c.bf16 %v1939_v36, %v1933_v22  ;;  %v1941_v1 = vpop.f32.mrb[165].mxu0  ;;  %v4006_v22 = vld [vmem:[%s6068_s2 + $0x58] sm:$0xff] }
 0x63e   :  { %v1945_v50 = vpop.f32.mrb[166].mxu0 }
 0x63f   :  { %v1947_v52 = vpop.f32.mrb[167].mxu0 }
 0x640   :  { %2279 = vmatmul.mubr.f32.gmra.mrb[112].mxu1 %v4003_v12  ;;  %v3373_v12 = vpack.c.bf16 %v1941_v1, %v1935_v30  ;;  %v1951_v19 = vpop.f32.mrb[168].mxu0 }
 0x641   :  { %2284 = vmatprep.mubr.f32.mxu1 %v6152_v55  ;;  %v1953_v6 = vpop.f32.mrb[169].mxu0 }
 0x642   :  { %3374 = vmatprep.subr.bf16.mxu1 %v3373_v12  ;;  %v3377_v36 = vpack.c.bf16 %v1953_v6, %v1947_v52  ;;  %v1957_v33 = vpop.f32.mrb[170].mxu0 }
 0x643   :  { %3376 = vmatpush1.bf16.xpose.msra.mxu1 %v3375_v58  ;;  %v4007_v58 = vld [vmem:[%s6068_s2 + $0x60] sm:$0xff] }
 0x644   :  { %2285 = vmatmul.mubr.f32.gmra.mrb[114].mxu1 %v4004_v23  ;;  %v3379_v23 = vpack.c.bf16 %v1951_v19, %v1945_v50  ;;  %3378 = vmatprep.subr.bf16.mxu1 %v3377_v36  ;;  %v4008_v36 = vld [vmem:[%s6068_s2 + $0x68] sm:$0xff] }
 0x645   :  { %2290 = vmatprep.mubr.f32.mxu1 %v6152_v55 }
 0x648   :  { %2291 = vmatmul.mubr.f32.gmra.mrb[116].mxu1 %v4005_v11  ;;  %v1959_v11 = vpop.f32.mrb[171].mxu0 }
 0x649   :  { %2296 = vmatprep.mubr.f32.mxu1 %v6152_v55  ;;  %v1963_v1 = vpop.f32.mrb[172].mxu0 }
 0x64a   :  { %v3383_v30 = vpack.c.bf16 %v1963_v1, %v1957_v33  ;;  %v1965_v16 = vpop.f32.mrb[173].mxu0 }
 0x64b   :  { %v3381_v19 = vpack.c.bf16 %v1965_v16, %v1959_v11  ;;  %v1969_v50 = vpop.f32.mrb[174].mxu0  ;;  %3380 = vmatpush1.bf16.xpose.msra.mxu1 %v3379_v23  ;;  %v4009_v23 = vld [vmem:[%s6068_s2 + $0x70] sm:$0xff] }
 0x64c   :  { %2297 = vmatmul.mubr.f32.gmra.mrb[118].mxu1 %v4006_v22  ;;  %v1971_v12 = vpop.f32.mrb[175].mxu0 }
 0x64d   :  { %2302 = vmatprep.mubr.f32.mxu1 %v6152_v55  ;;  %v1975_v22 = vpop.f32.mrb[176].mxu0  ;;  %3382 = vmatprep.subr.bf16.mxu1 %v3381_v19 }
 0x64e   :  { %v3387_v6 = vpack.c.bf16 %v1975_v22, %v1969_v50  ;;  %v1977_v52 = vpop.f32.mrb[177].mxu0 }
 0x64f   :  { %v3385_v33 = vpack.c.bf16 %v1977_v52, %v1971_v12  ;;  %v1981_v1 = vpop.f32.mrb[178].mxu0  ;;  %v4010_v52 = vld [vmem:[%s6068_s2 + $0x78] sm:$0xff] }
 0x650   :  { %2303 = vmatmul.mubr.f32.gmra.mrb[120].mxu1 %v4007_v58  ;;  %v1983_v58 = vpop.f32.mrb[179].mxu0 }
 0x651   :  { %2308 = vmatprep.mubr.f32.mxu1 %v6152_v55  ;;  %v1987_v16 = vpop.f32.mrb[180].mxu0 }
 0x652   :  { %v3391_v11 = vpack.c.bf16 %v1987_v16, %v1981_v1  ;;  %v1989_v28 = vpop.f32.mrb[181].mxu0 }
 0x653   :  { %v3389_v50 = vpack.c.bf16 %v1989_v28, %v1983_v58  ;;  %v1993_v22 = vpop.f32.mrb[182].mxu0  ;;  %3384 = vmatpush1.bf16.xpose.msra.mxu1 %v3383_v30 }
 0x654   :  { %2309 = vmatmul.mubr.f32.gmra.mrb[122].mxu1 %v4008_v36  ;;  %v1995_v54 = vpop.f32.mrb[183].mxu0  ;;  %3386 = vmatprep.subr.bf16.mxu1 %v3385_v33 }
 0x655   :  { %2314 = vmatprep.mubr.f32.mxu1 %v6152_v55  ;;  %v1999_v36 = vpop.f32.mrb[184].mxu0 }
 0x656   :  { %v3395_v19 = vpack.c.bf16 %v1999_v36, %v1993_v22  ;;  %v2001_v12 = vpop.f32.mrb[185].mxu0 }
 0x657   :  { %v3393_v1 = vpack.c.bf16 %v2001_v12, %v1995_v54 }
 0x658   :  { %2315 = vmatmul.mubr.f32.gmra.mrb[124].mxu1 %v4009_v23 }
 0x659   :  { %2320 = vmatprep.mubr.f32.mxu1 %v6152_v55 }
 0x65b   :  { %3388 = vmatpush1.bf16.xpose.msra.mxu1 %v3387_v6 }
 0x65c   :  { %2321 = vmatmul.mubr.f32.gmra.mrb[126].mxu1 %v4010_v52  ;;  %3390 = vmatprep.subr.bf16.mxu1 %v3389_v50  ;;  %v2005_v50 = vpop.f32.mrb[186].mxu0 }
 0x663   :  { %3392 = vmatpush1.bf16.xpose.msra.mxu1 %v3391_v11 }
 0x664   :  { %3394 = vmatprep.subr.bf16.mxu1 %v3393_v1 }
 0x66b   :  { %3396 = vmatpush1.bf16.xpose.msra.mxu1 %v3395_v19 }
 0x66f   :  { %v2393_v28 = vpop.xlane.xlu1 %2392 }
 0x670   :  { %v2439_v58 = vsub.f32 %v5403_v18, %v2393_v28  ;;  %v2440_v16 = vsub.f32 %v5405_v42, %v2393_v28  ;;  %v2007_v42 = vpop.f32.mrb[187].mxu0 }
 0x671   :  { %v2011_v19 = vpop.f32.mrb[188].mxu0 }
 0x672   :  { %v2471_v23 = vmul.f32 1.442695, %v2439_v58  ;;  %v2473_v30 = vmul.f32 1.442695, %v2440_v16  ;;  %v3399_v58 = vpack.c.bf16 %v2011_v19, %v2005_v50 }
 0x673   :  { %v2396_v22 = vpop.xlane.xlu1 %2395 }
 0x674   :  { %3763 = vpow2.f32 %v2471_v23  ;;  %v2441_v36 = vsub.f32 %v5409_v25, %v2396_v22  ;;  %v2442_v52 = vsub.f32 %v5411_v46, %v2396_v22  ;;  %v2013_v25 = vpop.f32.mrb[189].mxu0 }
 0x675   :  { %3765 = vpow2.f32 %v2473_v30  ;;  %v3397_v23 = vpack.c.bf16 %v2013_v25, %v2007_v42 }
 0x676   :  { %v2475_v54 = vmul.f32 1.442695, %v2441_v36  ;;  %v2477_v6 = vmul.f32 1.442695, %v2442_v52 }
 0x677   :  { %v2399_v33 = vpop.xlane.xlu1 %2398  ;;  %3398 = vmatprep.subr.bf16.mxu1 %v3397_v23 }
 0x678   :  { %3767 = vpow2.f32 %v2475_v54  ;;  %v2443_v11 = vsub.f32 %v5415_v13, %v2399_v33  ;;  %v2444_v18 = vsub.f32 %v5417_v44, %v2399_v33  ;;  %3400 = vmatpush1.bf16.xpose.msra.mxu1 %v3399_v58 }
 0x679   :  { %3769 = vpow2.f32 %v2477_v6 }
 0x67a   :  { %v2479_v12 = vmul.f32 1.442695, %v2443_v11  ;;  %v2481_v1 = vmul.f32 1.442695, %v2444_v18 }
 0x67b   :  { %v2402_v28 = vpop.xlane.xlu1 %2401 }
 0x67c   :  { %3771 = vpow2.f32 %v2479_v12  ;;  %v2445_v46 = vsub.f32 %v5425_v57, %v2402_v28  ;;  %v2446_v16 = vsub.f32 %v5428_v26, %v2402_v28  ;;  %v2017_v26 = vpop.f32.mrb[190].mxu0 }
 0x67d   :  { %3773 = vpow2.f32 %v2481_v1  ;;  %v2019_v6 = vpop.f32.mrb[191].mxu0 }
 0x67e   :  { %v5732_v30 = vpop.eup %3763  ;;  %v2483_v13 = vmul.f32 1.442695, %v2445_v46  ;;  %v2485_v44 = vmul.f32 1.442695, %v2446_v16  ;;  %v2023_v50 = vpop.f32.mrb[192].mxu0 }
 0x67f   :  { %v5734_v22 = vpop.eup %3765  ;;  %v2405_v36 = vpop.xlane.xlu1 %2404  ;;  %v3403_v1 = vpack.c.bf16 %v2023_v50, %v2017_v26 }
 0x680   :  { %3775 = vpow2.f32 %v2483_v13  ;;  %v2447_v52 = vsub.f32 %v5445_v62, %v2405_v36  ;;  %v2448_v54 = vsub.f32 %v5451_v40, %v2405_v36  ;;  %v2535_v57 = vadd.f32 %v5734_v22, %v5732_v30  ;;  %v2025_v19 = vpop.f32.mrb[193].mxu0 }
 0x681   :  { %3777 = vpow2.f32 %v2485_v44  ;;  %v3401_v58 = vpack.c.bf16 %v2025_v19, %v2019_v6 }
 0x682   :  { %v5740_v33 = vpop.eup %3767  ;;  %v2487_v11 = vmul.f32 1.442695, %v2447_v52  ;;  %v2489_v18 = vmul.f32 1.442695, %v2448_v54  ;;  %2536 = vadd.xlane.f32.xlu1 %v2535_v57 }
 0x683   :  { %v5742_v42 = vpop.eup %3769  ;;  %v2408_v12 = vpop.xlane.xlu1 %2407  ;;  %3402 = vmatprep.subr.bf16.mxu1 %v3401_v58 }
 0x684   :  { %3779 = vpow2.f32 %v2487_v11  ;;  %v2449_v62 = vsub.f32 %v5459_v49, %v2408_v12  ;;  %v2450_v40 = vsub.f32 %v5467_v8, %v2408_v12  ;;  %v2538_v28 = vadd.f32 %v5742_v42, %v5740_v33  ;;  %3404 = vmatpush1.bf16.xpose.msra.mxu1 %v3403_v1 }
 0x685   :  { %3781 = vpow2.f32 %v2489_v18 }
 0x686   :  { %v5748_v25 = vpop.eup %3771  ;;  %v2491_v46 = vmul.f32 1.442695, %v2449_v62  ;;  %v2493_v16 = vmul.f32 1.442695, %v2450_v40  ;;  %2539 = vadd.xlane.f32.xlu1 %v2538_v28 }
 0x687   :  { %v5750_v23 = vpop.eup %3773  ;;  %v2411_v13 = vpop.xlane.xlu1 %2410 }
 0x688   :  { %3783 = vpow2.f32 %v2491_v46  ;;  %v2451_v44 = vsub.f32 %v5477_v3, %v2411_v13  ;;  %v2452_v49 = vsub.f32 %v5483_v39, %v2411_v13  ;;  %v2541_v8 = vadd.f32 %v5750_v23, %v5748_v25 }
 0x689   :  { %3785 = vpow2.f32 %v2493_v16 }
 0x68a   :  { %v5756_v36 = vpop.eup %3775  ;;  %v2495_v52 = vmul.f32 1.442695, %v2451_v44  ;;  %v2497_v54 = vmul.f32 1.442695, %v2452_v49  ;;  %2542 = vadd.xlane.f32.xlu1 %v2541_v8 }
 0x68b   :  { %v5758_v57 = vpop.eup %3777  ;;  %v2414_v26 = vpop.xlane.xlu1 %2413 }
 0x68c   :  { %3787 = vpow2.f32 %v2495_v52  ;;  %v2453_v6 = vsub.f32 %v5497_v4, %v2414_v26  ;;  %v2454_v3 = vsub.f32 %v5507_v7, %v2414_v26  ;;  %v2544_v39 = vadd.f32 %v5758_v57, %v5756_v36 }
 0x68d   :  { %3789 = vpow2.f32 %v2497_v54 }
 0x68e   :  { %v5764_v11 = vpop.eup %3779  ;;  %v2499_v18 = vmul.f32 1.442695, %v2453_v6  ;;  %v2501_v50 = vmul.f32 1.442695, %v2454_v3  ;;  %2545 = vadd.xlane.f32.xlu1 %v2544_v39 }
 0x68f   :  { %v5766_v12 = vpop.eup %3781  ;;  %v2417_v1 = vpop.xlane.xlu1 %2416 }
 0x690   :  { %3791 = vpow2.f32 %v2499_v18  ;;  %v2455_v19 = vsub.f32 %v5523_v17, %v2417_v1  ;;  %v2456_v62 = vsub.f32 %v5533_v34, %v2417_v1  ;;  %v2547_v4 = vadd.f32 %v5766_v12, %v5764_v11 }
 0x691   :  { %3793 = vpow2.f32 %v2501_v50 }
 0x692   :  { %v5772_v7 = vpop.eup %3783  ;;  %v2503_v40 = vmul.f32 1.442695, %v2455_v19  ;;  %v2505_v28 = vmul.f32 1.442695, %v2456_v62  ;;  %2548 = vadd.xlane.f32.xlu1 %v2547_v4 }
 0x693   :  { %v5774_v58 = vpop.eup %3785  ;;  %v2420_v46 = vpop.xlane.xlu1 %2419 }
 0x694   :  { %3795 = vpow2.f32 %v2503_v40  ;;  %v2457_v16 = vsub.f32 %v5549_v38, %v2420_v46  ;;  %v2458_v13 = vsub.f32 %v5555_v59, %v2420_v46  ;;  %v2550_v17 = vadd.f32 %v5774_v58, %v5772_v7 }
 0x695   :  { %3797 = vpow2.f32 %v2505_v28 }
 0x696   :  { %v5780_v34 = vpop.eup %3787  ;;  %v2507_v44 = vmul.f32 1.442695, %v2457_v16  ;;  %v2509_v49 = vmul.f32 1.442695, %v2458_v13  ;;  %2551 = vadd.xlane.f32.xlu1 %v2550_v17 }
 0x697   :  { %v5782_v8 = vpop.eup %3789  ;;  %v2423_v52 = vpop.xlane.xlu1 %2422 }
 0x698   :  { %3799 = vpow2.f32 %v2507_v44  ;;  %v2459_v54 = vsub.f32 %v5567_v31, %v2423_v52  ;;  %v2460_v26 = vsub.f32 %v5573_v53, %v2423_v52  ;;  %v2553_v38 = vadd.f32 %v5782_v8, %v5780_v34 }
 0x699   :  { %3801 = vpow2.f32 %v2509_v49 }
 0x69a   :  { %v5788_v59 = vpop.eup %3791  ;;  %v2511_v6 = vmul.f32 1.442695, %v2459_v54  ;;  %v2513_v3 = vmul.f32 1.442695, %v2460_v26  ;;  %2554 = vadd.xlane.f32.xlu1 %v2553_v38 }
 0x69b   :  { %v5790_v39 = vpop.eup %3793  ;;  %v2426_v18 = vpop.xlane.xlu1 %2425 }
 0x69c   :  { %3803 = vpow2.f32 %v2511_v6  ;;  %v2461_v50 = vsub.f32 %v5585_v37, %v2426_v18  ;;  %v2462_v1 = vsub.f32 %v5591_v0, %v2426_v18  ;;  %v2556_v31 = vadd.f32 %v5790_v39, %v5788_v59 }
 0x69d   :  { %3805 = vpow2.f32 %v2513_v3 }
 0x69e   :  { %v5796_v53 = vpop.eup %3795  ;;  %v2515_v19 = vmul.f32 1.442695, %v2461_v50  ;;  %v2517_v62 = vmul.f32 1.442695, %v2462_v1  ;;  %2557 = vadd.xlane.f32.xlu1 %v2556_v31 }
 0x69f   :  { %v5798_v4 = vpop.eup %3797  ;;  %v2429_v40 = vpop.xlane.xlu1 %2428 }
 0x6a0   :  { %3807 = vpow2.f32 %v2515_v19  ;;  %v2463_v28 = vsub.f32 %v5603_v60, %v2429_v40  ;;  %v2464_v46 = vsub.f32 %v5609_v29, %v2429_v40  ;;  %v2559_v37 = vadd.f32 %v5798_v4, %v5796_v53 }
 0x6a1   :  { %3809 = vpow2.f32 %v2517_v62 }
 0x6a2   :  { %v5804_v0 = vpop.eup %3799  ;;  %v2519_v16 = vmul.f32 1.442695, %v2463_v28  ;;  %v2521_v13 = vmul.f32 1.442695, %v2464_v46  ;;  %2560 = vadd.xlane.f32.xlu1 %v2559_v37 }
 0x6a3   :  { %v5806_v17 = vpop.eup %3801  ;;  %v2432_v44 = vpop.xlane.xlu1 %2431 }
 0x6a4   :  { %3811 = vpow2.f32 %v2519_v16  ;;  %v2465_v49 = vsub.f32 %v5621_v32, %v2432_v44  ;;  %v2466_v52 = vsub.f32 %v5627_v48, %v2432_v44  ;;  %v2562_v60 = vadd.f32 %v5806_v17, %v5804_v0 }
 0x6a5   :  { %3813 = vpow2.f32 %v2521_v13 }
 0x6a6   :  { %v5812_v29 = vpop.eup %3803  ;;  %v2523_v54 = vmul.f32 1.442695, %v2465_v49  ;;  %v2525_v26 = vmul.f32 1.442695, %v2466_v52  ;;  %2563 = vadd.xlane.f32.xlu1 %v2562_v60 }
 0x6a7   :  { %v5814_v38 = vpop.eup %3805  ;;  %v2435_v6 = vpop.xlane.xlu1 %2434 }
 0x6a8   :  { %3815 = vpow2.f32 %v2523_v54  ;;  %v2467_v3 = vsub.f32 %v5639_v45, %v2435_v6  ;;  %v2468_v18 = vsub.f32 %v5645_v47, %v2435_v6  ;;  %v2565_v32 = vadd.f32 %v5814_v38, %v5812_v29  ;;  %v89_v6 = vld [vmem:[%s6070_s4] sm:$0xff] }
 0x6a9   :  { %3817 = vpow2.f32 %v2525_v26 }
 0x6aa   :  { %v5820_v48 = vpop.eup %3807  ;;  %v2527_v50 = vmul.f32 1.442695, %v2467_v3  ;;  %v2529_v1 = vmul.f32 1.442695, %v2468_v18  ;;  %2566 = vadd.xlane.f32.xlu1 %v2565_v32  ;;  %v90_v3 = vld [vmem:[%s6071_s5] sm:$0xff] }
 0x6ab   :  { %v5822_v31 = vpop.eup %3809  ;;  %v2438_v19 = vpop.xlane.xlu1 %2437 }
 0x6ac   :  { %3819 = vpow2.f32 %v2527_v50  ;;  %v2469_v62 = vsub.f32 %v5653_v15, %v2438_v19  ;;  %v2470_v40 = vsub.f32 %v5657_v41, %v2438_v19  ;;  %v2568_v47 = vadd.f32 %v5822_v31, %v5820_v48 }
 0x6ad   :  { %3821 = vpow2.f32 %v2529_v1 }
 0x6ae   :  { %v5828_v45 = vpop.eup %3811  ;;  %v2531_v28 = vmul.f32 1.442695, %v2469_v62  ;;  %v2533_v46 = vmul.f32 1.442695, %v2470_v40  ;;  %2569 = vadd.xlane.f32.xlu0 %v2568_v47 }
 0x6af   :  { %v5830_v37 = vpop.eup %3813 }
 0x6b0   :  { %3823 = vpow2.f32 %v2531_v28  ;;  %v2571_v16 = vadd.f32 %v5830_v37, %v5828_v45 }
 0x6b1   :  { %3825 = vpow2.f32 %v2533_v46 }
 0x6b2   :  { %v5834_v13 = vpop.eup %3815  ;;  %2572 = vadd.xlane.f32.xlu1 %v2571_v16 }
 0x6b3   :  { %v5836_v41 = vpop.eup %3817 }
 0x6b4   :  { %v2574_v15 = vadd.f32 %v5836_v41, %v5834_v13 }
 0x6b6   :  { %v5840_v44 = vpop.eup %3819  ;;  %2575 = vadd.xlane.f32.xlu1 %v2574_v15 }
 0x6b7   :  { %v5842_v49 = vpop.eup %3821 }
 0x6b8   :  { %v2577_v52 = vadd.f32 %v5842_v49, %v5840_v44 }
 0x6ba   :  { %v5846_v60 = vpop.eup %3823  ;;  %2578 = vadd.xlane.f32.xlu1 %v2577_v52 }
 0x6bb   :  { %v5848_v54 = vpop.eup %3825 }
 0x6bc   :  { %v2580_v26 = vadd.f32 %v5848_v54, %v5846_v60 }
 0x6be   :  { %2581 = vadd.xlane.f32.xlu1 %v2580_v26 }
 0x6c4   :  { %1550 = vperm.xlu0 %3474, %v89_v6  }
 0x6c8   :  { %1665 = vperm.xlu0 %3474, %v90_v3  }
 0x6f3   :  { %v2232_v18 = vpop.f32.mrb[96].mxu1 }
 0x6f4   :  { %v2234_v32 = vpop.f32.mrb[97].mxu1  ;;  %3827 = vrcp.f32 %v2232_v18 }
 0x6f5   :  { %3829 = vrcp.f32 %v2234_v32 }
 0x6f7   :  { %v2238_v50 = vpop.f32.mrb[98].mxu1 }
 0x6f8   :  { %3831 = vrcp.f32 %v2238_v50  ;;  %v2240_v1 = vpop.f32.mrb[99].mxu1 }
 0x6f9   :  { %3833 = vrcp.f32 %v2240_v1 }
 0x6fb   :  { %v2244_v19 = vpop.f32.mrb[100].mxu1 }
 0x6fc   :  { %v2246_v62 = vpop.f32.mrb[101].mxu1  ;;  %3835 = vrcp.f32 %v2244_v19 }
 0x6fd   :  { %3837 = vrcp.f32 %v2246_v62 }
 0x6fe   :  { %v3828_v47 = vpop.eup %3827 }
 0x6ff   :  { %v2250_v40 = vpop.f32.mrb[102].mxu1  ;;  %v3830_v46 = vpop.eup %3829  ;;  %v5859_v26 = vmul.f32 %v3828_v47, %v5517_v20 }
 0x700   :  { %3839 = vrcp.f32 %v2250_v40  ;;  %v2252_v28 = vpop.f32.mrb[103].mxu1  ;;  %v2360_v18 = vmul.f32 %v3830_v46, %v5505_v63 }
 0x701   :  { %3841 = vrcp.f32 %v2252_v28 }
 0x702   :  { %v3832_v16 = vpop.eup %3831 }
 0x703   :  { %v3834_v15 = vpop.eup %3833  ;;  %v2256_v52 = vpop.f32.mrb[104].mxu1  ;;  %v5862_v6 = vmul.f32 %v3832_v16, %v5521_v21 }
 0x704   :  { %v2258_v3 = vpop.f32.mrb[105].mxu1  ;;  %v2362_v32 = vmul.f32 %v3834_v15, %v5513_v35  ;;  %3843 = vrcp.f32 %v2256_v52 }
 0x705   :  { %v3407_v50 = vpack.c.bf16 %v5862_v6, %v5859_v26  ;;  %3845 = vrcp.f32 %v2258_v3 }
 0x706   :  { %v3405_v1 = vpack.c.bf16 %v2362_v32, %v2360_v18  ;;  %v3836_v62 = vpop.eup %3835 }
 0x707   :  { %v2262_v19 = vpop.f32.mrb[106].mxu1  ;;  %v3838_v20 = vpop.eup %3837  ;;  %v5869_v63 = vmul.f32 %v3836_v62, %v5543_v43 }
 0x708   :  { %3847 = vrcp.f32 %v2262_v19  ;;  %v2264_v40 = vpop.f32.mrb[107].mxu1  ;;  %3406 = vmatprep.subr.bf16.mxu1 %v3405_v1  ;;  %v5875_v16 = vmul.f32 %v3838_v20, %v5529_v10 }
 0x709   :  { %3849 = vrcp.f32 %v2264_v40 }
 0x70a   :  { %v3840_v21 = vpop.eup %3839 }
 0x70b   :  { %v3842_v47 = vpop.eup %3841  ;;  %v2268_v28 = vpop.f32.mrb[108].mxu1  ;;  %v5872_v35 = vmul.f32 %v3840_v21, %v5547_v61 }
 0x70c   :  { %v2270_v46 = vpop.f32.mrb[109].mxu1  ;;  %v5878_v15 = vmul.f32 %v3842_v47, %v5539_v5  ;;  %3851 = vrcp.f32 %v2268_v28 }
 0x70d   :  { %3853 = vrcp.f32 %v2270_v46 }
 0x70e   :  { %v3409_v3 = vpack.c.bf16 %v5878_v15, %v5875_v16  ;;  %v3844_v32 = vpop.eup %3843  ;;  %v6177_v16 = vpack.c.bf16 %v5872_v35, %v5869_v63 }
 0x70f   :  { %v2274_v43 = vpop.f32.mrb[110].mxu1  ;;  %v2537_v18 = vpop.xlane.xlu1 %2536  ;;  %v5885_v40 = vmul.f32 %v3844_v32, %v5561_v51 }
 0x710   :  { %3855 = vrcp.f32 %v2274_v43  ;;  %v2276_v61 = vpop.f32.mrb[111].mxu1  ;;  %v3846_v1 = vpop.eup %3845 }
 0x711   :  { %3857 = vrcp.f32 %v2276_v61  ;;  %v5891_v47 = vmul.f32 %v3846_v1, %v5551_v2 }
 0x712   :  { %v3848_v10 = vpop.eup %3847  ;;  %3859 = vrcp.f32 %v2537_v18 }
 0x713   :  { %v3850_v19 = vpop.eup %3849  ;;  %v2280_v5 = vpop.f32.mrb[112].mxu1  ;;  %v5888_v20 = vmul.f32 %v3848_v10, %v5565_v24 }
 0x714   :  { %v2540_v62 = vpop.xlane.xlu1 %2539  ;;  %v2282_v21 = vpop.f32.mrb[113].mxu1  ;;  %v5894_v28 = vmul.f32 %v3850_v19, %v5557_v9  ;;  %3861 = vrcp.f32 %v2280_v5 }
 0x715   :  { %3863 = vrcp.f32 %v2540_v62 }
 0x716   :  { %v3413_v43 = vpack.c.bf16 %v5894_v28, %v5891_v47  ;;  %3865 = vrcp.f32 %v2282_v21  ;;  %v3852_v24 = vpop.eup %3851  ;;  %v6172_v28 = vld [vmem:[#allocation13_spill] sm:$0xff] }
 0x717   :  { %v2286_v51 = vpop.f32.mrb[114].mxu1  ;;  %v3854_v61 = vpop.eup %3853  ;;  %v5901_v19 = vmul.f32 %v3852_v24, %v5579_v56 }
 0x718   :  { %v2543_v18 = vpop.xlane.xlu1 %2542  ;;  %3867 = vrcp.f32 %v2286_v51  ;;  %v2288_v32 = vpop.f32.mrb[115].mxu1  ;;  %v2372_v47 = vmul.f32 %v3854_v61, %v5569_v27 }
 0x719   :  { %3869 = vrcp.f32 %v2288_v32 }
 0x71a   :  { %v3856_v2 = vpop.eup %3855  ;;  %3871 = vrcp.f32 %v2543_v18 }
 0x71b   :  { %v3858_v9 = vpop.eup %3857  ;;  %v2292_v1 = vpop.f32.mrb[116].mxu1  ;;  %v5904_v5 = vmul.f32 %v3856_v2, %v5583_v14 }
 0x71c   :  { %v2546_v10 = vpop.xlane.xlu1 %2545  ;;  %v3860_v62 = vpop.eup %3859  ;;  %v2374_v51 = vmul.f32 %v3858_v9, %v6172_v28  ;;  %3873 = vrcp.f32 %v2292_v1 }
 0x71d   :  { %v2294_v21 = vpop.f32.mrb[117].mxu1  ;;  %v2599_v46 = vmul.f32 %v3860_v62, %v5732_v30  ;;  %v2600_v18 = vmul.f32 %v3860_v62, %v5734_v22  ;;  %v3419_v32 = vpack.c.bf16 %v5904_v5, %v5901_v19  ;;  %3875 = vrcp.f32 %v2546_v10  ;;  %v6173_v62 = vld [vmem:[#allocation16_spill] sm:$0xff] }
 0x71e   :  { %v3417_v56 = vpack.c.bf16 %v2374_v51, %v2372_v47  ;;  %v3862_v24 = vpop.eup %3861  ;;  %3877 = vrcp.f32 %v2294_v21  ;;  %v6174_v47 = vld [vmem:[#allocation17_spill] sm:$0xff] }
 0x71f   :  { %v2298_v14 = vpop.f32.mrb[118].mxu1  ;;  %2695 = vmatprep.mubr.f32.mxu1 %v2600_v18  ;;  %v3864_v52 = vpop.eup %3863  ;;  %v2375_v21 = vmul.f32 %v3862_v24, %v6173_v62 }
 0x720   :  { %v2549_v2 = vpop.xlane.xlu1 %2548  ;;  %3879 = vrcp.f32 %v2298_v14  ;;  %v2300_v27 = vpop.f32.mrb[119].mxu1  ;;  %2696 = vmatmul.mubr.f32.vlgmr.msra.gmra.mrb[128].mxu1 %v2599_v46  ;;  %v2602_v30 = vmul.f32 %v3864_v52, %v5742_v42  ;;  %v2601_v22 = vmul.f32 %v3864_v52, %v5740_v33  ;;  %v6175_v42 = vld [vmem:[#allocation10_spill] sm:$0xff]  ;;  %v6176_v33 = vld [vmem:[#allocation11_spill] sm:$0xff] }
 0x721   :  { %v3866_v61 = vpop.eup %3865  ;;  %3881 = vrcp.f32 %v2300_v27  ;;  %3408 = vmatpush1.bf16.msra.mxu1 %v3407_v50 }
 0x722   :  { %v3868_v9 = vpop.eup %3867  ;;  %3883 = vrcp.f32 %v2549_v2  ;;  %3410 = vmatprep.subr.bf16.mxu1 %v3409_v3  ;;  %2700 = vmatprep.mubr.f32.mxu1 %v2602_v30  ;;  %v2376_v50 = vmul.f32 %v3866_v61, %v6175_v42 }
 0x723   :  { %v3870_v1 = vpop.eup %3869  ;;  %v2304_v10 = vpop.f32.mrb[120].mxu1  ;;  %v2377_v28 = vmul.f32 %v3868_v9, %v6174_v47 }
 0x724   :  { %v2552_v46 = vpop.xlane.xlu1 %2551  ;;  %v3872_v26 = vpop.eup %3871  ;;  %2701 = vmatmul.mubr.f32.gmra.mrb[130].mxu1 %v2601_v22  ;;  %v2378_v52 = vmul.f32 %v3870_v1, %v6176_v33  ;;  %3885 = vrcp.f32 %v2304_v10  ;;  %v6179_v1 = vld [vmem:[#allocation20_spill] sm:$0xff] }
 0x725   :  { %v2306_v6 = vpop.f32.mrb[121].mxu1  ;;  %3412 = vmatpush1.bf16.msra.mxu1 %v6177_v16  ;;  %v2604_v15 = vmul.f32 %v3872_v26, %v5750_v23  ;;  %v2603_v3 = vmul.f32 %v3872_v26, %v5748_v25  ;;  %v3423_v51 = vpack.c.bf16 %v2377_v28, %v2375_v21  ;;  %3887 = vrcp.f32 %v2552_v46  ;;  %v6180_v46 = vld [vmem:[#allocation21_spill] sm:$0xff]  ;;  %v6182_v28 = vld [vmem:[#allocation15_spill] sm:$0xff] }
 0x726   :  { %3414 = vmatprep.subr.bf16.mxu1 %v3413_v43  ;;  %v3421_v18 = vpack.c.bf16 %v2378_v52, %v2376_v50  ;;  %v3874_v24 = vpop.eup %3873  ;;  %3889 = vrcp.f32 %v2306_v6  ;;  %v6178_v23 = vpack.c.bf16 %v5888_v20, %v5885_v40  ;;  %v6181_v40 = vld [vmem:[#allocation14_spill] sm:$0xff] }
 0x727   :  { %v2310_v14 = vpop.f32.mrb[122].mxu1  ;;  %2705 = vmatprep.mubr.f32.mxu1 %v2604_v15  ;;  %v3876_v27 = vpop.eup %3875  ;;  %v2379_v10 = vmul.f32 %v3874_v24, %v6179_v1  ;;  %v6184_v24 = vld [vmem:[#allocation5_spill] sm:$0xff] }
 0x728   :  { %v2555_v2 = vpop.xlane.xlu1 %2554  ;;  %3891 = vrcp.f32 %v2310_v14  ;;  %v2312_v61 = vpop.f32.mrb[123].mxu1  ;;  %2706 = vmatmul.mubr.f32.gmra.mrb[132].mxu1 %v2603_v3  ;;  %v2606_v25 = vmul.f32 %v3876_v27, %v5758_v57  ;;  %v2605_v63 = vmul.f32 %v3876_v27, %v5756_v36  ;;  %v6183_v3 = vld [vmem:[#allocation23_spill] sm:$0xff]  ;;  %v6185_v27 = vld [vmem:[#allocation18_spill] sm:$0xff] }
 0x729   :  { %v3878_v30 = vpop.eup %3877  ;;  %3893 = vrcp.f32 %v2312_v61  ;;  %3416 = vmatpush1.bf16.msra.mxu1 %v6178_v23 }
 0x72a   :  { %v3880_v35 = vpop.eup %3879  ;;  %3895 = vrcp.f32 %v2555_v2  ;;  %3418 = vmatprep.subr.bf16.mxu1 %v3417_v56  ;;  %2710 = vmatprep.mubr.f32.mxu1 %v2606_v25  ;;  %v2380_v20 = vmul.f32 %v3878_v30, %v6181_v40 }
 0x72b   :  { %v3882_v43 = vpop.eup %3881  ;;  %v2316_v22 = vpop.f32.mrb[124].mxu1  ;;  %v2381_v62 = vmul.f32 %v3880_v35, %v6180_v46 }
 0x72c   :  { %v2558_v9 = vpop.xlane.xlu1 %2557  ;;  %v3884_v21 = vpop.eup %3883  ;;  %2711 = vmatmul.mubr.f32.gmra.mrb[134].mxu1 %v2605_v63  ;;  %v2382_v57 = vmul.f32 %v3882_v43, %v6182_v28  ;;  %3897 = vrcp.f32 %v2316_v22 }
 0x72d   :  { %v2318_v47 = vpop.f32.mrb[125].mxu1  ;;  %3420 = vmatpush1.bf16.msra.mxu1 %v3419_v32  ;;  %v2608_v36 = vmul.f32 %v3884_v21, %v5766_v12  ;;  %v2607_v56 = vmul.f32 %v3884_v21, %v5764_v11  ;;  %v3427_v26 = vpack.c.bf16 %v2381_v62, %v2379_v10  ;;  %3899 = vrcp.f32 %v2558_v9  ;;  %v6188_v21 = vld [vmem:[#allocation8_spill] sm:$0xff] }
 0x72e   :  { %3422 = vmatprep.subr.bf16.mxu1 %v3421_v18  ;;  %v3425_v6 = vpack.c.bf16 %v2382_v57, %v2380_v20  ;;  %v3886_v42 = vpop.eup %3885  ;;  %3901 = vrcp.f32 %v2318_v47  ;;  %v6189_v20 = vld [vmem:[#allocation22_spill] sm:$0xff]  ;;  %v6190_v57 = vld [vmem:[#allocation12_spill] sm:$0xff] }
 0x72f   :  { %v2322_v50 = vpop.f32.mrb[126].mxu1  ;;  %2715 = vmatprep.mubr.f32.mxu1 %v2608_v36  ;;  %v3888_v52 = vpop.eup %3887  ;;  %v2383_v18 = vmul.f32 %v3886_v42, %v6183_v3 }
 0x730   :  { %v2561_v33 = vpop.xlane.xlu1 %2560  ;;  %3903 = vrcp.f32 %v2322_v50  ;;  %v2324_v16 = vpop.f32.mrb[127].mxu1  ;;  %2716 = vmatmul.mubr.f32.gmra.mrb[136].mxu1 %v2607_v56  ;;  %v2610_v12 = vmul.f32 %v3888_v52, %v5774_v58  ;;  %v2609_v11 = vmul.f32 %v3888_v52, %v5772_v7 }
 0x731   :  { %v3890_v15 = vpop.eup %3889  ;;  %3905 = vrcp.f32 %v2324_v16  ;;  %3424 = vmatpush1.bf16.msra.mxu1 %v3423_v51  ;;  %v6186_v51 = vld [vmem:[#allocation19_spill] sm:$0xff] }
 0x732   :  { %v3892_v19 = vpop.eup %3891  ;;  %3907 = vrcp.f32 %v2561_v33  ;;  %3426 = vmatprep.subr.bf16.mxu1 %v3425_v6  ;;  %2720 = vmatprep.mubr.f32.mxu1 %v2610_v12  ;;  %v2384_v61 = vmul.f32 %v3890_v15, %v6185_v27  ;;  %v6191_v15 = vld [vmem:[#allocation9_spill] sm:$0xff] }
 0x733   :  { %v3894_v5 = vpop.eup %3893  ;;  %v2385_v14 = vmul.f32 %v3892_v19, %v6184_v24 }
 0x734   :  { %v2564_v32 = vpop.xlane.xlu1 %2563  ;;  %v3896_v2 = vpop.eup %3895  ;;  %2721 = vmatmul.mubr.f32.gmra.mrb[138].mxu1 %v2609_v11  ;;  %v2386_v30 = vmul.f32 %v3894_v5, %v6186_v51  ;;  %v6192_v11 = vld [vmem:[#allocation7_spill] sm:$0xff] }
 0x735   :  { %3909 = vrcp.f32 %v2564_v32  ;;  %3428 = vmatpush1.bf16.msra.mxu1 %v3427_v26  ;;  %v2612_v7 = vmul.f32 %v3896_v2, %v5782_v8  ;;  %v2611_v58 = vmul.f32 %v3896_v2, %v5780_v34  ;;  %v3431_v23 = vpack.c.bf16 %v2385_v14, %v2383_v18  ;;  %v6187_v34 = vld [vmem:[#allocation6_spill] sm:$0xff] }
 0x736   :  { %v3429_v25 = vpack.c.bf16 %v2386_v30, %v2384_v61  ;;  %v3898_v63 = vpop.eup %3897 }
 0x737   :  { %2725 = vmatprep.mubr.f32.mxu1 %v2612_v7  ;;  %v3900_v43 = vpop.eup %3899  ;;  %v2387_v62 = vmul.f32 %v3898_v63, %v6187_v34 }
 0x738   :  { %v2567_v35 = vpop.xlane.xlu1 %2566  ;;  %2726 = vmatmul.mubr.f32.gmra.mrb[140].mxu1 %v2611_v58  ;;  %3430 = vmatprep.subr.bf16.mxu1 %v3429_v25  ;;  %v3902_v22 = vpop.eup %3901  ;;  %v2614_v9 = vmul.f32 %v3900_v43, %v5790_v39  ;;  %v2613_v1 = vmul.f32 %v3900_v43, %v5788_v59 }
 0x739   :  { %3911 = vrcp.f32 %v2567_v35  ;;  %3432 = vmatpush1.bf16.msra.mxu1 %v3431_v23  ;;  %v2388_v28 = vmul.f32 %v3902_v22, %v6189_v20 }
 0x73a   :  { %v3904_v10 = vpop.eup %3903  ;;  %2730 = vmatprep.mubr.f32.mxu1 %v2614_v9 }
 0x73b   :  { %v3906_v46 = vpop.eup %3905  ;;  %v2570_v8 = vpop.xlane.xlu0 %2569  ;;  %v2389_v47 = vmul.f32 %v3904_v10, %v6188_v21 }
 0x73c   :  { %v3908_v40 = vpop.eup %3907  ;;  %2731 = vmatmul.mubr.f32.gmra.mrb[142].mxu1 %v2613_v1  ;;  %3913 = vrcp.f32 %v2570_v8  ;;  %v2390_v36 = vmul.f32 %v3906_v46, %v6190_v57 }
 0x73d   :  { %v2616_v56 = vmul.f32 %v3908_v40, %v5798_v4  ;;  %v2615_v39 = vmul.f32 %v3908_v40, %v5796_v53  ;;  %v3435_v59 = vpack.c.bf16 %v2389_v47, %v2387_v62 }
 0x73e   :  { %v3433_v6 = vpack.c.bf16 %v2390_v36, %v2388_v28 }
 0x73f   :  { %v3910_v26 = vpop.eup %3909  ;;  %2735 = vmatprep.mubr.f32.mxu1 %v2616_v56  ;;  %v2573_v42 = vpop.xlane.xlu1 %2572 }
 0x740   :  { %v2618_v50 = vmul.f32 %v3910_v26, %v5806_v17  ;;  %2736 = vmatmul.mubr.f32.gmra.mrb[144].mxu1 %v2615_v39  ;;  %3434 = vmatprep.subr.bf16.mxu1 %v3433_v6  ;;  %3915 = vrcp.f32 %v2573_v42  ;;  %v2617_v33 = vmul.f32 %v3910_v26, %v5804_v0 }
 0x741   :  { %3436 = vmatpush1.bf16.msra.mxu1 %v3435_v59 }
 0x742   :  { %2740 = vmatprep.mubr.f32.mxu1 %v2618_v50 }
 0x743   :  { %v3912_v52 = vpop.eup %3911  ;;  %v5961_v16 = vpop.permute.xlu0 %1550 }
 0x744   :  { %v2576_v4 = vpop.xlane.xlu1 %2575  ;;  %v2620_v53 = vmul.f32 %v3912_v52, %v5814_v38  ;;  %2741 = vmatmul.mubr.f32.gmra.mrb[146].mxu1 %v2617_v33  ;;  %v1620_v12 = vadd.f32 %v6191_v15, %v5961_v16  ;;  %v1622_v17 = vadd.f32 %v6192_v11, %v5961_v16  ;;  %v2619_v19 = vmul.f32 %v3912_v52, %v5812_v29  ;;  %v4011_v11 = vld [vmem:[%s6068_s2] sm:$0xff] }
 0x745   :  { %3917 = vrcp.f32 %v2576_v4 }
 0x746   :  { %2745 = vmatprep.mubr.f32.mxu1 %v2620_v53  ;;  %v3914_v0 = vpop.eup %3913  ;;  %v1624_v5 = vrot.slane %v1620_v12, 4  ;;  %v1630_v32 = vrot.slane %v1622_v17, 4 }
 0x747   :  { %v2622_v18 = vmul.f32 %v3914_v0, %v5822_v31  ;;  %v2621_v38 = vmul.f32 %v3914_v0, %v5820_v48  ;;  %v5980_v50 = vpop.permute.xlu0 %1665 }
 0x748   :  { %v2579_v3 = vpop.xlane.xlu1 %2578  ;;  %v1625_v24 = vadd.f32 %v1624_v5, %v1620_v12  ;;  %v1631_v14 = vadd.f32 %v1630_v32, %v1622_v17  ;;  %2746 = vmatmul.mubr.f32.gmra.mrb[148].mxu1 %v2619_v19  ;;  %v4012_v5 = vld [vmem:[%s6068_s2 + $0x8] sm:$0xff] }
 0x749   :  { %3919 = vrcp.f32 %v2579_v3  ;;  %2750 = vmatprep.mubr.f32.mxu1 %v2622_v18 }
 0x74a   :  { %v3916_v2 = vpop.eup %3915  ;;  %v1626_v27 = vrot.slane %v1625_v24, 2  ;;  %v1632_v61 = vrot.slane %v1631_v14, 2 }
 0x74b   :  { %v2624_v29 = vmul.f32 %v3916_v2, %v5830_v37  ;;  %v2623_v30 = vmul.f32 %v3916_v2, %v5828_v45 }
 0x74c   :  { %v2582_v51 = vpop.xlane.xlu1 %2581  ;;  %2751 = vmatmul.mubr.f32.gmra.mrb[150].mxu1 %v2621_v38  ;;  %v1627_v7 = vadd.f32 %v1626_v27, %v1625_v24  ;;  %v1633_v58 = vadd.f32 %v1632_v61, %v1631_v14  ;;  %v4013_v24 = vld [vmem:[%s6068_s2 + $0x10] sm:$0xff]  ;;  %v4014_v27 = vld [vmem:[%s6068_s2 + $0x18] sm:$0xff] }
 0x74d   :  { %3921 = vrcp.f32 %v2582_v51  ;;  %2755 = vmatprep.mubr.f32.mxu1 %v2624_v29 }
 0x74e   :  { %v1628_v23 = vrot.slane %v1627_v7, 1  ;;  %v1634_v25 = vrot.slane %v1633_v58, 1 }
 0x74f   :  { %v3918_v31 = vpop.eup %3917 }
 0x750   :  { %v2626_v63 = vmul.f32 %v3918_v31, %v5836_v41  ;;  %2756 = vmatmul.mubr.f32.gmra.mrb[152].mxu1 %v2623_v30  ;;  %v2625_v48 = vmul.f32 %v3918_v31, %v5834_v13  ;;  %v1629_v35 = vadd.f32 %v1628_v23, %v1627_v7  ;;  %v1635_v43 = vadd.f32 %v1634_v25, %v1633_v58  ;;  %v4015_v30 = vld [vmem:[%s6068_s2 + $0x20] sm:$0xff]  ;;  %v4016_v23 = vld [vmem:[%s6068_s2 + $0x28] sm:$0xff] }
 0x752   :  { %2760 = vmatprep.mubr.f32.mxu1 %v2626_v63  ;;  %v1637_v37 = vmul.f32 0.125, %v1629_v35  ;;  %v1638_v9 = vmul.f32 0.125, %v1635_v43  ;;  %v4017_v35 = vld [vmem:[%s6068_s2 + $0x30] sm:$0xff] }
 0x753   :  { %v3920_v22 = vpop.eup %3919 }
 0x754   :  { %v2628_v1 = vmul.f32 %v3920_v22, %v5842_v49  ;;  %2761 = vmatmul.mubr.f32.gmra.mrb[154].mxu1 %v2625_v48  ;;  %v2627_v45 = vmul.f32 %v3920_v22, %v5840_v44  ;;  %v1639_v10 = vsub.f32 %v1620_v12, %v1637_v37  ;;  %v1640_v46 = vsub.f32 %v1622_v17, %v1638_v9  ;;  %v4018_v9 = vld [vmem:[%s6068_s2 + $0x38] sm:$0xff] }
 0x756   :  { %2765 = vmatprep.mubr.f32.mxu1 %v2628_v1  ;;  %v1641_v34 = vmul.f32 %v1639_v10, %v1639_v10  ;;  %v1642_v41 = vmul.f32 %v1640_v46, %v1640_v46 }
 0x757   :  { %v3922_v8 = vpop.eup %3921 }
 0x758   :  { %v2630_v62 = vmul.f32 %v3922_v8, %v5848_v54  ;;  %2766 = vmatmul.mubr.f32.gmra.mrb[156].mxu1 %v2627_v45  ;;  %v2629_v13 = vmul.f32 %v3922_v8, %v5846_v60  ;;  %v1643_v21 = vrot.slane %v1641_v34, 4  ;;  %v1649_v47 = vrot.slane %v1642_v41, 4 }
 0x75a   :  { %2770 = vmatprep.mubr.f32.mxu1 %v2630_v62  ;;  %v1644_v40 = vadd.f32 %v1643_v21, %v1641_v34  ;;  %v1650_v20 = vadd.f32 %v1649_v47, %v1642_v41  ;;  %v4020_v62 = vld [vmem:[%s6068_s2 + $0x48] sm:$0xff] }
 0x75c   :  { %2771 = vmatmul.mubr.f32.gmra.mrb[158].mxu1 %v2629_v13  ;;  %v1645_v49 = vrot.slane %v1644_v40, 2  ;;  %v1651_v28 = vrot.slane %v1650_v20, 2 }
 0x75d   :  { %2888 = vmatprep.mubr.f32.mxu1 %v6152_v55 }
 0x75e   :  { %v1646_v44 = vadd.f32 %v1645_v49, %v1644_v40  ;;  %v1652_v57 = vadd.f32 %v1651_v28, %v1650_v20  ;;  %v4021_v40 = vld [vmem:[%s6068_s2 + $0x50] sm:$0xff] }
 0x760   :  { %v1647_v36 = vrot.slane %v1646_v44, 1  ;;  %v1653_v56 = vrot.slane %v1652_v57, 1 }
 0x762   :  { %v1648_v39 = vadd.f32 %v1647_v36, %v1646_v44  ;;  %v1654_v59 = vadd.f32 %v1653_v56, %v1652_v57  ;;  %v4022_v44 = vld [vmem:[%s6068_s2 + $0x58] sm:$0xff] }
 0x764   :  { %v1655_v54 = vmul.f32 0.125, %v1648_v39  ;;  %v1656_v26 = vmul.f32 0.125, %v1654_v59  ;;  %v4023_v39 = vld [vmem:[%s6068_s2 + $0x60] sm:$0xff] }
 0x766   :  { %v1657_v6 = vadd.f32 1e-05, %v1655_v54  ;;  %v1658_v60 = vadd.f32 1e-05, %v1656_v26 }
 0x768   :  { %3923 = vrsqrt.f32 %v1657_v6  ;;  %v4024_v6 = vld [vmem:[%s6068_s2 + $0x68] sm:$0xff] }
 0x769   :  { %3925 = vrsqrt.f32 %v1658_v60 }
 0x772   :  { %v3924_v42 = vpop.eup %3923 }
 0x773   :  { %v3926_v33 = vpop.eup %3925  ;;  %v1661_v52 = vmul.f32 %v3924_v42, %v1639_v10 }
 0x774   :  { %v1662_v4 = vmul.f32 %v3926_v33, %v1640_v46  ;;  %v4019_v46 = vld [vmem:[%s6068_s2 + $0x40] sm:$0xff] }
 0x775   :  { %v1668_v53 = vmul.f32 %v5980_v50, %v1661_v52  ;;  %v4025_v52 = vld [vmem:[%s6068_s2 + $0x70] sm:$0xff] }
 0x776   :  { %v1669_v15 = vmul.f32 %v5980_v50, %v1662_v4 }
 0x777   :  { %1670 = vst [vmem:[#allocation2] sm:$0xff] %v1668_v53 }
 0x778   :  { %1671 = vst [vmem:[#allocation2 + $0x8] sm:$0xff] %v1669_v15 }
 0x7f3   :  { %v2697_v12 = vpop.f32.mrb[128].mxu1 }
 0x7f4   :  { %v2776_v17 = vmul.f32 %v4011_v11, %v2697_v12  ;;  %v2699_v19 = vpop.f32.mrb[129].mxu1  ;;  %v4026_v12 = vld [vmem:[%s6068_s2 + $0x78] sm:$0xff] }
 0x7f6   :  { %2792 = vxpose.xlu1.b32.start [1/16] %v2776_v17, 128 }
 0x7f7   :  { %v2702_v0 = vpop.f32.mrb[130].mxu1 }
 0x7f8   :  { %v2777_v32 = vmul.f32 %v4012_v5, %v2702_v0  ;;  %v2704_v3 = vpop.f32.mrb[131].mxu1 }
 0x7fa   :  { %2793 = vxpose.xlu1.b32.cont [2/16] %v2777_v32, 128 }
 0x7fb   :  { %v2707_v18 = vpop.f32.mrb[132].mxu1 }
 0x7fc   :  { %v2778_v14 = vmul.f32 %v4013_v24, %v2707_v18  ;;  %v2709_v38 = vpop.f32.mrb[133].mxu1 }
 0x7fe   :  { %2794 = vxpose.xlu1.b32.cont [3/16] %v2778_v14, 128 }
 0x7ff   :  { %v2712_v2 = vpop.f32.mrb[134].mxu1 }
 0x800   :  { %v2779_v61 = vmul.f32 %v4014_v27, %v2712_v2  ;;  %v2714_v51 = vpop.f32.mrb[135].mxu1 }
 0x802   :  { %2795 = vxpose.xlu1.b32.cont [4/16] %v2779_v61, 128 }
 0x803   :  { %v2717_v29 = vpop.f32.mrb[136].mxu1 }
 0x804   :  { %v2780_v7 = vmul.f32 %v4015_v30, %v2717_v29  ;;  %v2719_v58 = vpop.f32.mrb[137].mxu1 }
 0x806   :  { %2796 = vxpose.xlu1.b32.cont [5/16] %v2780_v7, 128 }
 0x807   :  { %v2722_v31 = vpop.f32.mrb[138].mxu1 }
 0x808   :  { %v2781_v25 = vmul.f32 %v4016_v23, %v2722_v31  ;;  %v2724_v63 = vpop.f32.mrb[139].mxu1 }
 0x80a   :  { %2797 = vxpose.xlu1.b32.cont [6/16] %v2781_v25, 128 }
 0x80b   :  { %v2727_v48 = vpop.f32.mrb[140].mxu1 }
 0x80c   :  { %v2782_v43 = vmul.f32 %v4017_v35, %v2727_v48  ;;  %v2729_v22 = vpop.f32.mrb[141].mxu1 }
 0x80e   :  { %2798 = vxpose.xlu1.b32.cont [7/16] %v2782_v43, 128 }
 0x80f   :  { %v2732_v37 = vpop.f32.mrb[142].mxu1 }
 0x810   :  { %v2783_v1 = vmul.f32 %v4018_v9, %v2732_v37  ;;  %v2734_v45 = vpop.f32.mrb[143].mxu1 }
 0x812   :  { %2799 = vxpose.xlu1.b32.cont [8/16] %v2783_v1, 128 }
 0x813   :  { %v2737_v10 = vpop.f32.mrb[144].mxu1 }
 0x814   :  { %v2784_v8 = vmul.f32 %v4019_v46, %v2737_v10  ;;  %v2739_v34 = vpop.f32.mrb[145].mxu1 }
 0x816   :  { %2800 = vxpose.xlu1.b32.cont [9/16] %v2784_v8, 128 }
 0x817   :  { %v2742_v41 = vpop.f32.mrb[146].mxu1 }
 0x818   :  { %v2785_v13 = vmul.f32 %v4020_v62, %v2742_v41  ;;  %v2744_v21 = vpop.f32.mrb[147].mxu1 }
 0x81a   :  { %2801 = vxpose.xlu1.b32.cont [10/16] %v2785_v13, 128 }
 0x81b   :  { %v2747_v47 = vpop.f32.mrb[148].mxu1 }
 0x81c   :  { %v2786_v20 = vmul.f32 %v4021_v40, %v2747_v47  ;;  %v2749_v49 = vpop.f32.mrb[149].mxu1 }
 0x81e   :  { %2802 = vxpose.xlu1.b32.cont [11/16] %v2786_v20, 128 }
 0x81f   :  { %v2752_v28 = vpop.f32.mrb[150].mxu1 }
 0x820   :  { %v2787_v57 = vmul.f32 %v4022_v44, %v2752_v28  ;;  %v2754_v36 = vpop.f32.mrb[151].mxu1 }
 0x822   :  { %2803 = vxpose.xlu1.b32.cont [12/16] %v2787_v57, 128 }
 0x823   :  { %v2757_v56 = vpop.f32.mrb[152].mxu1 }
 0x824   :  { %v2788_v59 = vmul.f32 %v4023_v39, %v2757_v56  ;;  %v2759_v54 = vpop.f32.mrb[153].mxu1 }
 0x826   :  { %2804 = vxpose.xlu1.b32.cont [13/16] %v2788_v59, 128 }
 0x827   :  { %v2762_v26 = vpop.f32.mrb[154].mxu1 }
 0x828   :  { %v2789_v60 = vmul.f32 %v4024_v6, %v2762_v26  ;;  %v2764_v42 = vpop.f32.mrb[155].mxu1 }
 0x82a   :  { %2805 = vxpose.xlu1.b32.cont [14/16] %v2789_v60, 128 }
 0x82b   :  { %v2767_v33 = vpop.f32.mrb[156].mxu1 }
 0x82c   :  { %v2790_v4 = vmul.f32 %v4025_v52, %v2767_v33  ;;  %v2769_v53 = vpop.f32.mrb[157].mxu1 }
 0x82e   :  { %2806 = vxpose.xlu1.b32.cont [15/16] %v2790_v4, 128 }
 0x82f   :  { %v2772_v15 = vpop.f32.mrb[158].mxu1 }
 0x830   :  { %v2791_v11 = vmul.f32 %v4026_v12, %v2772_v15  ;;  %v2774_v17 = vpop.f32.mrb[159].mxu1 }
 0x832   :  { %2807 = vxpose.xlu1.b32.end [16/16] %v2791_v11, 128 }
 0x876   :  { %v2808_v19 = vpop.trf.xlu1 }
 0x877   :  { %2889 = vmatmul.mubr.f32.vlgmr.msra.gmra.mrb[160].mxu1 %v2808_v19 }
 0x878   :  { %2894 = vmatprep.mubr.f32.mxu1 %v6152_v55 }
 0x87a   :  { %v2809_v0 = vpop.trf.xlu1 }
 0x87b   :  { %2895 = vmatmul.mubr.f32.gmra.mrb[162].mxu1 %v2809_v0 }
 0x87c   :  { %2900 = vmatprep.mubr.f32.mxu1 %v6152_v55 }
 0x87e   :  { %v2810_v5 = vpop.trf.xlu1 }
 0x87f   :  { %2901 = vmatmul.mubr.f32.gmra.mrb[164].mxu1 %v2810_v5  ;;  %v4027_v5 = vld [vmem:[%s6069_s3] sm:$0xff]  ;;  %s4054_s3 = smov [#allocation2]  }
 0x880   :  { %2906 = vmatprep.mubr.f32.mxu1 %v6152_v55  ;;  %s3104_s30 = sshll.u32 %s4054_s3, 4  ;;  %s3105_s30 = int_to_ptr.vmem [resolvable:$true] %s3104_s30 }
 0x881   :  { %s4028_s7 = scalar_lea.vmem %s3105_s30, 512  ;;  %p4033_p1 = scmp.lt.s32.totalorder %s3105_s30, %s3105_s30 }
 0x882   :  { %v2811_v32 = vpop.trf.xlu1  ;;  %p4029_p0 = scmp.ne.s32.totalorder %s3105_s30, %s4028_s7  ;;  %p4034_p2 = scmp.lt.s32.totalorder %s4028_s7, %s4028_s7 }
 0x883   :  { %2907 = vmatmul.mubr.f32.gmra.mrb[166].mxu1 %v2811_v32 }
 0x884   :  { %2912 = vmatprep.mubr.f32.mxu1 %v6152_v55  ;;  %p4035_p3 = por %p4034_p2, %p4033_p1 }
 0x886   :  { %v2812_v3 = vpop.trf.xlu1  ;;  %p4036_p4 = pnand %p4035_p3, %p4029_p0 }
 0x887   :  { %2913 = vmatmul.mubr.f32.gmra.mrb[168].mxu1 %v2812_v3 }
 0x888   :  { %2918 = vmatprep.mubr.f32.mxu1 %v6152_v55 }
 0x88a   :  { %v2813_v18 = vpop.trf.xlu1 }
 0x88b   :  { %2919 = vmatmul.mubr.f32.gmra.mrb[170].mxu1 %v2813_v18 }
 0x88c   :  { %2924 = vmatprep.mubr.f32.mxu1 %v6152_v55 }
 0x88e   :  { %v2814_v24 = vpop.trf.xlu1 }
 0x88f   :  { %2925 = vmatmul.mubr.f32.gmra.mrb[172].mxu1 %v2814_v24 }
 0x890   :  { %2930 = vmatprep.mubr.f32.mxu1 %v6152_v55 }
 0x892   :  { %v2815_v14 = vpop.trf.xlu1 }
 0x893   :  { %2931 = vmatmul.mubr.f32.gmra.mrb[174].mxu1 %v2815_v14 }
 0x894   :  { %2936 = vmatprep.mubr.f32.mxu1 %v6152_v55 }
 0x896   :  { %v2816_v38 = vpop.trf.xlu1 }
 0x897   :  { %2937 = vmatmul.mubr.f32.gmra.mrb[176].mxu1 %v2816_v38 }
 0x898   :  { %2942 = vmatprep.mubr.f32.mxu1 %v6152_v55 }
 0x89a   :  { %v2817_v2 = vpop.trf.xlu1 }
 0x89b   :  { %2943 = vmatmul.mubr.f32.gmra.mrb[178].mxu1 %v2817_v2 }
 0x89c   :  { %2948 = vmatprep.mubr.f32.mxu1 %v6152_v55 }
 0x89e   :  { %v2818_v27 = vpop.trf.xlu1 }
 0x89f   :  { %2949 = vmatmul.mubr.f32.gmra.mrb[180].mxu1 %v2818_v27 }
 0x8a0   :  { %2954 = vmatprep.mubr.f32.mxu1 %v6152_v55 }
 0x8a2   :  { %v2819_v61 = vpop.trf.xlu1 }
 0x8a3   :  { %2955 = vmatmul.mubr.f32.gmra.mrb[182].mxu1 %v2819_v61 }
 0x8a4   :  { %2960 = vmatprep.mubr.f32.mxu1 %v6152_v55 }
 0x8a6   :  { %v2820_v51 = vpop.trf.xlu1 }
 0x8a7   :  { %2961 = vmatmul.mubr.f32.gmra.mrb[184].mxu1 %v2820_v51 }
 0x8a8   :  { %2966 = vmatprep.mubr.f32.mxu1 %v6152_v55 }
 0x8aa   :  { %v2821_v29 = vpop.trf.xlu1 }
 0x8ab   :  { %2967 = vmatmul.mubr.f32.gmra.mrb[186].mxu1 %v2821_v29 }
 0x8ac   :  { %2972 = vmatprep.mubr.f32.mxu1 %v6152_v55 }
 0x8ae   :  { %v2822_v30 = vpop.trf.xlu1 }
 0x8af   :  { %2973 = vmatmul.mubr.f32.gmra.mrb[188].mxu1 %v2822_v30 }
 0x8b0   :  { %2978 = vmatprep.mubr.f32.mxu1 %v6152_v55 }
 0x8b2   :  { %v2823_v7 = vpop.trf.xlu1 }
 0x8b3   :  { %2979 = vmatmul.mubr.f32.gmra.mrb[190].mxu1 %v2823_v7 }
 0x94a   :  { %v2890_v58 = vpop.f32.mrb[160].mxu1 }
 0x94b   :  { %v2892_v31 = vpop.f32.mrb[161].mxu1 }
 0x94e   :  { %v2896_v23 = vpop.f32.mrb[162].mxu1 }
 0x94f   :  { %v3439_v25 = vpack.c.bf16 %v2896_v23, %v2890_v58  ;;  %v2898_v63 = vpop.f32.mrb[163].mxu1 }
 0x950   :  { %v3437_v48 = vpack.c.bf16 %v2898_v63, %v2892_v31 }
 0x952   :  { %3438 = vmatprep.subr.bf16.mxu0 %v3437_v48  ;;  %v2902_v35 = vpop.f32.mrb[164].mxu1 }
 0x953   :  { %3440 = vmatpush1.bf16.msra.mxu0 %v3439_v25  ;;  %v2904_v43 = vpop.f32.mrb[165].mxu1 }
 0x956   :  { %v2908_v22 = vpop.f32.mrb[166].mxu1 }
 0x957   :  { %v3443_v37 = vpack.c.bf16 %v2908_v22, %v2902_v35  ;;  %v2910_v9 = vpop.f32.mrb[167].mxu1 }
 0x958   :  { %v3441_v1 = vpack.c.bf16 %v2910_v9, %v2904_v43 }
 0x95a   :  { %3442 = vmatprep.subr.bf16.mxu0 %v3441_v1  ;;  %v2914_v45 = vpop.f32.mrb[168].mxu1 }
 0x95b   :  { %3444 = vmatpush1.bf16.msra.mxu0 %v3443_v37  ;;  %v2916_v55 = vpop.f32.mrb[169].mxu1 }
 0x95e   :  { %v2920_v10 = vpop.f32.mrb[170].mxu1 }
 0x95f   :  { %v3447_v46 = vpack.c.bf16 %v2920_v10, %v2914_v45  ;;  %v2922_v8 = vpop.f32.mrb[171].mxu1 }
 0x960   :  { %v3445_v34 = vpack.c.bf16 %v2922_v8, %v2916_v55 }
 0x962   :  { %3446 = vmatprep.subr.bf16.mxu0 %v3445_v34  ;;  %v2926_v41 = vpop.f32.mrb[172].mxu1 }
 0x963   :  { %3448 = vmatpush1.bf16.msra.mxu0 %v3447_v46  ;;  %v2928_v62 = vpop.f32.mrb[173].mxu1 }
 0x966   :  { %v2932_v13 = vpop.f32.mrb[174].mxu1 }
 0x967   :  { %v3451_v21 = vpack.c.bf16 %v2932_v13, %v2926_v41  ;;  %v2934_v47 = vpop.f32.mrb[175].mxu1 }
 0x968   :  { %v3449_v40 = vpack.c.bf16 %v2934_v47, %v2928_v62 }
 0x96a   :  { %3450 = vmatprep.subr.bf16.mxu0 %v3449_v40  ;;  %v2938_v20 = vpop.f32.mrb[176].mxu1 }
 0x96b   :  { %3452 = vmatpush1.bf16.msra.mxu0 %v3451_v21  ;;  %v2940_v49 = vpop.f32.mrb[177].mxu1 }
 0x96e   :  { %v2944_v28 = vpop.f32.mrb[178].mxu1 }
 0x96f   :  { %v3455_v44 = vpack.c.bf16 %v2944_v28, %v2938_v20  ;;  %v2946_v57 = vpop.f32.mrb[179].mxu1 }
 0x970   :  { %v3453_v36 = vpack.c.bf16 %v2946_v57, %v2940_v49 }
 0x972   :  { %3454 = vmatprep.subr.bf16.mxu0 %v3453_v36  ;;  %v2950_v56 = vpop.f32.mrb[180].mxu1 }
 0x973   :  { %3456 = vmatpush1.bf16.msra.mxu0 %v3455_v44  ;;  %v2952_v39 = vpop.f32.mrb[181].mxu1 }
 0x976   :  { %v2956_v59 = vpop.f32.mrb[182].mxu1 }
 0x977   :  { %v3459_v54 = vpack.c.bf16 %v2956_v59, %v2950_v56  ;;  %v2958_v26 = vpop.f32.mrb[183].mxu1 }
 0x978   :  { %v3457_v6 = vpack.c.bf16 %v2958_v26, %v2952_v39 }
 0x97a   :  { %3458 = vmatprep.subr.bf16.mxu0 %v3457_v6  ;;  %v2962_v60 = vpop.f32.mrb[184].mxu1 }
 0x97b   :  { %3460 = vmatpush1.bf16.msra.mxu0 %v3459_v54  ;;  %v2964_v42 = vpop.f32.mrb[185].mxu1 }
 0x97e   :  { %v2968_v33 = vpop.f32.mrb[186].mxu1 }
 0x97f   :  { %v3463_v52 = vpack.c.bf16 %v2968_v33, %v2962_v60  ;;  %v2970_v4 = vpop.f32.mrb[187].mxu1 }
 0x980   :  { %v3461_v53 = vpack.c.bf16 %v2970_v4, %v2964_v42 }
 0x982   :  { %v2974_v15 = vpop.f32.mrb[188].mxu1  ;;  %3462 = vmatprep.subr.bf16.mxu0 %v3461_v53 }
 0x983   :  { %v2976_v12 = vpop.f32.mrb[189].mxu1  ;;  %3464 = vmatpush1.bf16.msra.mxu0 %v3463_v52 }
 0x986   :  { %v2980_v11 = vpop.f32.mrb[190].mxu1 }
 0x987   :  { %v3467_v17 = vpack.c.bf16 %v2980_v11, %v2974_v15  ;;  %v2982_v19 = vpop.f32.mrb[191].mxu1 }
 0x988   :  { %v3465_v0 = vpack.c.bf16 %v2982_v19, %v2976_v12 }
 0x98a   :  { %3466 = vmatprep.subr.bf16.mxu0 %v3465_v0 }
 0x98b   :  { %3468 = vmatpush1.bf16.msra.mxu0 %v3467_v17 }
 0x98e   :  { %3050 = vmatmul.mubr.f32.vlgmr.msra.gmra.mrb[194].mxu0 %v4027_v5 }
 0xa61   :  { %v3051_v32 = vpop.f32.mrb[194].mxu0 }
 0xa62   :  { %v3052_v3 = vadd.f32 %v3051_v32, %v5961_v16  ;;  %v3053_v18 = vpop.f32.mrb[195].mxu0 }
 0xa63   :  { %v3054_v24 = vadd.f32 %v3053_v18, %v5961_v16 }
 0xa64   :  { %v3056_v14 = vrot.slane %v3052_v3, 4 }
 0xa65   :  { %v3062_v38 = vrot.slane %v3054_v24, 4 }
 0xa66   :  { %v3057_v2 = vadd.f32 %v3056_v14, %v3052_v3 }
 0xa67   :  { %v3063_v27 = vadd.f32 %v3062_v38, %v3054_v24 }
 0xa68   :  { %v3058_v61 = vrot.slane %v3057_v2, 2 }
 0xa69   :  { %v3064_v51 = vrot.slane %v3063_v27, 2 }
 0xa6a   :  { %v3059_v29 = vadd.f32 %v3058_v61, %v3057_v2 }
 0xa6b   :  { %v3065_v30 = vadd.f32 %v3064_v51, %v3063_v27 }
 0xa6c   :  { %v3060_v7 = vrot.slane %v3059_v29, 1 }
 0xa6d   :  { %v3066_v58 = vrot.slane %v3065_v30, 1 }
 0xa6e   :  { %v3061_v31 = vadd.f32 %v3060_v7, %v3059_v29 }
 0xa6f   :  { %v3067_v23 = vadd.f32 %v3066_v58, %v3065_v30 }
 0xa70   :  { %v3068_v25 = vmul.f32 0.125, %v3061_v31 }
 0xa71   :  { %v3069_v63 = vmul.f32 0.125, %v3067_v23 }
 0xa72   :  { %v3070_v48 = vsub.f32 %v3052_v3, %v3068_v25 }
 0xa73   :  { %v3071_v35 = vsub.f32 %v3054_v24, %v3069_v63 }
 0xa74   :  { %v3072_v43 = vmul.f32 %v3070_v48, %v3070_v48 }
 0xa75   :  { %v3073_v22 = vmul.f32 %v3071_v35, %v3071_v35 }
 0xa76   :  { %v3074_v37 = vrot.slane %v3072_v43, 4 }
 0xa77   :  { %v3080_v16 = vrot.slane %v3073_v22, 4 }
 0xa78   :  { %v3075_v9 = vadd.f32 %v3074_v37, %v3072_v43 }
 0xa79   :  { %v3081_v1 = vadd.f32 %v3080_v16, %v3073_v22 }
 0xa7a   :  { %v3076_v45 = vrot.slane %v3075_v9, 2 }
 0xa7b   :  { %v3082_v55 = vrot.slane %v3081_v1, 2 }
 0xa7c   :  { %v3077_v10 = vadd.f32 %v3076_v45, %v3075_v9 }
 0xa7d   :  { %v3083_v46 = vadd.f32 %v3082_v55, %v3081_v1 }
 0xa7e   :  { %v3078_v8 = vrot.slane %v3077_v10, 1 }
 0xa7f   :  { %v3084_v34 = vrot.slane %v3083_v46, 1 }
 0xa80   :  { %v3079_v41 = vadd.f32 %v3078_v8, %v3077_v10 }
 0xa81   :  { %v3085_v62 = vadd.f32 %v3084_v34, %v3083_v46 }
 0xa82   :  { %v3086_v13 = vmul.f32 0.125, %v3079_v41 }
 0xa83   :  { %v3087_v21 = vmul.f32 0.125, %v3085_v62 }
 0xa84   :  { %v3088_v47 = vadd.f32 1e-05, %v3086_v13 }
 0xa85   :  { %v3089_v40 = vadd.f32 1e-05, %v3087_v21 }
 0xa86   :  { %3927 = vrsqrt.f32 %v3088_v47 }
 0xa87   :  { %3929 = vrsqrt.f32 %v3089_v40 }
 0xa90   :  { %v3928_v20 = vpop.eup %3927 }
 0xa91   :  { %v3930_v49 = vpop.eup %3929  ;;  %v3092_v28 = vmul.f32 %v3928_v20, %v3070_v48 }
 0xa92   :  { %v3093_v44 = vmul.f32 %v3930_v49, %v3071_v35 }
 0xa93   :  { %v3094_v57 = vmul.f32 %v3092_v28, %v5980_v50 }
 0xa94   :  { %v3095_v36 = vmul.f32 %v3093_v44, %v5980_v50 }
 0xa95   :  { %3097 = vst [vmem:[#allocation2 + $0x10] sm:$0xff] %v3094_v57 }
 0xa96   :  { %3098 = vst [vmem:[#allocation2 + $0x18] sm:$0xff] %v3095_v36 }
 0xa97   :  { %4039 = shalt.err (!%p4036_p4)
}
 0xa98   :  { %s4040_s10 = scalar_lea.hbm %s6072_s6, 512 }
 0xa99   :  { %p4041_p5 = scmp.ne.s32.totalorder %s6072_s6, %s4040_s10  ;;  %p4044_p6 = scmp.lt.u32.totalorder %s4040_s10, %s6072_s6 }
 0xa9b   :  { %p4046_p7 = pnand %p4044_p6, %p4041_p5 }
 0xa9d   :  { %4049 = shalt.err (!%p4046_p7)
}
 0xa9e   :  { %s4055_s15 = smov 256   ;;  %s4056_s16 = smov 16  }
 0xa9f   :  { %3110 = dma.vmem_to_hbm [thread:$0]  %s3105_s30, 512, %s6072_s6, [#allocation3], %s4055_s15, %s4055_s15, %s4056_s16  }
 0xaa0   :  { %4050 = dma.done.wait [#allocation3], 512  }
 0xaa1   :  { %4051 = vsyncadd [#allocation3], 4294966784 }
 0xaa2   :  { %3114 = vsyncpa [#allocation3], 1 }

</bundles_post_ra>
